<compile_context>
chip_gen: v7x
topology: tpu7x:2x2x1
jax: 0.10.0
libtpu: 0.0.40
codegen_flags: <defaults>
</compile_context>

<pallas_src>
import functools
import math

import jax
import jax.numpy as jnp
from jax import lax
from jax.experimental import pallas as pl
from jax.experimental.pallas import tpu as pltpu

C = 16                 # conv output channels
FREQ = 81              # input frequency bins (fixed by the module)
FREQ_P = 128           # freq padded to one full lane block per time tap
P1_OUT = 26            # pool1 output width ((81-3+1)//3)
P2_OUT = 8             # pool2 output width ((26-3+1)//3)
KW3 = 8                # conv3 kernel width

B1 = 512               # per-phase lane block for conv1 output (26*16=416 -> pad 512)
B2 = 128               # per-phase lane block for conv2 output (8*16 = 128 exactly)
N1 = 3 * B1            # conv1 matmul N (1536)
N2 = 3 * B2            # conv2 matmul N (384)
K1 = 3 * FREQ_P        # fused conv1 matmul K (three 128-aligned time taps = 384)
K2 = B1                # conv2 matmul K (pooled conv1 lanes, padded to 512)
NOUT = 128             # conv3 output lanes (16 real channels + 112 zero pad)
MASK_LANE = FREQ_P + FREQ_P - 1   # spare zero-padding lane carrying the row mask


def _elu(x):
    return jnp.where(x > 0, x, jnp.exp(jnp.minimum(x, 0.0)) - 1.0)


# --------------------------------- kernel ---------------------------------

def _afe_kernel(x_ref, g1_ref, b1_ref, g2_ref, b2_ref, g3_ref, b3_ref, o_ref):
    bf16 = jnp.bfloat16
    xs = x_ref[...]                                       # (M, 384) bf16 tap slab

    # ---- conv1: fused 3-tap Toeplitz matmul (taps pre-concatenated on the host) ----
    s1 = jnp.dot(xs, g1_ref[...], preferred_element_type=jnp.float32)   # (M, 1536)

    # pool1 hoisted before bias/ELU (exact: ELU monotone, bias equal in every phase)
    p1 = jnp.maximum(jnp.maximum(s1[:, :B1], s1[:, B1:2 * B1]), s1[:, 2 * B1:])
    p1 = _elu(p1 + b1_ref[...])                           # (M, 512) f32
    # dropout1: identity (eval)

    # Row-validity mask (1 on real frames, 0 on per-sample time-pad rows) rides in a
    # freq-padding lane of the tap slab whose G1 row is all zeros, so reading it here
    # is free of any extra input / DMA.  It implements conv2's time zero padding.
    mask = xs[:, MASK_LANE:MASK_LANE + 1].astype(jnp.float32)           # (M, 1)
    p1 = (p1 * mask).astype(bf16)

    # ---- conv2: 16->16, kernel (3,3), padding (1,0) ----
    # Slice-concat time shifts: duplicated block-edge rows only ever feed pad rows.
    p1_m1 = jnp.concatenate([p1[:1], p1[:-1]], axis=0)
    p1_p1 = jnp.concatenate([p1[1:], p1[-1:]], axis=0)
    s2 = (jnp.dot(p1_m1, g2_ref[0], preferred_element_type=jnp.float32)
          + jnp.dot(p1, g2_ref[1], preferred_element_type=jnp.float32)
          + jnp.dot(p1_p1, g2_ref[2], preferred_element_type=jnp.float32))  # (M, 384)

    # pool2 hoisted before bias/ELU (same argument as pool1)
    p2 = jnp.maximum(jnp.maximum(s2[:, :B2], s2[:, B2:2 * B2]), s2[:, 2 * B2:])
    p2 = _elu(p2 + b2_ref[...]).astype(bf16)              # (M, 128)
    # dropout2: identity (eval)

    # ---- conv3: 16->16, kernel (1,8); output padded to 128 lanes for dense stores ----
    y3 = jnp.dot(p2, g3_ref[...], preferred_element_type=jnp.float32) + b3_ref[...]
    # dropout3: identity (eval); squeeze+permute are implied by the row-major layout
    o_ref[...] = _elu(y3)                                 # (M, 128) f32, cols 16.. = 0


# ------------------- host-side weight / layout plumbing (glue) -------------------

def _build_g1(w1):
    """w1 (16,1,3,3) -> (384, 1536) bf16 fused Toeplitz.

    Row = kh*128 + freq (freq rows 81..127 zero), col = phase*512 + j*16 + co:
    G1[kh*128 + r, p*B1 + j*16 + co] = sum_kw [r == 3j + p + kw] * w1[co, 0, kh, kw]
    """
    kw = jnp.arange(3)
    r = jnp.arange(FREQ)
    p = jnp.arange(3)
    j = jnp.arange(P1_OUT)
    E = (r[None, :, None, None] ==
         (3 * j[None, None, None, :] + p[None, None, :, None]
          + kw[:, None, None, None])).astype(jnp.float32)        # (kw, r, p, j)
    mats = []
    for kh in range(3):
        wk = w1[:, 0, kh, :].T                                    # (kw, co)
        m = jnp.einsum("krpj,kc->rpjc", E, wk)                    # (81, 3, 26, 16)
        m = m.reshape(FREQ, 3, P1_OUT * C)
        m = jnp.pad(m, ((0, 0), (0, 0), (0, B1 - P1_OUT * C)))    # cols 416 -> 512
        m = m.reshape(FREQ, N1)
        m = jnp.pad(m, ((0, FREQ_P - FREQ), (0, 0)))              # freq rows 81 -> 128
        mats.append(m)
    return jnp.concatenate(mats, axis=0).astype(jnp.bfloat16)     # (384, 1536)


def _build_g2(w2):
    """w2 (16,16,3,3) -> (3, 512, 384) bf16, phase-major columns.

    G2[kh][ji*16 + ci, p*128 + j2*16 + co] = sum_kw [ji == 3*j2 + p + kw] * w2[co,ci,kh,kw]
    """
    kw = jnp.arange(3)
    ji = jnp.arange(P1_OUT)
    p = jnp.arange(3)
    j2 = jnp.arange(P2_OUT)
    E = (ji[None, :, None, None] ==
         (3 * j2[None, None, None, :] + p[None, None, :, None]
          + kw[:, None, None, None])).astype(jnp.float32)         # (kw, ji, p, j2)
    mats = []
    for kh in range(3):
        wt = jnp.transpose(w2[:, :, kh, :], (2, 1, 0))            # (kw, ci, co)
        m = jnp.einsum("kipj,kcd->icpjd", E, wt)                  # (26,16,3,8,16)
        m = m.reshape(P1_OUT * C, N2)
        m = jnp.pad(m, ((0, K2 - P1_OUT * C), (0, 0)))            # rows 416 -> 512
        mats.append(m)
    return jnp.stack(mats, 0).astype(jnp.bfloat16)


def _build_g3(w3):
    """w3 (16,16,1,8) -> (128, 128) bf16; G3[kw*16 + ci, co] = w3[co, ci, 0, kw],
    columns 16..127 zero so the kernel output is lane-dense."""
    g3 = jnp.transpose(w3[:, :, 0, :], (2, 1, 0)).reshape(KW3 * C, C)
    return jnp.pad(g3, ((0, 0), (0, NOUT - C))).astype(jnp.bfloat16)


def _choose_tiling(B, T, target=1024):
    """Pick (samples per block, padded rows per sample, padded batch)."""
    rows = T + 2
    if B * rows <= target:
        return B, rows, B               # single block == full array; no constraints
    unit = 8 // math.gcd(rows, 8)       # min Bblk keeping Mblk % 8 == 0
    if unit * rows <= target:
        Bblk = max(unit, (target // rows) // unit * unit)
        rows_p = rows
    else:
        # long sequences: one sample per step, pad its row count to a multiple of 8
        Bblk = 1
        rows_p = ((rows + 7) // 8) * 8
    B_pad = ((B + Bblk - 1) // Bblk) * Bblk
    return Bblk, rows_p, B_pad


def audio_feature_extractor(x, params):
    """x: (B, T, 81) float32 -> (B, T, 16) float32."""
    w1, b1, w2, b2, w3, b3 = params
    B, T, F = x.shape
    assert F == FREQ

    Bblk, rows_p, B_pad = _choose_tiling(B, T)
    # Every sample must start and end on a zero-pad row (block-edge safety).
    assert rows_p >= T + 2
    Mblk = Bblk * rows_p
    M_total = B_pad * rows_p
    n_blocks = B_pad // Bblk

    g1, g2, g3 = _build_g1(w1), _build_g2(w2), _build_g3(w3)
    b1h = jnp.pad(jnp.tile(b1, P1_OUT), (0, B1 - P1_OUT * C))[None, :]   # (1, 512)
    b2h = jnp.tile(b2, P2_OUT)[None, :]                                  # (1, 128)
    b3h = jnp.pad(b3, (0, NOUT - C))[None, :]                            # (1, 128)

    # Host-side prep: pad batch / time / freq, build the three conv1 time taps as
    # 128-lane-aligned blocks, flatten (batch, time) into the matmul M axis.
    xp = jnp.pad(x, ((0, B_pad - B), (1, rows_p - 1 - T), (0, FREQ_P - FREQ)))
    x_m1 = jnp.pad(xp, ((0, 0), (1, 0), (0, 0)))[:, :-1]     # row t-1 (per sample)
    x_p1 = jnp.pad(xp, ((0, 0), (0, 1), (0, 0)))[:, 1:]      # row t+1 (per sample)
    taps = jnp.concatenate([x_m1, xp, x_p1], axis=2).reshape(M_total, K1)
    # Stash the per-row validity mask in a spare freq-padding lane (its G1 row is 0).
    valid_row = jnp.zeros((rows_p,), jnp.float32).at[1:T + 1].set(1.0)
    taps = taps.at[:, MASK_LANE].set(jnp.tile(valid_row, B_pad))
    taps = taps.astype(jnp.bfloat16)

    out = pl.pallas_call(
        _afe_kernel,
        out_shape=jax.ShapeDtypeStruct((M_total, NOUT), jnp.float32),
        grid_spec=pltpu.PrefetchScalarGridSpec(
            num_scalar_prefetch=0,
            grid=(n_blocks,),
            in_specs=[
                pl.BlockSpec((Mblk, K1), lambda i: (i, 0)),
                # NOTE: weight/bias operands have constant index maps; single-
                # buffering them (pl.Buffered(1)) would save ~2 MiB of VMEM but is
                # unnecessary at this footprint, so the default is kept.
                pl.BlockSpec(g1.shape, lambda i: (0, 0)),
                pl.BlockSpec(b1h.shape, lambda i: (0, 0)),
                pl.BlockSpec(g2.shape, lambda i: (0, 0, 0)),
                pl.BlockSpec(b2h.shape, lambda i: (0, 0)),
                pl.BlockSpec(g3.shape, lambda i: (0, 0)),
                pl.BlockSpec(b3h.shape, lambda i: (0, 0)),
            ],
            out_specs=pl.BlockSpec((Mblk, NOUT), lambda i: (i, 0)),
        ),
        compiler_params=pltpu.CompilerParams(
            dimension_semantics=("parallel",),
            vmem_limit_bytes=48 * 1024 * 1024),
    )(taps, g1, b1h, g2, b2h, g3, b3h)

    # Drop the per-sample pad rows, padded samples and the zero output lanes.
    return out.reshape(B_pad, rows_p, NOUT)[:B, 1:T + 1, :C]


# ------------------------------ pure-JAX reference ------------------------------

def _ref_forward(x, params):
    w1, b1, w2, b2, w3, b3 = params
    dn = ("NCHW", "OIHW", "NCHW")
    z = x[:, None, :, :]                                                     # (B,1,T,81)
    z = lax.conv_general_dilated(z, w1, (1, 1), ((1, 1), (0, 0)),
                                 dimension_numbers=dn) + b1[None, :, None, None]
    z = _elu(z)
    z = lax.reduce_window(z, -jnp.inf, lax.max, (1, 1, 1, 3), (1, 1, 1, 3), "VALID")
    z = lax.conv_general_dilated(z, w2, (1, 1), ((1, 1), (0, 0)),
                                 dimension_numbers=dn) + b2[None, :, None, None]
    z = _elu(z)
    z = lax.reduce_window(z, -jnp.inf, lax.max, (1, 1, 1, 3), (1, 1, 1, 3), "VALID")
    z = lax.conv_general_dilated(z, w3, (1, 1), ((0, 0), (0, 0)),
                                 dimension_numbers=dn) + b3[None, :, None, None]
    z = _elu(z)
    return jnp.transpose(z[..., 0], (0, 2, 1))                               # (B,T,16)


def _init_params(key):
    ks = jax.random.split(key, 6)
    b1b = 1.0 / (1 * 3 * 3) ** 0.5
    b2b = 1.0 / (16 * 3 * 3) ** 0.5
    b3b = 1.0 / (16 * 1 * 8) ** 0.5
    w1 = jax.random.uniform(ks[0], (C, 1, 3, 3), jnp.float32, -b1b, b1b)
    b1 = jax.random.uniform(ks[1], (C,), jnp.float32, -b1b, b1b)
    w2 = jax.random.uniform(ks[2], (C, C, 3, 3), jnp.float32, -b2b, b2b)
    b2 = jax.random.uniform(ks[3], (C,), jnp.float32, -b2b, b2b)
    w3 = jax.random.uniform(ks[4], (C, C, 1, KW3), jnp.float32, -b3b, b3b)
    b3 = jax.random.uniform(ks[5], (C,), jnp.float32, -b3b, b3b)
    return (w1, b1, w2, b2, w3, b3)


if __name__ == "__main__":
    key = jax.random.PRNGKey(0)
    kx, kp = jax.random.split(key)
    B, T = 2, 8
    x = jax.random.normal(kx, (B, T, FREQ), jnp.float32)   # (batch, T frames, 81 bins)
    params = _init_params(kp)

    out = audio_feature_extractor(x, params)
    out = jax.block_until_ready(out)
    assert out.shape == (B, T, C) and out.dtype == jnp.float32

    ref = jax.block_until_ready(_ref_forward(x, params))
    assert bool(jnp.all(jnp.isfinite(out)))
    assert bool(jnp.max(jnp.abs(out - ref)) < 5e-2), "kernel/reference mismatch"

    print("KERNEL_OK")
</pallas_src>

<mosaic_0001>
module attributes {stable_mosaic.version = 11 : i64} {
  func.func @_afe_kernel(%arg0: i32, %arg1: memref<20x384xbf16, #tpu.memory_space<vmem>>, %arg2: memref<384x1536xbf16, #tpu.memory_space<vmem>>, %arg3: memref<1x512xf32, #tpu.memory_space<vmem>>, %arg4: memref<3x512x384xbf16, #tpu.memory_space<vmem>>, %arg5: memref<1x128xf32, #tpu.memory_space<vmem>>, %arg6: memref<128x128xbf16, #tpu.memory_space<vmem>>, %arg7: memref<1x128xf32, #tpu.memory_space<vmem>>, %arg8: memref<20x128xf32, #tpu.memory_space<vmem>>) attributes {dimension_semantics = [#tpu.dimension_semantics<parallel>], iteration_bounds = array<i64: 1>, scalar_prefetch = 0 : i64, scratch_operands = 0 : i64, tpu.core_type = #tpu.core_type<tc>, window_params = [{transform_indices = @transform_0, window_bounds = array<i64: 20, 384>}, {pipeline_mode = #tpu.pipeline_mode<synchronous>, transform_indices = @transform_1, window_bounds = array<i64: 384, 1536>}, {pipeline_mode = #tpu.pipeline_mode<synchronous>, transform_indices = @transform_2, window_bounds = array<i64: 1, 512>}, {pipeline_mode = #tpu.pipeline_mode<synchronous>, transform_indices = @transform_3, window_bounds = array<i64: 3, 512, 384>}, {pipeline_mode = #tpu.pipeline_mode<synchronous>, transform_indices = @transform_4, window_bounds = array<i64: 1, 128>}, {pipeline_mode = #tpu.pipeline_mode<synchronous>, transform_indices = @transform_5, window_bounds = array<i64: 128, 128>}, {pipeline_mode = #tpu.pipeline_mode<synchronous>, transform_indices = @transform_6, window_bounds = array<i64: 1, 128>}, {transform_indices = @transform_7, window_bounds = array<i64: 20, 128>}]} {
    %c0 = arith.constant 0 : index
    %c0_0 = arith.constant 0 : index
    %0 = vector.load %arg1[%c0, %c0_0] : memref<20x384xbf16, #tpu.memory_space<vmem>>, vector<20x384xbf16>
    %c0_1 = arith.constant 0 : index
    %c0_2 = arith.constant 0 : index
    %1 = vector.load %arg2[%c0_1, %c0_2] : memref<384x1536xbf16, #tpu.memory_space<vmem>>, vector<384x1536xbf16>
    %cst = arith.constant dense<0.000000e+00> : vector<20x1536xf32>
    %2 = tpu.matmul %0, %1, %cst {dimension_numbers = #tpu.dot_dimension_numbers<[1], [0], [0], [1], [0, 0, 1, 1], [], []>} : vector<20x384xbf16>, vector<384x1536xbf16>, vector<20x1536xf32> -> vector<20x1536xf32>
    %3 = vector.extract_strided_slice %2 {offsets = [0, 0], sizes = [20, 512], strides = [1, 1]} : vector<20x1536xf32> to vector<20x512xf32>
    %4 = vector.extract_strided_slice %2 {offsets = [0, 512], sizes = [20, 512], strides = [1, 1]} : vector<20x1536xf32> to vector<20x512xf32>
    %5 = arith.maximumf %3, %4 : vector<20x512xf32>
    %6 = vector.extract_strided_slice %2 {offsets = [0, 1024], sizes = [20, 512], strides = [1, 1]} : vector<20x1536xf32> to vector<20x512xf32>
    %7 = arith.maximumf %5, %6 : vector<20x512xf32>
    %c0_3 = arith.constant 0 : index
    %c0_4 = arith.constant 0 : index
    %8 = vector.load %arg3[%c0_3, %c0_4] : memref<1x512xf32, #tpu.memory_space<vmem>>, vector<1x512xf32>
    %9 = vector.broadcast %8 : vector<1x512xf32> to vector<20x512xf32>
    %10 = arith.addf %7, %9 : vector<20x512xf32>
    %cst_5 = arith.constant 0.000000e+00 : f32
    %11 = vector.broadcast %cst_5 : f32 to vector<20x512xf32>
    %12 = arith.cmpf ogt, %10, %11 : vector<20x512xf32>
    %cst_6 = arith.constant 0.000000e+00 : f32
    %13 = vector.broadcast %cst_6 : f32 to vector<20x512xf32>
    %14 = arith.minimumf %10, %13 : vector<20x512xf32>
    %15 = math.exp %14 : vector<20x512xf32>
    %cst_7 = arith.constant 1.000000e+00 : f32
    %16 = vector.broadcast %cst_7 : f32 to vector<20x512xf32>
    %17 = arith.subf %15, %16 : vector<20x512xf32>
    %18 = arith.select %12, %10, %17 : vector<20x512xi1>, vector<20x512xf32>
    %19 = vector.extract_strided_slice %0 {offsets = [0, 255], sizes = [20, 1], strides = [1, 1]} : vector<20x384xbf16> to vector<20x1xbf16>
    %20 = arith.extf %19 : vector<20x1xbf16> to vector<20x1xf32>
    %21 = vector.broadcast %20 : vector<20x1xf32> to vector<20x512xf32>
    %22 = arith.mulf %18, %21 : vector<20x512xf32>
    %23 = arith.truncf %22 : vector<20x512xf32> to vector<20x512xbf16>
    %24 = vector.extract_strided_slice %23 {offsets = [0, 0], sizes = [1, 512], strides = [1, 1]} : vector<20x512xbf16> to vector<1x512xbf16>
    %25 = vector.extract_strided_slice %23 {offsets = [0, 0], sizes = [19, 512], strides = [1, 1]} : vector<20x512xbf16> to vector<19x512xbf16>
    %26 = tpu.concatenate %24, %25 in 0 : vector<1x512xbf16>, vector<19x512xbf16> -> vector<20x512xbf16>
    %27 = vector.extract_strided_slice %23 {offsets = [1, 0], sizes = [19, 512], strides = [1, 1]} : vector<20x512xbf16> to vector<19x512xbf16>
    %28 = vector.extract_strided_slice %23 {offsets = [19, 0], sizes = [1, 512], strides = [1, 1]} : vector<20x512xbf16> to vector<1x512xbf16>
    %29 = tpu.concatenate %27, %28 in 0 : vector<19x512xbf16>, vector<1x512xbf16> -> vector<20x512xbf16>
    %c0_8 = arith.constant 0 : index
    %c0_9 = arith.constant 0 : index
    %c0_10 = arith.constant 0 : index
    %30 = vector.load %arg4[%c0_8, %c0_9, %c0_10] : memref<3x512x384xbf16, #tpu.memory_space<vmem>>, vector<1x512x384xbf16>
    %31 = vector.shape_cast %30 : vector<1x512x384xbf16> to vector<512x384xbf16>
    %cst_11 = arith.constant dense<0.000000e+00> : vector<20x384xf32>
    %32 = tpu.matmul %26, %31, %cst_11 {dimension_numbers = #tpu.dot_dimension_numbers<[1], [0], [0], [1], [0, 0, 1, 1], [], []>} : vector<20x512xbf16>, vector<512x384xbf16>, vector<20x384xf32> -> vector<20x384xf32>
    %c1 = arith.constant 1 : index
    %c0_12 = arith.constant 0 : index
    %c0_13 = arith.constant 0 : index
    %33 = vector.load %arg4[%c1, %c0_12, %c0_13] : memref<3x512x384xbf16, #tpu.memory_space<vmem>>, vector<1x512x384xbf16>
    %34 = vector.shape_cast %33 : vector<1x512x384xbf16> to vector<512x384xbf16>
    %cst_14 = arith.constant dense<0.000000e+00> : vector<20x384xf32>
    %35 = tpu.matmul %23, %34, %cst_14 {dimension_numbers = #tpu.dot_dimension_numbers<[1], [0], [0], [1], [0, 0, 1, 1], [], []>} : vector<20x512xbf16>, vector<512x384xbf16>, vector<20x384xf32> -> vector<20x384xf32>
    %36 = arith.addf %32, %35 : vector<20x384xf32>
    %c2 = arith.constant 2 : index
    %c0_15 = arith.constant 0 : index
    %c0_16 = arith.constant 0 : index
    %37 = vector.load %arg4[%c2, %c0_15, %c0_16] : memref<3x512x384xbf16, #tpu.memory_space<vmem>>, vector<1x512x384xbf16>
    %38 = vector.shape_cast %37 : vector<1x512x384xbf16> to vector<512x384xbf16>
    %cst_17 = arith.constant dense<0.000000e+00> : vector<20x384xf32>
    %39 = tpu.matmul %29, %38, %cst_17 {dimension_numbers = #tpu.dot_dimension_numbers<[1], [0], [0], [1], [0, 0, 1, 1], [], []>} : vector<20x512xbf16>, vector<512x384xbf16>, vector<20x384xf32> -> vector<20x384xf32>
    %40 = arith.addf %36, %39 : vector<20x384xf32>
    %41 = vector.extract_strided_slice %40 {offsets = [0, 0], sizes = [20, 128], strides = [1, 1]} : vector<20x384xf32> to vector<20x128xf32>
    %42 = vector.extract_strided_slice %40 {offsets = [0, 128], sizes = [20, 128], strides = [1, 1]} : vector<20x384xf32> to vector<20x128xf32>
    %43 = arith.maximumf %41, %42 : vector<20x128xf32>
    %44 = vector.extract_strided_slice %40 {offsets = [0, 256], sizes = [20, 128], strides = [1, 1]} : vector<20x384xf32> to vector<20x128xf32>
    %45 = arith.maximumf %43, %44 : vector<20x128xf32>
    %c0_18 = arith.constant 0 : index
    %c0_19 = arith.constant 0 : index
    %46 = vector.load %arg5[%c0_18, %c0_19] : memref<1x128xf32, #tpu.memory_space<vmem>>, vector<1x128xf32>
    %47 = vector.broadcast %46 : vector<1x128xf32> to vector<20x128xf32>
    %48 = arith.addf %45, %47 : vector<20x128xf32>
    %cst_20 = arith.constant 0.000000e+00 : f32
    %49 = vector.broadcast %cst_20 : f32 to vector<20x128xf32>
    %50 = arith.cmpf ogt, %48, %49 : vector<20x128xf32>
    %cst_21 = arith.constant 0.000000e+00 : f32
    %51 = vector.broadcast %cst_21 : f32 to vector<20x128xf32>
    %52 = arith.minimumf %48, %51 : vector<20x128xf32>
    %53 = math.exp %52 : vector<20x128xf32>
    %cst_22 = arith.constant 1.000000e+00 : f32
    %54 = vector.broadcast %cst_22 : f32 to vector<20x128xf32>
    %55 = arith.subf %53, %54 : vector<20x128xf32>
    %56 = arith.select %50, %48, %55 : vector<20x128xi1>, vector<20x128xf32>
    %57 = arith.truncf %56 : vector<20x128xf32> to vector<20x128xbf16>
    %c0_23 = arith.constant 0 : index
    %c0_24 = arith.constant 0 : index
    %58 = vector.load %arg6[%c0_23, %c0_24] : memref<128x128xbf16, #tpu.memory_space<vmem>>, vector<128x128xbf16>
    %cst_25 = arith.constant dense<0.000000e+00> : vector<20x128xf32>
    %59 = tpu.matmul %57, %58, %cst_25 {dimension_numbers = #tpu.dot_dimension_numbers<[1], [0], [0], [1], [0, 0, 1, 1], [], []>} : vector<20x128xbf16>, vector<128x128xbf16>, vector<20x128xf32> -> vector<20x128xf32>
    %c0_26 = arith.constant 0 : index
    %c0_27 = arith.constant 0 : index
    %60 = vector.load %arg7[%c0_26, %c0_27] : memref<1x128xf32, #tpu.memory_space<vmem>>, vector<1x128xf32>
    %61 = vector.broadcast %60 : vector<1x128xf32> to vector<20x128xf32>
    %62 = arith.addf %59, %61 : vector<20x128xf32>
    %cst_28 = arith.constant 0.000000e+00 : f32
    %63 = vector.broadcast %cst_28 : f32 to vector<20x128xf32>
    %64 = arith.cmpf ogt, %62, %63 : vector<20x128xf32>
    %cst_29 = arith.constant 0.000000e+00 : f32
    %65 = vector.broadcast %cst_29 : f32 to vector<20x128xf32>
    %66 = arith.minimumf %62, %65 : vector<20x128xf32>
    %67 = math.exp %66 : vector<20x128xf32>
    %cst_30 = arith.constant 1.000000e+00 : f32
    %68 = vector.broadcast %cst_30 : f32 to vector<20x128xf32>
    %69 = arith.subf %67, %68 : vector<20x128xf32>
    %70 = arith.select %64, %62, %69 : vector<20x128xi1>, vector<20x128xf32>
    %c0_31 = arith.constant 0 : index
    %c0_32 = arith.constant 0 : index
    %71 = vector.load %arg8[%c0_31, %c0_32] : memref<20x128xf32, #tpu.memory_space<vmem>>, vector<20x128xf32>
    tpu.vector_store %arg8[%c0_31, %c0_32], %70 {strides = array<i32>} : memref<20x128xf32, #tpu.memory_space<vmem>>, vector<20x128xf32>,
    return
  }
  func.func @transform_0(%arg0: i32) -> (i32, i32) {
    %c0_i32 = arith.constant 0 : i32
    %c0_i32_0 = arith.constant 0 : i32
    return %arg0, %c0_i32 : i32, i32
  }
  func.func @transform_1(%arg0: i32) -> (i32, i32) {
    %c0_i32 = arith.constant 0 : i32
    %c0_i32_0 = arith.constant 0 : i32
    %c0_i32_1 = arith.constant 0 : i32
    return %c0_i32, %c0_i32_0 : i32, i32
  }
  func.func @transform_2(%arg0: i32) -> (i32, i32) {
    %c0_i32 = arith.constant 0 : i32
    %c0_i32_0 = arith.constant 0 : i32
    %c0_i32_1 = arith.constant 0 : i32
    return %c0_i32, %c0_i32_0 : i32, i32
  }
  func.func @transform_3(%arg0: i32) -> (i32, i32, i32) {
    %c0_i32 = arith.constant 0 : i32
    %c0_i32_0 = arith.constant 0 : i32
    %c0_i32_1 = arith.constant 0 : i32
    %c0_i32_2 = arith.constant 0 : i32
    return %c0_i32, %c0_i32_0, %c0_i32_1 : i32, i32, i32
  }
  func.func @transform_4(%arg0: i32) -> (i32, i32) {
    %c0_i32 = arith.constant 0 : i32
    %c0_i32_0 = arith.constant 0 : i32
    %c0_i32_1 = arith.constant 0 : i32
    return %c0_i32, %c0_i32_0 : i32, i32
  }
  func.func @transform_5(%arg0: i32) -> (i32, i32) {
    %c0_i32 = arith.constant 0 : i32
    %c0_i32_0 = arith.constant 0 : i32
    %c0_i32_1 = arith.constant 0 : i32
    return %c0_i32, %c0_i32_0 : i32, i32
  }
  func.func @transform_6(%arg0: i32) -> (i32, i32) {
    %c0_i32 = arith.constant 0 : i32
    %c0_i32_0 = arith.constant 0 : i32
    %c0_i32_1 = arith.constant 0 : i32
    return %c0_i32, %c0_i32_0 : i32, i32
  }
  func.func @transform_7(%arg0: i32) -> (i32, i32) {
    %c0_i32 = arith.constant 0 : i32
    %c0_i32_0 = arith.constant 0 : i32
    return %arg0, %c0_i32 : i32, i32
  }
}

</mosaic_0001>

<bundles_post_ra>
// kernel: tpu_custom_call.1
= control target key start
LH: loop header
LB: loop body
LE: loop exit
PB: predicated region body
PF: predicated region fallthrough
CT: control target
= control target key end

     0   :  { %12 = vsyncpa [#allocation3], 0  ;;  %s7973_s0 = inlined_call_operand.hbm [shape: bf16[20,384], index: 0, kind: input, shape index: {}]   ;;  %s7974_s1 = inlined_call_operand.hbm [shape: bf16[384,1536], index: 1, kind: input, shape index: {}]   ;;  %s7975_s2 = inlined_call_operand.hbm [shape: f32[1,512], index: 2, kind: input, shape index: {}]   ;;  %s7976_s3 = inlined_call_operand.hbm [shape: bf16[3,512,384], index: 3, kind: input, shape index: {}]   ;;  %s7977_s4 = inlined_call_operand.hbm [shape: f32[1,128], index: 4, kind: input, shape index: {}]   ;;  %s7978_s5 = inlined_call_operand.hbm [shape: bf16[128,128], index: 5, kind: input, shape index: {}]   ;;  %s7979_s6 = inlined_call_operand.hbm [shape: f32[1,128], index: 6, kind: input, shape index: {}]   ;;  %s7980_s7 = inlined_call_operand.hbm [shape: f32[20,128], index: 7, kind: output, shape index: {}]  }
   0x1   :  { %13 = vsyncpa [#allocation6], 0 }
   0x2   :  { %14 = vsyncpa [#allocation9], 0 }
   0x3   :  { %15 = vsyncpa [#allocation12], 0 }
   0x4   :  { %16 = vsyncpa [#allocation4], 0  ;;  %s7477_s24 = smov [#allocation5]   ;;  %s7291_s28 = scalar_lea.hbm %s7974_s1, 36864 }
   0x5   :  { %s34_s25 = sshll.u32 %s7477_s24, 4  ;;  %p7292_p0 = scmp.ne.s32.totalorder %s7974_s1, %s7291_s28  ;;  %s35_s25 = int_to_ptr.vmem [resolvable:$true] %s34_s25 }
   0x6   :  { %p7295_p1 = scmp.lt.u32.totalorder %s7291_s28, %s7974_s1 }
   0x8   :  { %p7297_p2 = pnand %p7295_p1, %p7292_p0 }
   0xa   :  { %7300 = shalt.err (!%p7297_p2)
}
   0xb   :  { %s7301_s10 = scalar_lea.vmem %s35_s25, 36864  ;;  %p7306_p4 = scmp.lt.s32.totalorder %s35_s25, %s35_s25 }
   0xc   :  { %p7302_p3 = scmp.ne.s32.totalorder %s35_s25, %s7301_s10  ;;  %p7307_p5 = scmp.lt.s32.totalorder %s7301_s10, %s7301_s10 }
   0xe   :  { %p7308_p6 = por %p7307_p5, %p7306_p4 }
  0x10   :  { %p7309_p7 = pnand %p7308_p6, %p7302_p3 }
  0x12   :  { %7312 = shalt.err (!%p7309_p7)
}
  0x13   :  { %s7478_s11 = smov 768   ;;  %s7479_s12 = smov 48  }
  0x14   :  { %40 = dma.hbm_to_vmem [thread:$0]  %s7974_s1, 36864, %s35_s25, [#allocation6], %s7478_s11, %s7478_s11, %s7479_s12  }
  0x15   :  { %s7480_s15 = smov [#allocation8]   ;;  %s7481_s17 = smov [#allocation11]  }
  0x16   :  { %s56_s16 = sshll.u32 %s7480_s15, 4  ;;  %s78_s18 = sshll.u32 %s7481_s17, 4  ;;  %s57_s16 = int_to_ptr.vmem [resolvable:$true] %s56_s16  ;;  %s79_s18 = int_to_ptr.vmem [resolvable:$true] %s78_s18 }
  0x17   :  { %s7313_s21 = scalar_lea.hbm %s7976_s3, 36864 }
  0x18   :  { %p7314_p8 = scmp.ne.s32.totalorder %s7976_s3, %s7313_s21  ;;  %p7317_p9 = scmp.lt.u32.totalorder %s7313_s21, %s7976_s3 }
  0x1a   :  { %p7319_p10 = pnand %p7317_p9, %p7314_p8 }
  0x1c   :  { %7322 = shalt.err (!%p7319_p10)
}
  0x1d   :  { %s7323_s1 = scalar_lea.vmem %s57_s16, 36864  ;;  %p7328_p12 = scmp.lt.s32.totalorder %s57_s16, %s57_s16 }
  0x1e   :  { %p7324_p11 = scmp.ne.s32.totalorder %s57_s16, %s7323_s1  ;;  %p7329_p13 = scmp.lt.s32.totalorder %s7323_s1, %s7323_s1 }
  0x20   :  { %p7330_p0 = por %p7329_p13, %p7328_p12 }
  0x22   :  { %p7331_p1 = pnand %p7330_p0, %p7324_p11 }
  0x24   :  { %7334 = shalt.err (!%p7331_p1)
}
  0x25   :  { %s7482_s25 = smov 192   ;;  %s7483_s27 = smov 12  }
  0x26   :  { %62 = dma.hbm_to_vmem [thread:$0]  %s7976_s3, 36864, %s57_s16, [#allocation9], %s7482_s25, %s7482_s25, %s7483_s27  }
  0x27   :  { %s7335_s9 = scalar_lea.hbm %s7978_s5, 1024 }
  0x28   :  { %p7336_p2 = scmp.ne.s32.totalorder %s7978_s5, %s7335_s9  ;;  %p7339_p3 = scmp.lt.u32.totalorder %s7335_s9, %s7978_s5 }
  0x2a   :  { %p7341_p4 = pnand %p7339_p3, %p7336_p2 }
  0x2c   :  { %7344 = shalt.err (!%p7341_p4)
}
  0x2d   :  { %s7345_s14 = scalar_lea.vmem %s79_s18, 1024  ;;  %p7350_p6 = scmp.lt.s32.totalorder %s79_s18, %s79_s18 }
  0x2e   :  { %p7346_p5 = scmp.ne.s32.totalorder %s79_s18, %s7345_s14  ;;  %p7351_p7 = scmp.lt.s32.totalorder %s7345_s14, %s7345_s14 }
  0x30   :  { %p7352_p8 = por %p7351_p7, %p7350_p6 }
  0x32   :  { %p7353_p9 = pnand %p7352_p8, %p7346_p5 }
  0x34   :  { %7356 = shalt.err (!%p7353_p9)
}
  0x35   :  { %s7484_s3 = smov 64   ;;  %s7485_s15 = smov 4  }
  0x36   :  { %84 = dma.hbm_to_vmem [thread:$0]  %s7978_s5, 1024, %s79_s18, [#allocation12], %s7484_s3, %s7484_s3, %s7485_s15  }
  0x37   :  { %s7486_s19 = smov [#allocation2]   ;;  %s7487_s21 = smov [#allocation7]  }
  0x38   :  { %s22_s20 = sshll.u32 %s7486_s19, 4  ;;  %s47_s22 = sshll.u32 %s7487_s21, 4  ;;  %s23_s20 = int_to_ptr.vmem [resolvable:$true] %s22_s20  ;;  %s48_s22 = int_to_ptr.vmem [resolvable:$true] %s47_s22 }
  0x39   :  { %s7357_s26 = scalar_lea.hbm %s7973_s0, 576 }
  0x3a   :  { %p7358_p10 = scmp.ne.s32.totalorder %s7973_s0, %s7357_s26  ;;  %p7361_p11 = scmp.lt.u32.totalorder %s7357_s26, %s7973_s0 }
  0x3c   :  { %p7363_p12 = pnand %p7361_p11, %p7358_p10 }
  0x3e   :  { %7366 = shalt.err (!%p7363_p12)
}
  0x3f   :  { %s7367_s5 = scalar_lea.vmem %s23_s20, 576  ;;  %p7372_p0 = scmp.lt.s32.totalorder %s23_s20, %s23_s20 }
  0x40   :  { %p7368_p13 = scmp.ne.s32.totalorder %s23_s20, %s7367_s5  ;;  %p7373_p1 = scmp.lt.s32.totalorder %s7367_s5, %s7367_s5 }
  0x42   :  { %p7374_p2 = por %p7373_p1, %p7372_p0 }
  0x44   :  { %p7375_p3 = pnand %p7374_p2, %p7368_p13 }
  0x46   :  { %7378 = shalt.err (!%p7375_p3)
}
  0x47   :  { %28 = dma.hbm_to_vmem [thread:$0]  %s7973_s0, 576, %s23_s20, [#allocation3], %s7482_s25, %s7482_s25, %s7483_s27  }
  0x48   :  { %s7379_s11 = scalar_lea.hbm %s7975_s2, 64 }
  0x49   :  { %p7380_p4 = scmp.ne.s32.totalorder %s7975_s2, %s7379_s11  ;;  %p7383_p5 = scmp.lt.u32.totalorder %s7379_s11, %s7975_s2 }
  0x4b   :  { %p7385_p6 = pnand %p7383_p5, %p7380_p4 }
  0x4d   :  { %7388 = shalt.err (!%p7385_p6)
}
  0x4e   :  { %s7389_s15 = scalar_lea.vmem %s48_s22, 64  ;;  %p7394_p8 = scmp.lt.s32.totalorder %s48_s22, %s48_s22 }
  0x4f   :  { %p7390_p7 = scmp.ne.s32.totalorder %s48_s22, %s7389_s15  ;;  %p7395_p9 = scmp.lt.s32.totalorder %s7389_s15, %s7389_s15 }
  0x51   :  { %p7396_p10 = por %p7395_p9, %p7394_p8 }
  0x53   :  { %p7397_p11 = pnand %p7396_p10, %p7390_p7 }
  0x55   :  { %7400 = shalt.err (!%p7397_p11)
}
  0x56   :  { %50 = dma.hbm_to_vmem [thread:$0]  %s7975_s2, 64, %s48_s22, [#allocation6]  }
  0x57   :  { %s7488_s27 = smov [#allocation10]   ;;  %s7489_s17 = smov [#allocation13]  }
  0x58   :  { %s69_s16 = sshll.u32 %s7488_s27, 4  ;;  %s91_s19 = sshll.u32 %s7489_s17, 4  ;;  %s70_s16 = int_to_ptr.vmem [resolvable:$true] %s69_s16  ;;  %s92_s19 = int_to_ptr.vmem [resolvable:$true] %s91_s19 }
  0x59   :  { %s7401_s23 = scalar_lea.hbm %s7977_s4, 16 }
  0x5a   :  { %p7402_p12 = scmp.ne.s32.totalorder %s7977_s4, %s7401_s23  ;;  %p7405_p13 = scmp.lt.u32.totalorder %s7401_s23, %s7977_s4 }
  0x5c   :  { %p7407_p0 = pnand %p7405_p13, %p7402_p12 }
  0x5e   :  { %7410 = shalt.err (!%p7407_p0)
}
  0x5f   :  { %s7411_s2 = scalar_lea.vmem %s70_s16, 16  ;;  %s7415_s22 = scalar_lea.vmem %s70_s16, 32 }
  0x60   :  { %p7412_p1 = scmp.ne.s32.totalorder %s70_s16, %s7411_s2  ;;  %p7416_p2 = scmp.lt.s32.totalorder %s70_s16, %s70_s16 }
  0x61   :  { %p7417_p3 = scmp.lt.s32.totalorder %s7415_s22, %s7411_s2 }
  0x63   :  { %p7418_p4 = por %p7417_p3, %p7416_p2 }
  0x65   :  { %p7419_p5 = pnand %p7418_p4, %p7412_p1 }
  0x67   :  { %7422 = shalt.err (!%p7419_p5)
}
  0x68   :  { %72 = dma.hbm_to_vmem [thread:$0]  %s7977_s4, 16, %s70_s16, [#allocation9]  }
  0x69   :  { %s7423_s8 = scalar_lea.hbm %s7979_s6, 16 }
  0x6a   :  { %p7424_p6 = scmp.ne.s32.totalorder %s7979_s6, %s7423_s8  ;;  %p7427_p7 = scmp.lt.u32.totalorder %s7423_s8, %s7979_s6 }
  0x6c   :  { %p7429_p8 = pnand %p7427_p7, %p7424_p6 }
  0x6e   :  { %7432 = shalt.err (!%p7429_p8)
}
  0x6f   :  { %s7433_s13 = scalar_lea.vmem %s92_s19, 16  ;;  %s7437_s14 = scalar_lea.vmem %s92_s19, 32 }
  0x70   :  { %p7434_p9 = scmp.ne.s32.totalorder %s92_s19, %s7433_s13  ;;  %p7438_p10 = scmp.lt.s32.totalorder %s92_s19, %s92_s19 }
  0x71   :  { %p7439_p11 = scmp.lt.s32.totalorder %s7437_s14, %s7433_s13 }
  0x73   :  { %p7440_p12 = por %p7439_p11, %p7438_p10 }
  0x75   :  { %p7441_p13 = pnand %p7440_p12, %p7434_p9 }
  0x77   :  { %7444 = shalt.err (!%p7441_p13)
}
  0x78   :  { %94 = dma.hbm_to_vmem [thread:$0]  %s7979_s6, 16, %s92_s19, [#allocation12]  }
  0x79   :  { %7467 = dma.done.wait [#allocation3], 576  }
  0x7a   :  { %7468 = vsyncadd [#allocation3], 4294966720 }
  0x7b   :  { %7469 = dma.done.wait [#allocation6], 36928  }
  0x7c   :  { %7470 = vsyncadd [#allocation6], 4294930368 }
  0x7d   :  { %7471 = dma.done.wait [#allocation9], 36880  }
  0x7e   :  { %7472 = vsyncadd [#allocation9], 4294930416 }
  0x7f   :  { %7473 = dma.done.wait [#allocation12], 1040  }
  0x80   :  { %7474 = vsyncadd [#allocation12], 4294966256  ;;  %v7490_v0 = vmov 0   ;;  %v6423_v1 = vld [vmem:[#allocation5 + $0x4] ss:$48 sps:$4 sm:$0xff]   ;;  %v117_v47 = vld [vmem:[#allocation2] sm:$0xff] }
  0x81   :  { %6416 = vset.pattern.permute.xlu1 %v7490_v0  ;;  %6422 = vset.pattern.permute.xlu0 %v7490_v0  ;;  %v6425_v2 = vld [vmem:[#allocation5 + $0x14] ss:$48 sps:$4 sm:$0xff]   ;;  %v6427_v3 = vld [vmem:[#allocation5] ss:$48 sps:$4 sm:$0xff]   ;;  %v119_v48 = vld [vmem:[#allocation2 + $0xc] sm:$0xff]  ;;  %s7491_s6 = smov 1  }
  0x82   :  { %1878 = vmatprep.subr.bf16.mxu1 %v6423_v1  ;;  %v6428_v4 = vld [vmem:[#allocation5 + $0x10] ss:$48 sps:$4 sm:$0xff]   ;;  %2082 = vmatprep.subr.bf16.mxu0 %v6425_v2  ;;  %v6429_v5 = vld [vmem:[#allocation5 + $0x64] ss:$48 sps:$4 sm:$0xff]   ;;  %v7627_v51 = vcombine.high %v117_v47, %v119_v48  ;;  %vm2774_vm6 = vcmask 1041408   ;;  %s7492_s15 = smov [#allocation14]  }
  0x83   :  { %1879 = vmatpush1.bf16.msra.mxu1 %v6427_v3  ;;  %2083 = vmatpush1.bf16.msra.mxu0 %v6428_v4  ;;  %v6431_v6 = vld [vmem:[#allocation5 + $0x74] ss:$48 sps:$4 sm:$0xff]   ;;  %v6433_v7 = vld [vmem:[#allocation5 + $0x60] ss:$48 sps:$4 sm:$0xff]   ;;  %vm2775_vm7 = vsmask.f32 1280 }
  0x84   :  { %1880 = vmatprep.subr.bf16.mxu1 %v6429_v5  ;;  %v6434_v8 = vld [vmem:[#allocation5 + $0x70] ss:$48 sps:$4 sm:$0xff]   ;;  %2084 = vmatprep.subr.bf16.mxu0 %v6431_v6  ;;  %v6435_v9 = vld [vmem:[#allocation5 + $0xc4] ss:$48 sps:$4 sm:$0xff]   ;;  %vm2745_vm8 = vsmask.f32 7424  ;;  %vm7798_vm10 = vmand %vm2774_vm6, %vm2775_vm7 }
  0x85   :  { %v6437_v10 = vld [vmem:[#allocation5 + $0xd4] ss:$48 sps:$4 sm:$0xff]   ;;  %v6439_v11 = vld [vmem:[#allocation5 + $0xc0] ss:$48 sps:$4 sm:$0xff]   ;;  %1910 = vmatprep.mubr.bf16.mxu1 %v7627_v51  ;;  %2114 = vmatprep.mubr.bf16.mxu0 %v7627_v51  ;;  %vm2670_vm9 = vsmask.f32 256 }
  0x86   :  { %v6440_v12 = vld [vmem:[#allocation5 + $0xd0] ss:$48 sps:$4 sm:$0xff]   ;;  %v6441_v13 = vld [vmem:[#allocation5 + $0x124] ss:$48 sps:$4 sm:$0xff]   ;;  %2620 = vrot.lane.b32.xlu0 %v117_v47, %s7491_s6  ;;  %s5487_s0 = sshll.u32 %s7492_s15, 4  ;;  %s5488_s0 = int_to_ptr.vmem [resolvable:$true] %s5487_s0 }
  0x87   :  { %1881 = vmatpush1.bf16.msra.mxu1 %v6433_v7  ;;  %2085 = vmatpush1.bf16.msra.mxu0 %v6434_v8  ;;  %v6443_v14 = vld [vmem:[#allocation5 + $0x134] ss:$48 sps:$4 sm:$0xff]   ;;  %v6445_v15 = vld [vmem:[#allocation5 + $0x120] ss:$48 sps:$4 sm:$0xff]   ;;  %s7445_s25 = scalar_lea.vmem %s5488_s0, 384  ;;  %p7450_p1 = scmp.lt.s32.totalorder %s5488_s0, %s5488_s0 }
  0x88   :  { %1882 = vmatprep.subr.bf16.mxu1 %v6435_v9  ;;  %2086 = vmatprep.subr.bf16.mxu0 %v6437_v10  ;;  %v6446_v16 = vld [vmem:[#allocation5 + $0x130] ss:$48 sps:$4 sm:$0xff]   ;;  %v6447_v17 = vld [vmem:[#allocation5 + $0x184] ss:$48 sps:$4 sm:$0xff]   ;;  %v7634_v9 = vcombine.low %v117_v47, %v119_v48  ;;  %p7446_p0 = scmp.ne.s32.totalorder %s5488_s0, %s7445_s25  ;;  %p7451_p2 = scmp.lt.s32.totalorder %s7445_s25, %s7445_s25 }
  0x89   :  { %v6449_v18 = vld [vmem:[#allocation5 + $0x194] ss:$48 sps:$4 sm:$0xff]   ;;  %v6451_v19 = vld [vmem:[#allocation5 + $0x180] ss:$48 sps:$4 sm:$0xff]  }
  0x8a   :  { %v6452_v20 = vld [vmem:[#allocation5 + $0x190] ss:$48 sps:$4 sm:$0xff]   ;;  %v6453_v21 = vld [vmem:[#allocation5 + $0x1e4] ss:$48 sps:$4 sm:$0xff]   ;;  %2622 = vrot.lane.b32.xlu0 %v119_v48, %s7491_s6  ;;  %v6578_v48 = vld [vmem:[#allocation5 + $0x68] ss:$48 sps:$4 sm:$0xff]   ;;  %p7452_p3 = por %p7451_p2, %p7450_p1 }
  0x8b   :  { %1883 = vmatpush1.bf16.msra.mxu1 %v6439_v11  ;;  %2087 = vmatpush1.bf16.msra.mxu0 %v6440_v12  ;;  %v6455_v22 = vld [vmem:[#allocation5 + $0x1f4] ss:$48 sps:$4 sm:$0xff]   ;;  %v6457_v23 = vld [vmem:[#allocation5 + $0x1e0] ss:$48 sps:$4 sm:$0xff]  }
  0x8c   :  { %1884 = vmatprep.subr.bf16.mxu1 %v6441_v13  ;;  %2088 = vmatprep.subr.bf16.mxu0 %v6443_v14  ;;  %v6458_v24 = vld [vmem:[#allocation5 + $0x1f0] ss:$48 sps:$4 sm:$0xff]   ;;  %v6459_v25 = vld [vmem:[#allocation5 + $0x244] ss:$48 sps:$4 sm:$0xff]   ;;  %p7453_p4 = pnand %p7452_p3, %p7446_p0 }
  0x8d   :  { %v6461_v26 = vld [vmem:[#allocation5 + $0x254] ss:$48 sps:$4 sm:$0xff]   ;;  %v6463_v27 = vld [vmem:[#allocation5 + $0x240] ss:$48 sps:$4 sm:$0xff]  }
  0x8e   :  { %v6464_v28 = vld [vmem:[#allocation5 + $0x250] ss:$48 sps:$4 sm:$0xff]   ;;  %v6465_v29 = vld [vmem:[#allocation5 + $0x2a4] ss:$48 sps:$4 sm:$0xff]  }
  0x8f   :  { %1885 = vmatpush1.bf16.msra.mxu1 %v6445_v15  ;;  %2089 = vmatpush1.bf16.msra.mxu0 %v6446_v16  ;;  %v6467_v30 = vld [vmem:[#allocation5 + $0x2b4] ss:$48 sps:$4 sm:$0xff]   ;;  %v6469_v31 = vld [vmem:[#allocation5 + $0x2a0] ss:$48 sps:$4 sm:$0xff]  }
  0x90   :  { %1886 = vmatprep.subr.bf16.mxu1 %v6447_v17  ;;  %2090 = vmatprep.subr.bf16.mxu0 %v6449_v18  ;;  %v6470_v32 = vld [vmem:[#allocation5 + $0x2b0] ss:$48 sps:$4 sm:$0xff]   ;;  %v6471_v33 = vld [vmem:[#allocation5 + $0x304] ss:$48 sps:$4 sm:$0xff]  }
  0x91   :  { %v6473_v34 = vld [vmem:[#allocation5 + $0x314] ss:$48 sps:$4 sm:$0xff]   ;;  %v6475_v35 = vld [vmem:[#allocation5 + $0x300] ss:$48 sps:$4 sm:$0xff]  }
  0x92   :  { %v6476_v36 = vld [vmem:[#allocation5 + $0x310] ss:$48 sps:$4 sm:$0xff]   ;;  %v6477_v37 = vld [vmem:[#allocation5 + $0x364] ss:$48 sps:$4 sm:$0xff]  }
  0x93   :  { %1887 = vmatpush1.bf16.msra.mxu1 %v6451_v19  ;;  %2091 = vmatpush1.bf16.msra.mxu0 %v6452_v20  ;;  %v6479_v38 = vld [vmem:[#allocation5 + $0x374] ss:$48 sps:$4 sm:$0xff]   ;;  %v6481_v39 = vld [vmem:[#allocation5 + $0x360] ss:$48 sps:$4 sm:$0xff]  }
  0x94   :  { %1888 = vmatprep.subr.bf16.mxu1 %v6453_v21  ;;  %2092 = vmatprep.subr.bf16.mxu0 %v6455_v22  ;;  %v6482_v40 = vld [vmem:[#allocation5 + $0x370] ss:$48 sps:$4 sm:$0xff]   ;;  %v6483_v41 = vld [vmem:[#allocation5 + $0x3c4] ss:$48 sps:$4 sm:$0xff]  }
  0x95   :  { %v6485_v42 = vld [vmem:[#allocation5 + $0x3d4] ss:$48 sps:$4 sm:$0xff]   ;;  %v6487_v43 = vld [vmem:[#allocation5 + $0x3c0] ss:$48 sps:$4 sm:$0xff]  }
  0x96   :  { %v6488_v44 = vld [vmem:[#allocation5 + $0x3d0] ss:$48 sps:$4 sm:$0xff]   ;;  %v6489_v45 = vld [vmem:[#allocation5 + $0x424] ss:$48 sps:$4 sm:$0xff]  }
  0x97   :  { %1889 = vmatpush1.bf16.msra.mxu1 %v6457_v23  ;;  %2093 = vmatpush1.bf16.msra.mxu0 %v6458_v24  ;;  %v6491_v46 = vld [vmem:[#allocation5 + $0x434] ss:$48 sps:$4 sm:$0xff]   ;;  %v6493_v49 = vld [vmem:[#allocation5 + $0x420] ss:$48 sps:$4 sm:$0xff]  }
  0x98   :  { %1890 = vmatprep.subr.bf16.mxu1 %v6459_v25  ;;  %2094 = vmatprep.subr.bf16.mxu0 %v6461_v26  ;;  %v6494_v50 = vld [vmem:[#allocation5 + $0x430] ss:$48 sps:$4 sm:$0xff]   ;;  %v6495_v52 = vld [vmem:[#allocation5 + $0x484] ss:$48 sps:$4 sm:$0xff]  }
  0x99   :  { %v6497_v53 = vld [vmem:[#allocation5 + $0x494] ss:$48 sps:$4 sm:$0xff]   ;;  %v6499_v54 = vld [vmem:[#allocation5 + $0x480] ss:$48 sps:$4 sm:$0xff]  }
  0x9a   :  { %v6500_v55 = vld [vmem:[#allocation5 + $0x490] ss:$48 sps:$4 sm:$0xff]   ;;  %v6501_v56 = vld [vmem:[#allocation5 + $0x4e4] ss:$48 sps:$4 sm:$0xff]  }
  0x9b   :  { %1891 = vmatpush1.bf16.msra.mxu1 %v6463_v27  ;;  %2095 = vmatpush1.bf16.msra.mxu0 %v6464_v28  ;;  %v6503_v57 = vld [vmem:[#allocation5 + $0x4f4] ss:$48 sps:$4 sm:$0xff]   ;;  %v6505_v58 = vld [vmem:[#allocation5 + $0x4e0] ss:$48 sps:$4 sm:$0xff]  }
  0x9c   :  { %1892 = vmatprep.subr.bf16.mxu1 %v6465_v29  ;;  %2096 = vmatprep.subr.bf16.mxu0 %v6467_v30  ;;  %v6506_v59 = vld [vmem:[#allocation5 + $0x4f0] ss:$48 sps:$4 sm:$0xff]   ;;  %v6507_v60 = vld [vmem:[#allocation5 + $0x544] ss:$48 sps:$4 sm:$0xff]  }
  0x9d   :  { %v6509_v61 = vld [vmem:[#allocation5 + $0x554] ss:$48 sps:$4 sm:$0xff]   ;;  %v6511_v62 = vld [vmem:[#allocation5 + $0x540] ss:$48 sps:$4 sm:$0xff]  }
  0x9e   :  { %v6512_v63 = vld [vmem:[#allocation5 + $0x550] ss:$48 sps:$4 sm:$0xff]   ;;  %v6513_v1 = vld [vmem:[#allocation5 + $0x5a4] ss:$48 sps:$4 sm:$0xff]  }
  0x9f   :  { %1893 = vmatpush1.bf16.msra.mxu1 %v6469_v31  ;;  %2097 = vmatpush1.bf16.msra.mxu0 %v6470_v32  ;;  %v6515_v2 = vld [vmem:[#allocation5 + $0x5b4] ss:$48 sps:$4 sm:$0xff]   ;;  %v6517_v3 = vld [vmem:[#allocation5 + $0x5a0] ss:$48 sps:$4 sm:$0xff]  }
  0xa0   :  { %1894 = vmatprep.subr.bf16.mxu1 %v6471_v33  ;;  %2098 = vmatprep.subr.bf16.mxu0 %v6473_v34  ;;  %v6518_v4 = vld [vmem:[#allocation5 + $0x5b0] ss:$48 sps:$4 sm:$0xff]   ;;  %v6522_v5 = vld [vmem:[#allocation5 + $0x604] ss:$48 sps:$4 sm:$0xff]  }
  0xa1   :  { %v6525_v6 = vld [vmem:[#allocation5 + $0x614] ss:$48 sps:$4 sm:$0xff]   ;;  %v6520_v8 = vld [vmem:[#allocation5 + $0x600] ss:$48 sps:$4 sm:$0xff]  }
  0xa2   :  { %v121_v7 = vld [vmem:[#allocation2 + $0x18] sm:$0x33]  ;;  %v6523_v10 = vld [vmem:[#allocation5 + $0x610] ss:$48 sps:$4 sm:$0xff]  }
  0xa3   :  { %1895 = vmatpush1.bf16.msra.mxu1 %v6475_v35  ;;  %2099 = vmatpush1.bf16.msra.mxu0 %v6476_v36  ;;  %v6529_v11 = vld [vmem:[#allocation5 + $0x664] ss:$48 sps:$4 sm:$0xff]   ;;  %v7636_v13 = vcombine.high %v121_v7, %v121_v7  ;;  %v6527_v14 = vld [vmem:[#allocation5 + $0x660] ss:$48 sps:$4 sm:$0xff]   ;;  %v7642_v19 = vcombine.low %v121_v7, %v121_v7 }
  0xa4   :  { %1896 = vmatprep.subr.bf16.mxu1 %v6477_v37  ;;  %2100 = vmatprep.subr.bf16.mxu0 %v6479_v38  ;;  %v6532_v12 = vld [vmem:[#allocation5 + $0x674] ss:$48 sps:$4 sm:$0xff]   ;;  %v6530_v15 = vld [vmem:[#allocation5 + $0x670] ss:$48 sps:$4 sm:$0xff]  }
  0xa5   :  { %2624 = vrot.lane.b32.xlu1 %v121_v7, %s7491_s6  ;;  %v6535_v16 = vld [vmem:[#allocation5 + $0x6c4] ss:$48 sps:$4 sm:$0xff]   ;;  %v6533_v18 = vld [vmem:[#allocation5 + $0x6c0] ss:$48 sps:$4 sm:$0xff]   ;;  %v6609_v7 = vld [vmem:[#allocation5 + $0x248] ss:$48 sps:$4 sm:$0xff]  }
  0xa6   :  { %v6538_v17 = vld [vmem:[#allocation5 + $0x6d4] ss:$48 sps:$4 sm:$0xff]   ;;  %v6536_v20 = vld [vmem:[#allocation5 + $0x6d0] ss:$48 sps:$4 sm:$0xff]  }
  0xa7   :  { %1897 = vmatpush1.bf16.msra.mxu1 %v6481_v39  ;;  %2101 = vmatpush1.bf16.msra.mxu0 %v6482_v40  ;;  %v6541_v21 = vld [vmem:[#allocation5 + $0x724] ss:$48 sps:$4 sm:$0xff]   ;;  %v6539_v23 = vld [vmem:[#allocation5 + $0x720] ss:$48 sps:$4 sm:$0xff]  }
  0xa8   :  { %1898 = vmatprep.subr.bf16.mxu1 %v6483_v41  ;;  %2102 = vmatprep.subr.bf16.mxu0 %v6485_v42  ;;  %v6544_v22 = vld [vmem:[#allocation5 + $0x734] ss:$48 sps:$4 sm:$0xff]   ;;  %v6542_v24 = vld [vmem:[#allocation5 + $0x730] ss:$48 sps:$4 sm:$0xff]   ;;  %v6574_v41 = vld [vmem:[#allocation5 + $0xc] ss:$48 sps:$4 sm:$0xff]  }
  0xa9   :  { %v6547_v25 = vld [vmem:[#allocation5 + $0x784] ss:$48 sps:$4 sm:$0xff]   ;;  %v6545_v27 = vld [vmem:[#allocation5 + $0x780] ss:$48 sps:$4 sm:$0xff]  }
  0xaa   :  { %v6550_v26 = vld [vmem:[#allocation5 + $0x794] ss:$48 sps:$4 sm:$0xff]   ;;  %v6548_v28 = vld [vmem:[#allocation5 + $0x790] ss:$48 sps:$4 sm:$0xff]  }
  0xab   :  { %1899 = vmatpush1.bf16.msra.mxu1 %v6487_v43  ;;  %2103 = vmatpush1.bf16.msra.mxu0 %v6488_v44  ;;  %v6553_v29 = vld [vmem:[#allocation5 + $0x7e4] ss:$48 sps:$4 sm:$0xff]   ;;  %v6551_v31 = vld [vmem:[#allocation5 + $0x7e0] ss:$48 sps:$4 sm:$0xff]   ;;  %v6572_v44 = vld [vmem:[#allocation5 + $0x8] ss:$48 sps:$4 sm:$0xff]  }
  0xac   :  { %1900 = vmatprep.subr.bf16.mxu1 %v6489_v45  ;;  %2104 = vmatprep.subr.bf16.mxu0 %v6491_v46  ;;  %v6556_v30 = vld [vmem:[#allocation5 + $0x7f4] ss:$48 sps:$4 sm:$0xff]   ;;  %v6554_v32 = vld [vmem:[#allocation5 + $0x7f0] ss:$48 sps:$4 sm:$0xff]   ;;  %v6580_v46 = vld [vmem:[#allocation5 + $0x6c] ss:$48 sps:$4 sm:$0xff]  }
  0xad   :  { %v6561_v33 = vld [vmem:[#allocation5 + $0x844] ss:$48 sps:$4 sm:$0xff]   ;;  %v6559_v35 = vld [vmem:[#allocation5 + $0x840] ss:$48 sps:$4 sm:$0xff]  }
  0xae   :  { %v6564_v34 = vld [vmem:[#allocation5 + $0x854] ss:$48 sps:$4 sm:$0xff]   ;;  %v6562_v36 = vld [vmem:[#allocation5 + $0x850] ss:$48 sps:$4 sm:$0xff]  }
  0xaf   :  { %1901 = vmatpush1.bf16.msra.mxu1 %v6493_v49  ;;  %2105 = vmatpush1.bf16.msra.mxu0 %v6494_v50  ;;  %v6567_v37 = vld [vmem:[#allocation5 + $0x8a4] ss:$48 sps:$4 sm:$0xff]   ;;  %v6565_v39 = vld [vmem:[#allocation5 + $0x8a0] ss:$48 sps:$4 sm:$0xff]   ;;  %v6587_v50 = vld [vmem:[#allocation5 + $0xcc] ss:$48 sps:$4 sm:$0xff]  }
  0xb0   :  { %1902 = vmatprep.subr.bf16.mxu1 %v6495_v52  ;;  %2106 = vmatprep.subr.bf16.mxu0 %v6497_v53  ;;  %v6570_v38 = vld [vmem:[#allocation5 + $0x8b4] ss:$48 sps:$4 sm:$0xff]   ;;  %v6568_v40 = vld [vmem:[#allocation5 + $0x8b0] ss:$48 sps:$4 sm:$0xff]  }
  0xb1   :  { %v6577_v42 = vld [vmem:[#allocation5 + $0x24] ss:$48 sps:$4 sm:$0xff]   ;;  %v6575_v45 = vld [vmem:[#allocation5 + $0x20] ss:$48 sps:$4 sm:$0xff]  }
  0xb2   :  { %v7648_v43 = vld [vmem:[#allocation2 + $0x8] ss:$12 sps:$4 sm:$0xff]   ;;  %v7654_v53 = vld [vmem:[#allocation2 + $0x20] ss:$0 sps:$4 sm:$0x33]  }
  0xb3   :  { %1903 = vmatpush1.bf16.msra.mxu1 %v6499_v54  ;;  %2107 = vmatpush1.bf16.msra.mxu0 %v6500_v55  ;;  %v6583_v47 = vld [vmem:[#allocation5 + $0x84] ss:$48 sps:$4 sm:$0xff]   ;;  %v6581_v49 = vld [vmem:[#allocation5 + $0x80] ss:$48 sps:$4 sm:$0xff]   ;;  %v6585_v54 = vld [vmem:[#allocation5 + $0xc8] ss:$48 sps:$4 sm:$0xff]  }
  0xb4   :  { %1904 = vmatprep.subr.bf16.mxu1 %v6501_v56  ;;  %2108 = vmatprep.subr.bf16.mxu0 %v6503_v57  ;;  %v6590_v52 = vld [vmem:[#allocation5 + $0xe4] ss:$48 sps:$4 sm:$0xff]   ;;  %v6588_v55 = vld [vmem:[#allocation5 + $0xe0] ss:$48 sps:$4 sm:$0xff]   ;;  %v6593_v56 = vld [vmem:[#allocation5 + $0x12c] ss:$48 sps:$4 sm:$0xff]  }
  0xb5   :  { %v6596_v57 = vld [vmem:[#allocation5 + $0x144] ss:$48 sps:$4 sm:$0xff]  }
  0xb7   :  { %1905 = vmatpush1.bf16.msra.mxu1 %v6505_v58  ;;  %2109 = vmatpush1.bf16.msra.mxu0 %v6506_v59  ;;  %v6591_v58 = vld [vmem:[#allocation5 + $0x128] ss:$48 sps:$4 sm:$0xff]   ;;  %v6594_v59 = vld [vmem:[#allocation5 + $0x140] ss:$48 sps:$4 sm:$0xff]  }
  0xb8   :  { %1906 = vmatprep.subr.bf16.mxu1 %v6507_v60  ;;  %2110 = vmatprep.subr.bf16.mxu0 %v6509_v61  ;;  %v6599_v60 = vld [vmem:[#allocation5 + $0x18c] ss:$48 sps:$4 sm:$0xff]   ;;  %v6602_v61 = vld [vmem:[#allocation5 + $0x1a4] ss:$48 sps:$4 sm:$0xff]  }
  0xbb   :  { %1907 = vmatpush1.bf16.msra.mxu1 %v6511_v62  ;;  %2111 = vmatpush1.bf16.msra.mxu0 %v6512_v63  ;;  %v6597_v62 = vld [vmem:[#allocation5 + $0x188] ss:$48 sps:$4 sm:$0xff]   ;;  %v6600_v63 = vld [vmem:[#allocation5 + $0x1a0] ss:$48 sps:$4 sm:$0xff]  }
  0xbc   :  { %1908 = vmatprep.subr.bf16.mxu1 %v6513_v1  ;;  %2112 = vmatprep.subr.bf16.mxu0 %v6515_v2  ;;  %v6605_v1 = vld [vmem:[#allocation5 + $0x1ec] ss:$48 sps:$4 sm:$0xff]   ;;  %v6608_v2 = vld [vmem:[#allocation5 + $0x204] ss:$48 sps:$4 sm:$0xff]  }
  0xbf   :  { %1909 = vmatpush1.bf16.msra.mxu1 %v6517_v3  ;;  %2113 = vmatpush1.bf16.msra.mxu0 %v6518_v4  ;;  %v6603_v3 = vld [vmem:[#allocation5 + $0x1e8] ss:$48 sps:$4 sm:$0xff]   ;;  %v6606_v4 = vld [vmem:[#allocation5 + $0x200] ss:$48 sps:$4 sm:$0xff]  }
  0xc0   :  { %1929 = vmatprep.subr.bf16.mxu1 %v6522_v5  ;;  %2133 = vmatprep.subr.bf16.mxu0 %v6525_v6  ;;  %v6611_v5 = vld [vmem:[#allocation5 + $0x24c] ss:$48 sps:$4 sm:$0xff]   ;;  %v6614_v6 = vld [vmem:[#allocation5 + $0x264] ss:$48 sps:$4 sm:$0xff]  }
  0xc2   :  { %1911 = vmatmul.mubr.bf16.vlgmr.msra.gmra.mrb[0].mxu1 %v7634_v9  ;;  %2115 = vmatmul.mubr.bf16.vlgmr.msra.gmra.mrb[0].mxu0 %v7634_v9 }
  0xc3   :  { %1930 = vmatpush1.bf16.msra.mxu1 %v6520_v8  ;;  %2134 = vmatpush1.bf16.msra.mxu0 %v6523_v10  ;;  %v6612_v8 = vld [vmem:[#allocation5 + $0x260] ss:$48 sps:$4 sm:$0xff]   ;;  %v6617_v10 = vld [vmem:[#allocation5 + $0x2ac] ss:$48 sps:$4 sm:$0xff]  }
  0xc4   :  { %1931 = vmatprep.subr.bf16.mxu1 %v6529_v11  ;;  %2135 = vmatprep.subr.bf16.mxu0 %v6532_v12  ;;  %v6620_v11 = vld [vmem:[#allocation5 + $0x2c4] ss:$48 sps:$4 sm:$0xff]   ;;  %v6615_v12 = vld [vmem:[#allocation5 + $0x2a8] ss:$48 sps:$4 sm:$0xff]  }
  0xc5   :  { %1920 = vmatprep.mubr.bf16.mxu1 %v7636_v13  ;;  %2124 = vmatprep.mubr.bf16.mxu0 %v7636_v13 }
  0xc7   :  { %1932 = vmatpush1.bf16.msra.mxu1 %v6527_v14  ;;  %2136 = vmatpush1.bf16.msra.mxu0 %v6530_v15  ;;  %v6618_v14 = vld [vmem:[#allocation5 + $0x2c0] ss:$48 sps:$4 sm:$0xff]   ;;  %v6623_v15 = vld [vmem:[#allocation5 + $0x30c] ss:$48 sps:$4 sm:$0xff]  }
  0xc8   :  { %1933 = vmatprep.subr.bf16.mxu1 %v6535_v16  ;;  %2137 = vmatprep.subr.bf16.mxu0 %v6538_v17  ;;  %v6626_v16 = vld [vmem:[#allocation5 + $0x324] ss:$48 sps:$4 sm:$0xff]   ;;  %v6621_v17 = vld [vmem:[#allocation5 + $0x308] ss:$48 sps:$4 sm:$0xff]  }
  0xca   :  { %1921 = vmatmul.mubr.bf16.gmra.mrb[4].mxu1 %v7642_v19  ;;  %2125 = vmatmul.mubr.bf16.gmra.mrb[4].mxu0 %v7642_v19 }
  0xcb   :  { %1934 = vmatpush1.bf16.msra.mxu1 %v6533_v18  ;;  %2138 = vmatpush1.bf16.msra.mxu0 %v6536_v20  ;;  %v6624_v18 = vld [vmem:[#allocation5 + $0x320] ss:$48 sps:$4 sm:$0xff]   ;;  %v6629_v20 = vld [vmem:[#allocation5 + $0x36c] ss:$48 sps:$4 sm:$0xff]  }
  0xcc   :  { %1935 = vmatprep.subr.bf16.mxu1 %v6541_v21  ;;  %2139 = vmatprep.subr.bf16.mxu0 %v6544_v22  ;;  %v6632_v21 = vld [vmem:[#allocation5 + $0x384] ss:$48 sps:$4 sm:$0xff]   ;;  %v6627_v22 = vld [vmem:[#allocation5 + $0x368] ss:$48 sps:$4 sm:$0xff]  }
  0xcd   :  { %1961 = vmatprep.mubr.bf16.mxu1 %v7490_v0  ;;  %2165 = vmatprep.mubr.bf16.mxu0 %v7490_v0 }
  0xcf   :  { %1936 = vmatpush1.bf16.msra.mxu1 %v6539_v23  ;;  %2140 = vmatpush1.bf16.msra.mxu0 %v6542_v24  ;;  %v6630_v23 = vld [vmem:[#allocation5 + $0x380] ss:$48 sps:$4 sm:$0xff]   ;;  %v6635_v24 = vld [vmem:[#allocation5 + $0x3cc] ss:$48 sps:$4 sm:$0xff]  }
  0xd0   :  { %1937 = vmatprep.subr.bf16.mxu1 %v6547_v25  ;;  %2141 = vmatprep.subr.bf16.mxu0 %v6550_v26  ;;  %v6638_v25 = vld [vmem:[#allocation5 + $0x3e4] ss:$48 sps:$4 sm:$0xff]   ;;  %v6633_v26 = vld [vmem:[#allocation5 + $0x3c8] ss:$48 sps:$4 sm:$0xff]  }
  0xd3   :  { %1938 = vmatpush1.bf16.msra.mxu1 %v6545_v27  ;;  %2142 = vmatpush1.bf16.msra.mxu0 %v6548_v28  ;;  %v6636_v27 = vld [vmem:[#allocation5 + $0x3e0] ss:$48 sps:$4 sm:$0xff]   ;;  %v6641_v28 = vld [vmem:[#allocation5 + $0x42c] ss:$48 sps:$4 sm:$0xff]  }
  0xd4   :  { %1939 = vmatprep.subr.bf16.mxu1 %v6553_v29  ;;  %2143 = vmatprep.subr.bf16.mxu0 %v6556_v30  ;;  %v6644_v29 = vld [vmem:[#allocation5 + $0x444] ss:$48 sps:$4 sm:$0xff]   ;;  %v6639_v30 = vld [vmem:[#allocation5 + $0x428] ss:$48 sps:$4 sm:$0xff]  }
  0xd7   :  { %1940 = vmatpush1.bf16.msra.mxu1 %v6551_v31  ;;  %2144 = vmatpush1.bf16.msra.mxu0 %v6554_v32  ;;  %v6642_v31 = vld [vmem:[#allocation5 + $0x440] ss:$48 sps:$4 sm:$0xff]   ;;  %v6647_v32 = vld [vmem:[#allocation5 + $0x48c] ss:$48 sps:$4 sm:$0xff]  }
  0xd8   :  { %1941 = vmatprep.subr.bf16.mxu1 %v6561_v33  ;;  %2145 = vmatprep.subr.bf16.mxu0 %v6564_v34  ;;  %v6650_v33 = vld [vmem:[#allocation5 + $0x4a4] ss:$48 sps:$4 sm:$0xff]   ;;  %v6645_v34 = vld [vmem:[#allocation5 + $0x488] ss:$48 sps:$4 sm:$0xff]  }
  0xdb   :  { %1942 = vmatpush1.bf16.msra.mxu1 %v6559_v35  ;;  %2146 = vmatpush1.bf16.msra.mxu0 %v6562_v36  ;;  %v6648_v35 = vld [vmem:[#allocation5 + $0x4a0] ss:$48 sps:$4 sm:$0xff]   ;;  %v6653_v36 = vld [vmem:[#allocation5 + $0x4ec] ss:$48 sps:$4 sm:$0xff]  }
  0xdc   :  { %1943 = vmatprep.subr.bf16.mxu1 %v6567_v37  ;;  %2147 = vmatprep.subr.bf16.mxu0 %v6570_v38  ;;  %v6656_v37 = vld [vmem:[#allocation5 + $0x504] ss:$48 sps:$4 sm:$0xff]   ;;  %v6651_v38 = vld [vmem:[#allocation5 + $0x4e8] ss:$48 sps:$4 sm:$0xff]  }
  0xdf   :  { %1944 = vmatpush1.bf16.msra.mxu1 %v6565_v39  ;;  %2148 = vmatpush1.bf16.msra.mxu0 %v6568_v40  ;;  %v6654_v39 = vld [vmem:[#allocation5 + $0x500] ss:$48 sps:$4 sm:$0xff]   ;;  %v6659_v40 = vld [vmem:[#allocation5 + $0x54c] ss:$48 sps:$4 sm:$0xff]  }
  0xe0   :  { %1980 = vmatprep.subr.bf16.mxu1 %v6574_v41  ;;  %2286 = vmatprep.subr.bf16.mxu0 %v6577_v42  ;;  %v6662_v41 = vld [vmem:[#allocation5 + $0x564] ss:$48 sps:$4 sm:$0xff]   ;;  %v6657_v42 = vld [vmem:[#allocation5 + $0x548] ss:$48 sps:$4 sm:$0xff]  }
  0xe2   :  { %1962 = vmatmul.mubr.bf16.vlgmr.msra.gmra.mrb[0].mxu1 %v7648_v43  ;;  %2166 = vmatmul.mubr.bf16.vlgmr.msra.gmra.mrb[0].mxu0 %v7648_v43 }
  0xe3   :  { %1981 = vmatpush1.bf16.msra.mxu1 %v6572_v44  ;;  %2287 = vmatpush1.bf16.msra.mxu0 %v6575_v45  ;;  %v6660_v44 = vld [vmem:[#allocation5 + $0x560] ss:$48 sps:$4 sm:$0xff]   ;;  %v6665_v45 = vld [vmem:[#allocation5 + $0x5ac] ss:$48 sps:$4 sm:$0xff]  }
  0xe4   :  { %1982 = vmatprep.subr.bf16.mxu1 %v6580_v46  ;;  %2288 = vmatprep.subr.bf16.mxu0 %v6583_v47  ;;  %v6668_v46 = vld [vmem:[#allocation5 + $0x5c4] ss:$48 sps:$4 sm:$0xff]   ;;  %v6663_v47 = vld [vmem:[#allocation5 + $0x5a8] ss:$48 sps:$4 sm:$0xff]  }
  0xe5   :  { %1971 = vmatprep.mubr.bf16.mxu1 %v7490_v0  ;;  %2175 = vmatprep.mubr.bf16.mxu0 %v7490_v0 }
  0xe7   :  { %1983 = vmatpush1.bf16.msra.mxu1 %v6578_v48  ;;  %2289 = vmatpush1.bf16.msra.mxu0 %v6581_v49  ;;  %v6666_v48 = vld [vmem:[#allocation5 + $0x5c0] ss:$48 sps:$4 sm:$0xff]   ;;  %v6671_v49 = vld [vmem:[#allocation5 + $0x60c] ss:$48 sps:$4 sm:$0xff]  }
  0xe8   :  { %1984 = vmatprep.subr.bf16.mxu1 %v6587_v50  ;;  %2290 = vmatprep.subr.bf16.mxu0 %v6590_v52  ;;  %v6674_v50 = vld [vmem:[#allocation5 + $0x624] ss:$48 sps:$4 sm:$0xff]   ;;  %v6669_v52 = vld [vmem:[#allocation5 + $0x608] ss:$48 sps:$4 sm:$0xff]  }
  0xea   :  { %1972 = vmatmul.mubr.bf16.gmra.mrb[4].mxu1 %v7654_v53  ;;  %2176 = vmatmul.mubr.bf16.gmra.mrb[4].mxu0 %v7654_v53 }
  0xeb   :  { %1985 = vmatpush1.bf16.msra.mxu1 %v6585_v54  ;;  %2291 = vmatpush1.bf16.msra.mxu0 %v6588_v55  ;;  %v6672_v54 = vld [vmem:[#allocation5 + $0x620] ss:$48 sps:$4 sm:$0xff]   ;;  %v6677_v55 = vld [vmem:[#allocation5 + $0x66c] ss:$48 sps:$4 sm:$0xff]  }
  0xec   :  { %1986 = vmatprep.subr.bf16.mxu1 %v6593_v56  ;;  %2292 = vmatprep.subr.bf16.mxu0 %v6596_v57  ;;  %v6680_v56 = vld [vmem:[#allocation5 + $0x684] ss:$48 sps:$4 sm:$0xff]  }
  0xed   :  { %2012 = vmatprep.mubr.bf16.mxu1 %v7627_v51  ;;  %2318 = vmatprep.mubr.bf16.mxu0 %v7627_v51 }
  0xef   :  { %1987 = vmatpush1.bf16.msra.mxu1 %v6591_v58  ;;  %2293 = vmatpush1.bf16.msra.mxu0 %v6594_v59  ;;  %v6675_v58 = vld [vmem:[#allocation5 + $0x668] ss:$48 sps:$4 sm:$0xff]   ;;  %v6678_v59 = vld [vmem:[#allocation5 + $0x680] ss:$48 sps:$4 sm:$0xff]  }
  0xf0   :  { %1988 = vmatprep.subr.bf16.mxu1 %v6599_v60  ;;  %2294 = vmatprep.subr.bf16.mxu0 %v6602_v61  ;;  %v6683_v61 = vld [vmem:[#allocation5 + $0x6cc] ss:$48 sps:$4 sm:$0xff]  }
  0xf3   :  { %1989 = vmatpush1.bf16.msra.mxu1 %v6597_v62  ;;  %2295 = vmatpush1.bf16.msra.mxu0 %v6600_v63  ;;  %v6686_v62 = vld [vmem:[#allocation5 + $0x6e4] ss:$48 sps:$4 sm:$0xff]  }
  0xf4   :  { %1990 = vmatprep.subr.bf16.mxu1 %v6605_v1  ;;  %2296 = vmatprep.subr.bf16.mxu0 %v6608_v2  ;;  %v6681_v1 = vld [vmem:[#allocation5 + $0x6c8] ss:$48 sps:$4 sm:$0xff]   ;;  %v6684_v2 = vld [vmem:[#allocation5 + $0x6e0] ss:$48 sps:$4 sm:$0xff]  }
  0xf7   :  { %1991 = vmatpush1.bf16.msra.mxu1 %v6603_v3  ;;  %2297 = vmatpush1.bf16.msra.mxu0 %v6606_v4  ;;  %v6689_v4 = vld [vmem:[#allocation5 + $0x72c] ss:$48 sps:$4 sm:$0xff]  }
  0xf8   :  { %1992 = vmatprep.subr.bf16.mxu1 %v6611_v5  ;;  %2298 = vmatprep.subr.bf16.mxu0 %v6614_v6  ;;  %v2621_v57 = vpop.permute.xlu0 %2620 }
  0xf9   :  { %v2626_v60 = vrot.slane %v2621_v57, 4  ;;  %v6750_v57 = vld [vmem:[#allocation5 + $0x438] ss:$48 sps:$4 sm:$0xff]  }
  0xfb   :  { %1993 = vmatpush1.bf16.msra.mxu1 %v6609_v7  ;;  %2299 = vmatpush1.bf16.msra.mxu0 %v6612_v8  ;;  %v2632_v5 = vunpack.c.l.bf16 %v2626_v60  ;;  %v6692_v7 = vld [vmem:[#allocation5 + $0x744] ss:$48 sps:$4 sm:$0xff]   ;;  %v6687_v8 = vld [vmem:[#allocation5 + $0x728] ss:$48 sps:$4 sm:$0xff]   ;;  %v6758_v60 = vld [vmem:[#allocation5 + $0x4fc] ss:$48 sps:$4 sm:$0xff]  }
  0xfc   :  { %1994 = vmatprep.subr.bf16.mxu1 %v6617_v10  ;;  %2300 = vmatprep.subr.bf16.mxu0 %v6620_v11  ;;  %v2623_v63 = vpop.permute.xlu0 %2622  ;;  %v6690_v10 = vld [vmem:[#allocation5 + $0x740] ss:$48 sps:$4 sm:$0xff]  }
  0xfd   :  { %v2627_v3 = vrot.slane %v2623_v63, 4  ;;  %v6761_v63 = vld [vmem:[#allocation5 + $0x55c] ss:$48 sps:$4 sm:$0xff]  }
  0xff   :  { %1995 = vmatpush1.bf16.msra.mxu1 %v6615_v12  ;;  %2301 = vmatpush1.bf16.msra.mxu0 %v6618_v14  ;;  %v2633_v6 = vunpack.c.l.bf16 %v2627_v3  ;;  %v6695_v12 = vld [vmem:[#allocation5 + $0x78c] ss:$48 sps:$4 sm:$0xff]   ;;  %v6698_v14 = vld [vmem:[#allocation5 + $0x7a4] ss:$48 sps:$4 sm:$0xff]   ;;  %v6759_v3 = vld [vmem:[#allocation5 + $0x558] ss:$48 sps:$4 sm:$0xff]  }
 0x100   :  { %1996 = vmatprep.subr.bf16.mxu1 %v6623_v15  ;;  %2302 = vmatprep.subr.bf16.mxu0 %v6626_v16  ;;  %v6693_v15 = vld [vmem:[#allocation5 + $0x788] ss:$48 sps:$4 sm:$0xff]   ;;  %v6696_v16 = vld [vmem:[#allocation5 + $0x7a0] ss:$48 sps:$4 sm:$0xff]  }
 0x101   :  { %v6417_v11 = vpack.i.bf16 %v2633_v6, %v2632_v5  ;;  %v6858_v5 = vld [vmem:[#allocation8 + $0x318] ss:$12 sps:$4 sm:$0xff]   ;;  %v6866_v6 = vld [vmem:[#allocation8 + $0x334] ss:$12 sps:$4 sm:$0xff]  }
 0x103   :  { %1997 = vmatpush1.bf16.msra.mxu1 %v6621_v17  ;;  %2303 = vmatpush1.bf16.msra.mxu0 %v6624_v18  ;;  %v6701_v17 = vld [vmem:[#allocation5 + $0x7ec] ss:$48 sps:$4 sm:$0xff]   ;;  %v6704_v18 = vld [vmem:[#allocation5 + $0x804] ss:$48 sps:$4 sm:$0xff]  }
 0x104   :  { %1998 = vmatprep.subr.bf16.mxu1 %v6629_v20  ;;  %2304 = vmatprep.subr.bf16.mxu0 %v6632_v21 }
 0x105   :  { %6418 = vperm.xlu1 %6416, %v6417_v11   ;;  %v6765_v11 = vld [vmem:[#allocation5 + $0x618] ss:$48 sps:$4 sm:$0xff]  }
 0x107   :  { %1999 = vmatpush1.bf16.msra.mxu1 %v6627_v22  ;;  %2305 = vmatpush1.bf16.msra.mxu0 %v6630_v23  ;;  %v6699_v22 = vld [vmem:[#allocation5 + $0x7e8] ss:$48 sps:$4 sm:$0xff]   ;;  %v6702_v23 = vld [vmem:[#allocation5 + $0x800] ss:$48 sps:$4 sm:$0xff]  }
 0x108   :  { %2000 = vmatprep.subr.bf16.mxu1 %v6635_v24  ;;  %2306 = vmatprep.subr.bf16.mxu0 %v6638_v25  ;;  %v6707_v24 = vld [vmem:[#allocation5 + $0x84c] ss:$48 sps:$4 sm:$0xff]  }
 0x10b   :  { %2001 = vmatpush1.bf16.msra.mxu1 %v6633_v26  ;;  %2307 = vmatpush1.bf16.msra.mxu0 %v6636_v27  ;;  %v6710_v26 = vld [vmem:[#allocation5 + $0x864] ss:$48 sps:$4 sm:$0xff]   ;;  %v6705_v27 = vld [vmem:[#allocation5 + $0x848] ss:$48 sps:$4 sm:$0xff]  }
 0x10c   :  { %2002 = vmatprep.subr.bf16.mxu1 %v6641_v28  ;;  %2308 = vmatprep.subr.bf16.mxu0 %v6644_v29  ;;  %v6708_v28 = vld [vmem:[#allocation5 + $0x860] ss:$48 sps:$4 sm:$0xff]   ;;  %v6713_v29 = vld [vmem:[#allocation5 + $0x8ac] ss:$48 sps:$4 sm:$0xff]  }
 0x10f   :  { %2003 = vmatpush1.bf16.msra.mxu1 %v6639_v30  ;;  %2309 = vmatpush1.bf16.msra.mxu0 %v6642_v31  ;;  %v6716_v30 = vld [vmem:[#allocation5 + $0x8c4] ss:$48 sps:$4 sm:$0xff]   ;;  %v6711_v31 = vld [vmem:[#allocation5 + $0x8a8] ss:$48 sps:$4 sm:$0xff]  }
 0x110   :  { %2004 = vmatprep.subr.bf16.mxu1 %v6647_v32  ;;  %2310 = vmatprep.subr.bf16.mxu0 %v6650_v33  ;;  %v6714_v32 = vld [vmem:[#allocation5 + $0x8c0] ss:$48 sps:$4 sm:$0xff]   ;;  %v6719_v33 = vld [vmem:[#allocation5 + $0x1c] ss:$48 sps:$4 sm:$0xff]  }
 0x113   :  { %2005 = vmatpush1.bf16.msra.mxu1 %v6645_v34  ;;  %2311 = vmatpush1.bf16.msra.mxu0 %v6648_v35  ;;  %v6717_v34 = vld [vmem:[#allocation5 + $0x18] ss:$48 sps:$4 sm:$0xff]   ;;  %v6722_v35 = vld [vmem:[#allocation5 + $0x7c] ss:$48 sps:$4 sm:$0xff]  }
 0x114   :  { %2006 = vmatprep.subr.bf16.mxu1 %v6653_v36  ;;  %2312 = vmatprep.subr.bf16.mxu0 %v6656_v37  ;;  %v6720_v36 = vld [vmem:[#allocation5 + $0x78] ss:$48 sps:$4 sm:$0xff]   ;;  %v6725_v37 = vld [vmem:[#allocation5 + $0xdc] ss:$48 sps:$4 sm:$0xff]  }
 0x117   :  { %2007 = vmatpush1.bf16.msra.mxu1 %v6651_v38  ;;  %2313 = vmatpush1.bf16.msra.mxu0 %v6654_v39  ;;  %v2625_v20 = vpop.permute.xlu1 %2624  ;;  %v6723_v38 = vld [vmem:[#allocation5 + $0xd8] ss:$48 sps:$4 sm:$0xff]   ;;  %v6728_v39 = vld [vmem:[#allocation5 + $0x13c] ss:$48 sps:$4 sm:$0xff]  }
 0x118   :  { %2008 = vmatprep.subr.bf16.mxu1 %v6659_v40  ;;  %2314 = vmatprep.subr.bf16.mxu0 %v6662_v41  ;;  %v2628_v21 = vrot.slane %v2625_v20, 4  ;;  %v6726_v40 = vld [vmem:[#allocation5 + $0x138] ss:$48 sps:$4 sm:$0xff]   ;;  %v6731_v41 = vld [vmem:[#allocation5 + $0x19c] ss:$48 sps:$4 sm:$0xff]  }
 0x119   :  { %v6875_v20 = vld [vmem:[#allocation8 + $0x364] ss:$12 sps:$4 sm:$0xff]  }
 0x11a   :  { %v2634_v25 = vunpack.c.l.bf16 %v2628_v21  ;;  %v6876_v21 = vld [vmem:[#allocation8 + $0x378] ss:$12 sps:$4 sm:$0xff]  }
 0x11b   :  { %2009 = vmatpush1.bf16.msra.mxu1 %v6657_v42  ;;  %2315 = vmatpush1.bf16.msra.mxu0 %v6660_v44  ;;  %v6734_v42 = vld [vmem:[#allocation5 + $0x1fc] ss:$48 sps:$4 sm:$0xff]   ;;  %v6732_v44 = vld [vmem:[#allocation5 + $0x1f8] ss:$48 sps:$4 sm:$0xff]  }
 0x11c   :  { %2010 = vmatprep.subr.bf16.mxu1 %v6665_v45  ;;  %2316 = vmatprep.subr.bf16.mxu0 %v6668_v46  ;;  %v6737_v45 = vld [vmem:[#allocation5 + $0x25c] ss:$48 sps:$4 sm:$0xff]   ;;  %v6735_v46 = vld [vmem:[#allocation5 + $0x258] ss:$48 sps:$4 sm:$0xff]  }
 0x11d   :  { %2647 = vperm.xlu0 %6422, %v2634_v25   ;;  %v6774_v25 = vld [vmem:[#allocation5 + $0x738] ss:$48 sps:$4 sm:$0xff]  }
 0x11f   :  { %2011 = vmatpush1.bf16.msra.mxu1 %v6663_v47  ;;  %2317 = vmatpush1.bf16.msra.mxu0 %v6666_v48  ;;  %v6740_v47 = vld [vmem:[#allocation5 + $0x2bc] ss:$48 sps:$4 sm:$0xff]  }
 0x120   :  { %2031 = vmatprep.subr.bf16.mxu1 %v6671_v49  ;;  %2337 = vmatprep.subr.bf16.mxu0 %v6674_v50  ;;  %v6743_v48 = vld [vmem:[#allocation5 + $0x31c] ss:$48 sps:$4 sm:$0xff]   ;;  %v6741_v49 = vld [vmem:[#allocation5 + $0x318] ss:$48 sps:$4 sm:$0xff]  }
 0x121   :  { %v6746_v50 = vld [vmem:[#allocation5 + $0x37c] ss:$48 sps:$4 sm:$0xff]  }
 0x122   :  { %2013 = vmatmul.mubr.bf16.vlgmr.msra.gmra.mrb[8].mxu1 %v7634_v9  ;;  %2319 = vmatmul.mubr.bf16.vlgmr.msra.gmra.mrb[8].mxu0 %v7634_v9 }
 0x123   :  { %2032 = vmatpush1.bf16.msra.mxu1 %v6669_v52  ;;  %2338 = vmatpush1.bf16.msra.mxu0 %v6672_v54  ;;  %v6744_v52 = vld [vmem:[#allocation5 + $0x378] ss:$48 sps:$4 sm:$0xff]   ;;  %v6749_v54 = vld [vmem:[#allocation5 + $0x3dc] ss:$48 sps:$4 sm:$0xff]  }
 0x124   :  { %2033 = vmatprep.subr.bf16.mxu1 %v6677_v55  ;;  %2339 = vmatprep.subr.bf16.mxu0 %v6680_v56  ;;  %v6747_v55 = vld [vmem:[#allocation5 + $0x3d8] ss:$48 sps:$4 sm:$0xff]   ;;  %v6752_v56 = vld [vmem:[#allocation5 + $0x43c] ss:$48 sps:$4 sm:$0xff]  }
 0x125   :  { %2022 = vmatprep.mubr.bf16.mxu1 %v7636_v13  ;;  %2328 = vmatprep.mubr.bf16.mxu0 %v7636_v13 }
 0x127   :  { %2034 = vmatpush1.bf16.msra.mxu1 %v6675_v58  ;;  %2340 = vmatpush1.bf16.msra.mxu0 %v6678_v59  ;;  %v6755_v58 = vld [vmem:[#allocation5 + $0x49c] ss:$48 sps:$4 sm:$0xff]   ;;  %v6753_v59 = vld [vmem:[#allocation5 + $0x498] ss:$48 sps:$4 sm:$0xff]  }
 0x128   :  { %2035 = vmatprep.subr.bf16.mxu1 %v6683_v61  ;;  %2341 = vmatprep.subr.bf16.mxu0 %v6686_v62  ;;  %v6854_v61 = vld [vmem:[#allocation8 + $0x304] ss:$12 sps:$4 sm:$0xff]  }
 0x129   :  { %v6756_v62 = vld [vmem:[#allocation5 + $0x4f8] ss:$48 sps:$4 sm:$0xff]  }
 0x12a   :  { %2023 = vmatmul.mubr.bf16.gmra.mrb[12].mxu1 %v7642_v19  ;;  %2329 = vmatmul.mubr.bf16.gmra.mrb[12].mxu0 %v7642_v19 }
 0x12b   :  { %2036 = vmatpush1.bf16.msra.mxu1 %v6681_v1  ;;  %2342 = vmatpush1.bf16.msra.mxu0 %v6684_v2  ;;  %v6852_v1 = vld [vmem:[#allocation8 + $0x300] ss:$12 sps:$4 sm:$0xff]   ;;  %v6860_v2 = vld [vmem:[#allocation8 + $0x31c] ss:$12 sps:$4 sm:$0xff]  }
 0x12c   :  { %2037 = vmatprep.subr.bf16.mxu1 %v6689_v4  ;;  %2343 = vmatprep.subr.bf16.mxu0 %v6692_v7  ;;  %v6764_v4 = vld [vmem:[#allocation5 + $0x5bc] ss:$48 sps:$4 sm:$0xff]   ;;  %v6762_v7 = vld [vmem:[#allocation5 + $0x5b8] ss:$48 sps:$4 sm:$0xff]  }
 0x12d   :  { %2063 = vmatprep.mubr.bf16.mxu1 %v7490_v0  ;;  %2369 = vmatprep.mubr.bf16.mxu0 %v7490_v0 }
 0x12f   :  { %2038 = vmatpush1.bf16.msra.mxu1 %v6687_v8  ;;  %2344 = vmatpush1.bf16.msra.mxu0 %v6690_v10  ;;  %v6767_v8 = vld [vmem:[#allocation5 + $0x61c] ss:$48 sps:$4 sm:$0xff]   ;;  %v6864_v10 = vld [vmem:[#allocation8 + $0x330] ss:$12 sps:$4 sm:$0xff]  }
 0x130   :  { %2039 = vmatprep.subr.bf16.mxu1 %v6695_v12  ;;  %2345 = vmatprep.subr.bf16.mxu0 %v6698_v14  ;;  %v6770_v12 = vld [vmem:[#allocation5 + $0x67c] ss:$48 sps:$4 sm:$0xff]  }
 0x131   :  { %v6872_v14 = vld [vmem:[#allocation8 + $0x34c] ss:$12 sps:$4 sm:$0xff]  }
 0x133   :  { %2040 = vmatpush1.bf16.msra.mxu1 %v6693_v15  ;;  %2346 = vmatpush1.bf16.msra.mxu0 %v6696_v16  ;;  %v6870_v15 = vld [vmem:[#allocation8 + $0x348] ss:$12 sps:$4 sm:$0xff]  }
 0x134   :  { %2041 = vmatprep.subr.bf16.mxu1 %v6701_v17  ;;  %2347 = vmatprep.subr.bf16.mxu0 %v6704_v18  ;;  %v6768_v16 = vld [vmem:[#allocation5 + $0x678] ss:$48 sps:$4 sm:$0xff]   ;;  %v6773_v17 = vld [vmem:[#allocation5 + $0x6dc] ss:$48 sps:$4 sm:$0xff]   ;;  %v6873_v18 = vld [vmem:[#allocation8 + $0x360] ss:$12 sps:$4 sm:$0xff]  }
 0x137   :  { %2042 = vmatpush1.bf16.msra.mxu1 %v6699_v22  ;;  %2348 = vmatpush1.bf16.msra.mxu0 %v6702_v23  ;;  %v6878_v22 = vld [vmem:[#allocation8 + $0x37c] ss:$12 sps:$4 sm:$0xff]   ;;  %v6771_v23 = vld [vmem:[#allocation5 + $0x6d8] ss:$48 sps:$4 sm:$0xff]  }
 0x138   :  { %2043 = vmatprep.subr.bf16.mxu1 %v6707_v24  ;;  %2349 = vmatprep.subr.bf16.mxu0 %v6710_v26  ;;  %v6776_v24 = vld [vmem:[#allocation5 + $0x73c] ss:$48 sps:$4 sm:$0xff]   ;;  %v6879_v26 = vld [vmem:[#allocation8 + $0x390] ss:$12 sps:$4 sm:$0xff]  }
 0x13b   :  { %2044 = vmatpush1.bf16.msra.mxu1 %v6705_v27  ;;  %2350 = vmatpush1.bf16.msra.mxu0 %v6708_v28  ;;  %v6881_v27 = vld [vmem:[#allocation8 + $0x394] ss:$12 sps:$4 sm:$0xff]   ;;  %v6779_v28 = vld [vmem:[#allocation5 + $0x79c] ss:$48 sps:$4 sm:$0xff]  }
 0x13c   :  { %2045 = vmatprep.subr.bf16.mxu1 %v6713_v29  ;;  %2351 = vmatprep.subr.bf16.mxu0 %v6716_v30  ;;  %v6882_v29 = vld [vmem:[#allocation8 + $0x3a8] ss:$12 sps:$4 sm:$0xff]   ;;  %v6884_v30 = vld [vmem:[#allocation8 + $0x3ac] ss:$12 sps:$4 sm:$0xff]  }
 0x13f   :  { %2046 = vmatpush1.bf16.msra.mxu1 %v6711_v31  ;;  %2352 = vmatpush1.bf16.msra.mxu0 %v6714_v32  ;;  %v6887_v31 = vld [vmem:[#allocation8 + $0x3c4] ss:$12 sps:$4 sm:$0xff]  }
 0x140   :  { %2184 = vmatprep.subr.bf16.mxu1 %v6719_v33  ;;  %3550 = vmatprep.subr.bf16.mxu0 %v6854_v61  ;;  %v6777_v32 = vld [vmem:[#allocation5 + $0x798] ss:$48 sps:$4 sm:$0xff]   ;;  %v6782_v33 = vld [vmem:[#allocation5 + $0x7fc] ss:$48 sps:$4 sm:$0xff]  }
 0x141   :  { %v6917_v61 = vld [vmem:[#allocation8 + $0x454] ss:$12 sps:$4 sm:$0xff]  }
 0x142   :  { %2064 = vmatmul.mubr.bf16.vlgmr.msra.gmra.mrb[8].mxu1 %v7648_v43  ;;  %2370 = vmatmul.mubr.bf16.vlgmr.msra.gmra.mrb[8].mxu0 %v7648_v43  ;;  %v6729_v43 = vld [vmem:[#allocation5 + $0x198] ss:$48 sps:$4 sm:$0xff]  }
 0x143   :  { %2185 = vmatpush1.bf16.msra.mxu1 %v6717_v34  ;;  %2073 = vmatprep.mubr.bf16.mxu1 %v7490_v0  ;;  %v6885_v34 = vld [vmem:[#allocation8 + $0x3c0] ss:$12 sps:$4 sm:$0xff]  }
 0x144   :  { %2186 = vmatprep.subr.bf16.mxu1 %v6722_v35  ;;  %2379 = vmatprep.mubr.bf16.mxu0 %v7490_v0  ;;  %v6780_v35 = vld [vmem:[#allocation5 + $0x7f8] ss:$48 sps:$4 sm:$0xff]  }
 0x145   :  { %3551 = vmatpush1.bf16.msra.mxu0 %v6852_v1  ;;  %v6801_v1 = vld [vmem:[#allocation5 + $0x1a8] ss:$48 sps:$4 sm:$0xff]  }
 0x146   :  { %3552 = vmatprep.subr.bf16.mxu0 %v6860_v2  ;;  %v6922_v2 = vld [vmem:[#allocation8 + $0x46c] ss:$12 sps:$4 sm:$0xff]  }
 0x147   :  { %2187 = vmatpush1.bf16.msra.mxu1 %v6720_v36  ;;  %v6785_v36 = vld [vmem:[#allocation5 + $0x85c] ss:$48 sps:$4 sm:$0xff]  }
 0x148   :  { %2188 = vmatprep.subr.bf16.mxu1 %v6725_v37  ;;  %v6783_v37 = vld [vmem:[#allocation5 + $0x858] ss:$48 sps:$4 sm:$0xff]  }
 0x149   :  { %3553 = vmatpush1.bf16.msra.mxu0 %v6858_v5  ;;  %v6804_v5 = vld [vmem:[#allocation5 + $0x208] ss:$48 sps:$4 sm:$0xff]  }
 0x14a   :  { %2074 = vmatmul.mubr.bf16.gmra.mrb[12].mxu1 %v7654_v53  ;;  %2380 = vmatmul.mubr.bf16.gmra.mrb[12].mxu0 %v7654_v53  ;;  %v6738_v53 = vld [vmem:[#allocation5 + $0x2b8] ss:$48 sps:$4 sm:$0xff]  }
 0x14b   :  { %2189 = vmatpush1.bf16.msra.mxu1 %v6723_v38  ;;  %2216 = vmatprep.mubr.bf16.mxu1 %v7627_v51  ;;  %v6892_v38 = vld [vmem:[#allocation8 + $0x3dc] ss:$12 sps:$4 sm:$0xff]  }
 0x14c   :  { %2190 = vmatprep.subr.bf16.mxu1 %v6728_v39  ;;  %3554 = vmatprep.subr.bf16.mxu0 %v6866_v6  ;;  %v6788_v39 = vld [vmem:[#allocation5 + $0x8bc] ss:$48 sps:$4 sm:$0xff]  }
 0x14d   :  { %3555 = vmatpush1.bf16.msra.mxu0 %v6864_v10  ;;  %v6809_v6 = vld [vmem:[#allocation5 + $0x26c] ss:$48 sps:$4 sm:$0xff]  }
 0x14e   :  { %3556 = vmatprep.subr.bf16.mxu0 %v6872_v14 }
 0x14f   :  { %2191 = vmatpush1.bf16.msra.mxu1 %v6726_v40  ;;  %v6890_v40 = vld [vmem:[#allocation8 + $0x3d8] ss:$12 sps:$4 sm:$0xff]  }
 0x150   :  { %2192 = vmatprep.subr.bf16.mxu1 %v6731_v41  ;;  %v6786_v41 = vld [vmem:[#allocation5 + $0x8b8] ss:$48 sps:$4 sm:$0xff]  }
 0x151   :  { %3557 = vmatpush1.bf16.msra.mxu0 %v6870_v15 }
 0x152   :  { %3558 = vmatprep.subr.bf16.mxu0 %v6875_v20 }
 0x153   :  { %2193 = vmatpush1.bf16.msra.mxu1 %v6729_v43  ;;  %v6897_v43 = vld [vmem:[#allocation8 + $0x3f4] ss:$12 sps:$4 sm:$0xff]  }
 0x154   :  { %2194 = vmatprep.subr.bf16.mxu1 %v6734_v42  ;;  %v6791_v42 = vld [vmem:[#allocation5 + $0x2c] ss:$48 sps:$4 sm:$0xff]  }
 0x155   :  { %3559 = vmatpush1.bf16.msra.mxu0 %v6873_v18 }
 0x156   :  { %3560 = vmatprep.subr.bf16.mxu0 %v6878_v22 }
 0x157   :  { %2195 = vmatpush1.bf16.msra.mxu1 %v6732_v44  ;;  %v6895_v44 = vld [vmem:[#allocation8 + $0x3f0] ss:$12 sps:$4 sm:$0xff]  }
 0x158   :  { %2196 = vmatprep.subr.bf16.mxu1 %v6737_v45  ;;  %v6789_v45 = vld [vmem:[#allocation5 + $0x28] ss:$48 sps:$4 sm:$0xff]  }
 0x159   :  { %3561 = vmatpush1.bf16.msra.mxu0 %v6876_v21 }
 0x15a   :  { %3562 = vmatprep.subr.bf16.mxu0 %v6881_v27 }
 0x15b   :  { %2197 = vmatpush1.bf16.msra.mxu1 %v6735_v46  ;;  %v6902_v46 = vld [vmem:[#allocation8 + $0x40c] ss:$12 sps:$4 sm:$0xff]  }
 0x15c   :  { %2198 = vmatprep.subr.bf16.mxu1 %v6740_v47  ;;  %v6794_v47 = vld [vmem:[#allocation5 + $0x8c] ss:$48 sps:$4 sm:$0xff]  }
 0x15d   :  { %3563 = vmatpush1.bf16.msra.mxu0 %v6879_v26 }
 0x15e   :  { %3564 = vmatprep.subr.bf16.mxu0 %v6884_v30 }
 0x15f   :  { %2199 = vmatpush1.bf16.msra.mxu1 %v6738_v53  ;;  %v6900_v53 = vld [vmem:[#allocation8 + $0x408] ss:$12 sps:$4 sm:$0xff]  }
 0x160   :  { %2200 = vmatprep.subr.bf16.mxu1 %v6743_v48  ;;  %v7679_v48 = vld [vmem:[#allocation2 + $0x8] ss:$12 sps:$4 sm:$0xff]  }
 0x161   :  { %3565 = vmatpush1.bf16.msra.mxu0 %v6882_v29 }
 0x162   :  { %3566 = vmatprep.subr.bf16.mxu0 %v6887_v31 }
 0x163   :  { %2201 = vmatpush1.bf16.msra.mxu1 %v6741_v49  ;;  %v6792_v49 = vld [vmem:[#allocation5 + $0x88] ss:$48 sps:$4 sm:$0xff]  }
 0x164   :  { %2202 = vmatprep.subr.bf16.mxu1 %v6746_v50  ;;  %v6907_v50 = vld [vmem:[#allocation8 + $0x424] ss:$12 sps:$4 sm:$0xff]  }
 0x165   :  { %3567 = vmatpush1.bf16.msra.mxu0 %v6885_v34 }
 0x166   :  { %3568 = vmatprep.subr.bf16.mxu0 %v6892_v38  ;;  %v6821_v38 = vld [vmem:[#allocation5 + $0x3ec] ss:$48 sps:$4 sm:$0xff]  }
 0x167   :  { %2203 = vmatpush1.bf16.msra.mxu1 %v6744_v52  ;;  %v6797_v52 = vld [vmem:[#allocation5 + $0xec] ss:$48 sps:$4 sm:$0xff]  }
 0x168   :  { %2204 = vmatprep.subr.bf16.mxu1 %v6749_v54  ;;  %v6905_v54 = vld [vmem:[#allocation8 + $0x420] ss:$12 sps:$4 sm:$0xff]  }
 0x169   :  { %3569 = vmatpush1.bf16.msra.mxu0 %v6890_v40  ;;  %v6824_v40 = vld [vmem:[#allocation5 + $0x44c] ss:$48 sps:$4 sm:$0xff]  }
 0x16a   :  { %3570 = vmatprep.subr.bf16.mxu0 %v6897_v43  ;;  %v6827_v43 = vld [vmem:[#allocation5 + $0x4ac] ss:$48 sps:$4 sm:$0xff]  }
 0x16b   :  { %2205 = vmatpush1.bf16.msra.mxu1 %v6747_v55  ;;  %v6795_v55 = vld [vmem:[#allocation5 + $0xe8] ss:$48 sps:$4 sm:$0xff]  }
 0x16c   :  { %2206 = vmatprep.subr.bf16.mxu1 %v6752_v56  ;;  %v6912_v56 = vld [vmem:[#allocation8 + $0x43c] ss:$12 sps:$4 sm:$0xff]  }
 0x16d   :  { %3571 = vmatpush1.bf16.msra.mxu0 %v6895_v44  ;;  %v6830_v44 = vld [vmem:[#allocation5 + $0x50c] ss:$48 sps:$4 sm:$0xff]  }
 0x16e   :  { %3572 = vmatprep.subr.bf16.mxu0 %v6902_v46  ;;  %v6833_v46 = vld [vmem:[#allocation5 + $0x56c] ss:$48 sps:$4 sm:$0xff]  }
 0x16f   :  { %2207 = vmatpush1.bf16.msra.mxu1 %v6750_v57  ;;  %v6800_v57 = vld [vmem:[#allocation5 + $0x14c] ss:$48 sps:$4 sm:$0xff]  }
 0x170   :  { %2208 = vmatprep.subr.bf16.mxu1 %v6755_v58  ;;  %v6910_v58 = vld [vmem:[#allocation8 + $0x438] ss:$12 sps:$4 sm:$0xff]  }
 0x171   :  { %3573 = vmatpush1.bf16.msra.mxu0 %v6900_v53  ;;  %v6836_v53 = vld [vmem:[#allocation5 + $0x5cc] ss:$48 sps:$4 sm:$0xff]  }
 0x172   :  { %3574 = vmatprep.subr.bf16.mxu0 %v6907_v50  ;;  %v6839_v50 = vld [vmem:[#allocation5 + $0x62c] ss:$48 sps:$4 sm:$0xff]  }
 0x173   :  { %2209 = vmatpush1.bf16.msra.mxu1 %v6753_v59  ;;  %v7683_v59 = vld [vmem:[#allocation2 + $0x20] ss:$0 sps:$4 sm:$0x33]  }
 0x174   :  { %2210 = vmatprep.subr.bf16.mxu1 %v6758_v60  ;;  %v6798_v60 = vld [vmem:[#allocation5 + $0x148] ss:$48 sps:$4 sm:$0xff]  }
 0x175   :  { %3575 = vmatpush1.bf16.msra.mxu0 %v6905_v54  ;;  %v6842_v54 = vld [vmem:[#allocation5 + $0x68c] ss:$48 sps:$4 sm:$0xff]  }
 0x176   :  { %3576 = vmatprep.subr.bf16.mxu0 %v6912_v56  ;;  %v6845_v56 = vld [vmem:[#allocation5 + $0x6ec] ss:$48 sps:$4 sm:$0xff]  }
 0x177   :  { %2211 = vmatpush1.bf16.msra.mxu1 %v6756_v62  ;;  %v6803_v62 = vld [vmem:[#allocation5 + $0x1ac] ss:$48 sps:$4 sm:$0xff]  }
 0x178   :  { %2212 = vmatprep.subr.bf16.mxu1 %v6761_v63  ;;  %v6915_v63 = vld [vmem:[#allocation8 + $0x450] ss:$12 sps:$4 sm:$0xff]  }
 0x179   :  { %3577 = vmatpush1.bf16.msra.mxu0 %v6910_v58  ;;  %v6848_v58 = vld [vmem:[#allocation5 + $0x74c] ss:$48 sps:$4 sm:$0xff]  }
 0x17a   :  { %3578 = vmatprep.subr.bf16.mxu0 %v6917_v61  ;;  %v6851_v61 = vld [vmem:[#allocation5 + $0x7ac] ss:$48 sps:$4 sm:$0xff]  }
 0x17b   :  { %2213 = vmatpush1.bf16.msra.mxu1 %v6759_v3  ;;  %v6806_v3 = vld [vmem:[#allocation5 + $0x20c] ss:$48 sps:$4 sm:$0xff]  }
 0x17c   :  { %2214 = vmatprep.subr.bf16.mxu1 %v6764_v4  ;;  %v6920_v4 = vld [vmem:[#allocation8 + $0x468] ss:$12 sps:$4 sm:$0xff]  }
 0x17d   :  { %3579 = vmatpush1.bf16.msra.mxu0 %v6915_v63  ;;  %v6863_v63 = vld [vmem:[#allocation5 + $0x86c] ss:$48 sps:$4 sm:$0xff]  }
 0x17e   :  { %3580 = vmatprep.subr.bf16.mxu0 %v6922_v2  ;;  %v6869_v2 = vld [vmem:[#allocation5 + $0x8cc] ss:$48 sps:$4 sm:$0xff]  }
 0x17f   :  { %2215 = vmatpush1.bf16.msra.mxu1 %v6762_v7 }
 0x180   :  { %2235 = vmatprep.subr.bf16.mxu1 %v6767_v8 }
 0x181   :  { %3581 = vmatpush1.bf16.msra.mxu0 %v6920_v4  ;;  %v6889_v4 = vld [vmem:[#allocation8 + $0x308] ss:$12 sps:$4 sm:$0xff]  }
 0x182   :  { %2217 = vmatmul.mubr.bf16.vlgmr.msra.gmra.mrb[16].mxu1 %v7634_v9 }
 0x183   :  { %2236 = vmatpush1.bf16.msra.mxu1 %v6765_v11  ;;  %2226 = vmatprep.mubr.bf16.mxu1 %v7636_v13 }
 0x184   :  { %2237 = vmatprep.subr.bf16.mxu1 %v6770_v12 }
 0x187   :  { %2238 = vmatpush1.bf16.msra.mxu1 %v6768_v16 }
 0x188   :  { %2239 = vmatprep.subr.bf16.mxu1 %v6773_v17  ;;  %v6812_v17 = vld [vmem:[#allocation5 + $0x2cc] ss:$48 sps:$4 sm:$0xff]  }
 0x18a   :  { %2227 = vmatmul.mubr.bf16.gmra.mrb[20].mxu1 %v7642_v19 }
 0x18b   :  { %2240 = vmatpush1.bf16.msra.mxu1 %v6771_v23  ;;  %2267 = vmatprep.mubr.bf16.mxu1 %v7490_v0  ;;  %v6810_v23 = vld [vmem:[#allocation5 + $0x2c8] ss:$48 sps:$4 sm:$0xff]  }
 0x18c   :  { %2241 = vmatprep.subr.bf16.mxu1 %v6776_v24  ;;  %v6815_v24 = vld [vmem:[#allocation5 + $0x32c] ss:$48 sps:$4 sm:$0xff]  }
 0x18f   :  { %2242 = vmatpush1.bf16.msra.mxu1 %v6774_v25 }
 0x190   :  { %2243 = vmatprep.subr.bf16.mxu1 %v6779_v28 }
 0x193   :  { %2244 = vmatpush1.bf16.msra.mxu1 %v6777_v32  ;;  %v6813_v32 = vld [vmem:[#allocation5 + $0x328] ss:$48 sps:$4 sm:$0xff]  }
 0x194   :  { %2245 = vmatprep.subr.bf16.mxu1 %v6782_v33 }
 0x197   :  { %2246 = vmatpush1.bf16.msra.mxu1 %v6780_v35  ;;  %v6818_v35 = vld [vmem:[#allocation5 + $0x38c] ss:$48 sps:$4 sm:$0xff]  }
 0x198   :  { %2247 = vmatprep.subr.bf16.mxu1 %v6785_v36 }
 0x19b   :  { %2248 = vmatpush1.bf16.msra.mxu1 %v6783_v37  ;;  %v6816_v37 = vld [vmem:[#allocation5 + $0x388] ss:$48 sps:$4 sm:$0xff]  }
 0x19c   :  { %2249 = vmatprep.subr.bf16.mxu1 %v6788_v39  ;;  %v6819_v39 = vld [vmem:[#allocation5 + $0x3e8] ss:$48 sps:$4 sm:$0xff]  }
 0x19f   :  { %2250 = vmatpush1.bf16.msra.mxu1 %v6786_v41  ;;  %v6822_v41 = vld [vmem:[#allocation5 + $0x448] ss:$48 sps:$4 sm:$0xff]  }
 0x1a0   :  { %2388 = vmatprep.subr.bf16.mxu1 %v6791_v42  ;;  %v6825_v42 = vld [vmem:[#allocation5 + $0x4a8] ss:$48 sps:$4 sm:$0xff]  }
 0x1a2   :  { %2268 = vmatmul.mubr.bf16.vlgmr.msra.gmra.mrb[16].mxu1 %v7679_v48 }
 0x1a3   :  { %2389 = vmatpush1.bf16.msra.mxu1 %v6789_v45  ;;  %2277 = vmatprep.mubr.bf16.mxu1 %v7490_v0  ;;  %v6828_v45 = vld [vmem:[#allocation5 + $0x508] ss:$48 sps:$4 sm:$0xff]  }
 0x1a4   :  { %2390 = vmatprep.subr.bf16.mxu1 %v6794_v47  ;;  %v6831_v47 = vld [vmem:[#allocation5 + $0x568] ss:$48 sps:$4 sm:$0xff]  }
 0x1a7   :  { %2391 = vmatpush1.bf16.msra.mxu1 %v6792_v49  ;;  %v6834_v49 = vld [vmem:[#allocation5 + $0x5c8] ss:$48 sps:$4 sm:$0xff]  }
 0x1a8   :  { %2392 = vmatprep.subr.bf16.mxu1 %v6797_v52  ;;  %v6837_v52 = vld [vmem:[#allocation5 + $0x628] ss:$48 sps:$4 sm:$0xff]  }
 0x1aa   :  { %2278 = vmatmul.mubr.bf16.gmra.mrb[20].mxu1 %v7683_v59 }
 0x1ab   :  { %2393 = vmatpush1.bf16.msra.mxu1 %v6795_v55  ;;  %2420 = vmatprep.mubr.bf16.mxu1 %v7627_v51  ;;  %v6807_v51 = vld [vmem:[#allocation5 + $0x268] ss:$48 sps:$4 sm:$0xff]  }
 0x1ac   :  { %2394 = vmatprep.subr.bf16.mxu1 %v6800_v57  ;;  %v6840_v55 = vld [vmem:[#allocation5 + $0x688] ss:$48 sps:$4 sm:$0xff]  }
 0x1ad   :  { %v6843_v57 = vld [vmem:[#allocation5 + $0x6e8] ss:$48 sps:$4 sm:$0xff]  }
 0x1af   :  { %2395 = vmatpush1.bf16.msra.mxu1 %v6798_v60  ;;  %v6846_v60 = vld [vmem:[#allocation5 + $0x748] ss:$48 sps:$4 sm:$0xff]  }
 0x1b0   :  { %2396 = vmatprep.subr.bf16.mxu1 %v6803_v62  ;;  %v6857_v62 = vld [vmem:[#allocation5 + $0x80c] ss:$48 sps:$4 sm:$0xff]  }
 0x1b3   :  { %2397 = vmatpush1.bf16.msra.mxu1 %v6801_v1  ;;  %v6861_v1 = vld [vmem:[#allocation5 + $0x868] ss:$48 sps:$4 sm:$0xff]  }
 0x1b4   :  { %2398 = vmatprep.subr.bf16.mxu1 %v6806_v3  ;;  %v6888_v3 = vld [vmem:[#allocation8 + $0x3c8] ss:$12 sps:$4 sm:$0xff]  }
 0x1b5   :  { %v7687_v7 = vpop.f32.mrb[0].mxu1  ;;  %v7689_v8 = vpop.f32.mrb[0].mxu0 }
 0x1b6   :  { %v2490_v10 = vmax.f32 %v7687_v7, %v7689_v8  ;;  %v7693_v11 = vpop.f32.mrb[1].mxu1  ;;  %v7695_v12 = vpop.f32.mrb[1].mxu0  ;;  %v6923_v8 = vld [vmem:[#allocation8 + $0x470] ss:$12 sps:$4 sm:$0xff]  }
 0x1b7   :  { %v2491_v14 = vmax.f32 %v7693_v11, %v7695_v12  ;;  %v7699_v15 = vpop.f32.mrb[2].mxu1  ;;  %v7701_v16 = vpop.f32.mrb[2].mxu0  ;;  %2399 = vmatpush1.bf16.msra.mxu1 %v6804_v5  ;;  %v6893_v5 = vld [vmem:[#allocation8 + $0x3e0] ss:$12 sps:$4 sm:$0xff]  }
 0x1b8   :  { %v2494_v18 = vmax.f32 %v7699_v15, %v7701_v16  ;;  %v7705_v20 = vpop.f32.mrb[3].mxu1  ;;  %v7707_v21 = vpop.f32.mrb[3].mxu0  ;;  %2400 = vmatprep.subr.bf16.mxu1 %v6809_v6  ;;  %v6927_v6 = vld [vmem:[#allocation8 + $0x484] ss:$12 sps:$4 sm:$0xff]   ;;  %v6952_v15 = vld [vmem:[#allocation8 + $0x548] ss:$12 sps:$4 sm:$0xff]  }
 0x1b9   :  { %v2495_v22 = vmax.f32 %v7705_v20, %v7707_v21  ;;  %3601 = vmatprep.subr.bf16.mxu0 %v6927_v6 }
 0x1bb   :  { %2401 = vmatpush1.bf16.msra.mxu1 %v6807_v51  ;;  %v6894_v51 = vld [vmem:[#allocation8 + $0x320] ss:$12 sps:$4 sm:$0xff]  }
 0x1bc   :  { %2402 = vmatprep.subr.bf16.mxu1 %v6812_v17  ;;  %v6898_v17 = vld [vmem:[#allocation8 + $0x3f8] ss:$12 sps:$4 sm:$0xff]  }
 0x1bd   :  { %v7711_v25 = vpop.f32.mrb[4].mxu1  ;;  %v7713_v26 = vpop.f32.mrb[4].mxu0 }
 0x1be   :  { %v2498_v27 = vmax.f32 %v7711_v25, %v7713_v26  ;;  %v7717_v28 = vpop.f32.mrb[5].mxu1  ;;  %v7719_v29 = vpop.f32.mrb[5].mxu0 }
 0x1bf   :  { %v2499_v30 = vmax.f32 %v7717_v28, %v7719_v29  ;;  %v1977_v31 = vpop.f32.mrb[6].mxu1  ;;  %2403 = vmatpush1.bf16.msra.mxu1 %v6810_v23  ;;  %v2181_v33 = vpop.f32.mrb[6].mxu0  ;;  %v6899_v23 = vld [vmem:[#allocation8 + $0x338] ss:$12 sps:$4 sm:$0xff]  }
 0x1c0   :  { %v1978_v34 = vpop.f32.mrb[7].mxu1  ;;  %2404 = vmatprep.subr.bf16.mxu1 %v6815_v24  ;;  %v2182_v36 = vpop.f32.mrb[7].mxu0  ;;  %v2516_v24 = vlaneseq  ;;  %v6903_v31 = vld [vmem:[#allocation8 + $0x410] ss:$12 sps:$4 sm:$0xff]  }
 0x1c1   :  { %v6909_v34 = vld [vmem:[#allocation8 + $0x368] ss:$12 sps:$4 sm:$0xff]   ;;  %v7733_v36 = vld [vmem:[#allocation7] sm:$0xf] }
 0x1c2   :  { %v7730_v33 = vshrl.u32 %v2516_v24, 7 }
 0x1c3   :  { %2405 = vmatpush1.bf16.msra.mxu1 %v6813_v32  ;;  %v6904_v32 = vld [vmem:[#allocation8 + $0x350] ss:$12 sps:$4 sm:$0xff]  }
 0x1c4   :  { %2406 = vmatprep.subr.bf16.mxu1 %v6818_v35  ;;  %v6913_v35 = vld [vmem:[#allocation8 + $0x440] ss:$12 sps:$4 sm:$0xff]  }
 0x1c7   :  { %2407 = vmatpush1.bf16.msra.mxu1 %v6816_v37  ;;  %v2522_v37 = vsub.s32 1, %v7730_v33 }
 0x1c8   :  { %2408 = vmatprep.subr.bf16.mxu1 %v6821_v38  ;;  %v6914_v38 = vld [vmem:[#allocation8 + $0x380] ss:$12 sps:$4 sm:$0xff]  }
 0x1cb   :  { %2409 = vmatpush1.bf16.msra.mxu1 %v6819_v39  ;;  %v6918_v39 = vld [vmem:[#allocation8 + $0x458] ss:$12 sps:$4 sm:$0xff]  }
 0x1cc   :  { %2410 = vmatprep.subr.bf16.mxu1 %v6824_v40 }
 0x1cf   :  { %2411 = vmatpush1.bf16.msra.mxu1 %v6822_v41 }
 0x1d0   :  { %2412 = vmatprep.subr.bf16.mxu1 %v6827_v43  ;;  %v2523_v43 = vrot.slane %v7733_v36, %v2522_v37 }
 0x1d3   :  { %2413 = vmatpush1.bf16.msra.mxu1 %v6825_v42 }
 0x1d4   :  { %2414 = vmatprep.subr.bf16.mxu1 %v6830_v44 }
 0x1d7   :  { %2415 = vmatpush1.bf16.msra.mxu1 %v6828_v45 }
 0x1d8   :  { %2416 = vmatprep.subr.bf16.mxu1 %v6833_v46 }
 0x1db   :  { %2417 = vmatpush1.bf16.msra.mxu1 %v6831_v47 }
 0x1dc   :  { %2418 = vmatprep.subr.bf16.mxu1 %v6836_v53 }
 0x1df   :  { %2419 = vmatpush1.bf16.msra.mxu1 %v6834_v49  ;;  %v6919_v49 = vld [vmem:[#allocation8 + $0x398] ss:$12 sps:$4 sm:$0xff]  }
 0x1e0   :  { %2439 = vmatprep.subr.bf16.mxu1 %v6839_v50 }
 0x1e2   :  { %2421 = vmatmul.mubr.bf16.vlgmr.msra.gmra.mrb[24].mxu1 %v7634_v9  ;;  %v6849_v9 = vld [vmem:[#allocation5 + $0x7a8] ss:$48 sps:$4 sm:$0xff]  }
 0x1e3   :  { %2440 = vmatpush1.bf16.msra.mxu1 %v6837_v52  ;;  %2430 = vmatprep.mubr.bf16.mxu1 %v7636_v13  ;;  %v6855_v13 = vld [vmem:[#allocation5 + $0x808] ss:$48 sps:$4 sm:$0xff]  }
 0x1e4   :  { %2441 = vmatprep.subr.bf16.mxu1 %v6842_v54 }
 0x1e7   :  { %2442 = vmatpush1.bf16.msra.mxu1 %v6840_v55 }
 0x1e8   :  { %2443 = vmatprep.subr.bf16.mxu1 %v6845_v56 }
 0x1ea   :  { %2431 = vmatmul.mubr.bf16.gmra.mrb[28].mxu1 %v7642_v19  ;;  %v6867_v19 = vld [vmem:[#allocation5 + $0x8c8] ss:$48 sps:$4 sm:$0xff]  }
 0x1eb   :  { %2444 = vmatpush1.bf16.msra.mxu1 %v6843_v57  ;;  %2471 = vmatprep.mubr.bf16.mxu1 %v7490_v0  ;;  %v6924_v57 = vld [vmem:[#allocation8 + $0x3b0] ss:$12 sps:$4 sm:$0xff]  }
 0x1ec   :  { %2445 = vmatprep.subr.bf16.mxu1 %v6848_v58 }
 0x1ef   :  { %2446 = vmatpush1.bf16.msra.mxu1 %v6846_v60 }
 0x1f0   :  { %2447 = vmatprep.subr.bf16.mxu1 %v6851_v61 }
 0x1f3   :  { %2448 = vmatpush1.bf16.msra.mxu1 %v6849_v9 }
 0x1f4   :  { %2449 = vmatprep.subr.bf16.mxu1 %v6857_v62 }
 0x1f7   :  { %2450 = vmatpush1.bf16.msra.mxu1 %v6855_v13 }
 0x1f8   :  { %2451 = vmatprep.subr.bf16.mxu1 %v6863_v63 }
 0x1fb   :  { %2452 = vmatpush1.bf16.msra.mxu1 %v6861_v1 }
 0x1fc   :  { %2453 = vmatprep.subr.bf16.mxu1 %v6869_v2 }
 0x1ff   :  { %2454 = vmatpush1.bf16.msra.mxu1 %v6867_v19 }
 0x200   :  { %6112 = vmatprep.subr.bf16.mxu1 %v6888_v3 }
 0x202   :  { %2472 = vmatmul.mubr.bf16.vlgmr.msra.gmra.mrb[24].mxu1 %v7679_v48  ;;  %v6908_v48 = vld [vmem:[#allocation8 + $0x428] ss:$12 sps:$4 sm:$0xff]  }
 0x203   :  { %2481 = vmatprep.mubr.bf16.mxu1 %v7490_v0  ;;  %6113 = vmatpush3.bf16.msra.mxu1 %v6889_v4  ;;  %v2518_v0 = vsub.s32 0, %v7730_v33 }
 0x204   :  { %6114 = vmatprep.subr.bf16.mxu1 %v6893_v5 }
 0x207   :  { %6115 = vmatpush3.bf16.msra.mxu1 %v6894_v51  ;;  %v6419_v51 = vpop.permute.xlu1 %6418 }
 0x208   :  { %6116 = vmatprep.subr.bf16.mxu1 %v6898_v17  ;;  %v7768_v24 = vunpack.i.h.bf16 %v6419_v51 }
 0x20a   :  { %2482 = vmatmul.mubr.bf16.gmra.mrb[28].mxu1 %v7683_v59  ;;  %v2519_v59 = vrot.slane %v7733_v36, %v2518_v0 }
 0x20b   :  { %6117 = vmatpush3.bf16.msra.mxu1 %v6899_v23 }
 0x20c   :  { %6118 = vmatprep.subr.bf16.mxu1 %v6903_v31  ;;  %v7770_v31 = vunpack.i.l.bf16 %v6419_v51 }
 0x20f   :  { %6119 = vmatpush3.bf16.msra.mxu1 %v6904_v32 }
 0x210   :  { %6120 = vmatprep.subr.bf16.mxu1 %v6908_v48 }
 0x213   :  { %6121 = vmatpush3.bf16.msra.mxu1 %v6909_v34 }
 0x214   :  { %6122 = vmatprep.subr.bf16.mxu1 %v6913_v35 }
 0x215   :  { %v7737_v40 = vpop.f32.mrb[8].mxu1  ;;  %v2371_v41 = vpop.f32.mrb[8].mxu0 }
 0x216   :  { %v2502_v42 = vmax.f32 %v2490_v10, %v2371_v41  ;;  %v7743_v44 = vpop.f32.mrb[9].mxu1  ;;  %v2373_v45 = vpop.f32.mrb[9].mxu0 }
 0x217   :  { %v2503_v46 = vmax.f32 %v2491_v14, %v2373_v45  ;;  %v7748_v47 = vpop.f32.mrb[10].mxu1  ;;  %v2375_v53 = vpop.f32.mrb[10].mxu0  ;;  %6123 = vmatpush3.bf16.msra.mxu1 %v6914_v38 }
 0x218   :  { %v2536_v50 = vadd.f32 %v2519_v59, %v2502_v42  ;;  %v2506_v52 = vmax.f32 %v2494_v18, %v2375_v53  ;;  %v7753_v54 = vpop.f32.mrb[11].mxu1  ;;  %v2377_v7 = vpop.f32.mrb[11].mxu0  ;;  %6124 = vmatprep.subr.bf16.mxu1 %v6918_v39 }
 0x219   :  { %v2537_v10 = vadd.f32 %v2523_v43, %v2503_v46  ;;  %v2507_v11 = vmax.f32 %v2495_v22, %v2377_v7  ;;  %v6953_v7 = vld [vmem:[#allocation8 + $0x488] ss:$12 sps:$4 sm:$0xff]  }
 0x21a   :  { %v2560_v12 = vmin.f32 %v2536_v50, 0.0  ;;  %v2540_v14 = vadd.f32 %v2519_v59, %v2506_v52  ;;  %vm2548_vm0 = vcmp.gt.f32.partialorder %v2536_v50, 0.0  ;;  %v6925_v52 = vld [vmem:[#allocation8 + $0x480] ss:$12 sps:$4 sm:$0xff]  }
 0x21b   :  { %v2561_v55 = vmin.f32 %v2537_v10, 0.0  ;;  %v2541_v56 = vadd.f32 %v2523_v43, %v2507_v11  ;;  %6125 = vmatpush3.bf16.msra.mxu1 %v6919_v49  ;;  %vm2549_vm1 = vcmp.gt.f32.partialorder %v2537_v10, 0.0  ;;  %v7780_v49 = vpop.permute.xlu0 %2647 }
 0x21c   :  { %v2572_v58 = vmul.f32 1.442695, %v2560_v12  ;;  %v2564_v60 = vmin.f32 %v2540_v14, 0.0  ;;  %6126 = vmatprep.subr.bf16.mxu1 %v6923_v8  ;;  %vm2552_vm2 = vcmp.gt.f32.partialorder %v2540_v14, 0.0 }
 0x21d   :  { %v2574_v16 = vmul.f32 1.442695, %v2561_v55  ;;  %v2565_v18 = vmin.f32 %v2541_v56, 0.0  ;;  %v7758_v61 = vpop.f32.mrb[12].mxu1  ;;  %v2381_v9 = vpop.f32.mrb[12].mxu0  ;;  %vm2553_vm3 = vcmp.gt.f32.partialorder %v2541_v56, 0.0 }
 0x21e   :  { %7253 = vpow2.f32 %v2572_v58  ;;  %v2580_v62 = vmul.f32 1.442695, %v2564_v60  ;;  %v2510_v20 = vmax.f32 %v2498_v27, %v2381_v9  ;;  %v7763_v21 = vpop.f32.mrb[13].mxu1  ;;  %v2383_v22 = vpop.f32.mrb[13].mxu0  ;;  %v6928_v9 = vld [vmem:[#allocation8 + $0x498] ss:$12 sps:$4 sm:$0xff]  }
 0x21f   :  { %7255 = vpow2.f32 %v2574_v16  ;;  %v2582_v13 = vmul.f32 1.442695, %v2565_v18  ;;  %v2511_v63 = vmax.f32 %v2499_v30, %v2383_v22  ;;  %v2079_v1 = vpop.f32.mrb[14].mxu1  ;;  %6127 = vmatpush3.bf16.msra.mxu1 %v6924_v57  ;;  %v2385_v2 = vpop.f32.mrb[14].mxu0  ;;  %v6933_v22 = vld [vmem:[#allocation8 + $0x4b4] ss:$12 sps:$4 sm:$0xff]  }
 0x220   :  { %7257 = vpow2.f32 %v2580_v62  ;;  %v2544_v19 = vadd.f32 %v2519_v59, %v2510_v20  ;;  %v2080_v3 = vpop.f32.mrb[15].mxu1  ;;  %v2386_v4 = vpop.f32.mrb[15].mxu0  ;;  %6140 = vmatprep.subr.bf16.mxu1 %v6952_v15 }
 0x221   :  { %7259 = vpow2.f32 %v2582_v13  ;;  %v2545_v25 = vadd.f32 %v2523_v43, %v2511_v63  ;;  %v6931_v3 = vld [vmem:[#allocation8 + $0x4b0] ss:$12 sps:$4 sm:$0xff]  }
 0x222   :  { %v2568_v26 = vmin.f32 %v2544_v19, 0.0  ;;  %vm2556_vm4 = vcmp.gt.f32.partialorder %v2544_v19, 0.0 }
 0x223   :  { %v2569_v27 = vmin.f32 %v2545_v25, 0.0  ;;  %vm2557_vm5 = vcmp.gt.f32.partialorder %v2545_v25, 0.0 }
 0x224   :  { %v2588_v5 = vmul.f32 1.442695, %v2568_v26  ;;  %v6936_v26 = vld [vmem:[#allocation8 + $0x4cc] ss:$12 sps:$4 sm:$0xff]  }
 0x225   :  { %v2590_v6 = vmul.f32 1.442695, %v2569_v27 }
 0x226   :  { %7261 = vpow2.f32 %v2588_v5 }
 0x227   :  { %7263 = vpow2.f32 %v2590_v6 }
 0x228   :  { %v7254_v17 = vpop.eup %7253 }
 0x229   :  { %v7256_v28 = vpop.eup %7255  ;;  %v5796_v29 = vadd.f32 -1.0, %v7254_v17 }
 0x22a   :  { %v7258_v30 = vpop.eup %7257  ;;  %v5797_v23 = vadd.f32 -1.0, %v7256_v28 }
 0x22b   :  { %v7260_v32 = vpop.eup %7259  ;;  %v2608_v48 = vsel %vm2548_vm0, %v2536_v50, %v5796_v29  ;;  %v5800_v34 = vadd.f32 -1.0, %v7258_v30 }
 0x22c   :  { %v2609_v0 = vsel %vm2549_vm1, %v2537_v10, %v5797_v23  ;;  %v5801_v35 = vadd.f32 -1.0, %v7260_v32  ;;  %v2650_v59 = vmul.f32 %v7770_v31, %v2608_v48  ;;  %v6930_v10 = vld [vmem:[#allocation8 + $0x49c] ss:$12 sps:$4 sm:$0xff]   ;;  %vm2739_vm1 = vcmask 1040384  }
 0x22d   :  { %v2612_v37 = vsel %vm2552_vm2, %v2540_v14, %v5800_v34  ;;  %v2651_v41 = vmul.f32 %v7770_v31, %v2609_v0  ;;  %v6934_v34 = vld [vmem:[#allocation8 + $0x4c8] ss:$12 sps:$4 sm:$0xff]   ;;  %vm7865_vm2 = vmand %vm2739_vm1, %vm2670_vm9 }
 0x22e   :  { %v2613_v38 = vsel %vm2553_vm3, %v2541_v56, %v5801_v35  ;;  %v2654_v39 = vmul.f32 %v7768_v24, %v2612_v37  ;;  %v6939_v37 = vld [vmem:[#allocation8 + $0x4e4] ss:$12 sps:$4 sm:$0xff]  }
 0x22f   :  { %v2655_v43 = vmul.f32 %v7768_v24, %v2613_v38 }
 0x230   :  { %v7262_v42 = vpop.eup %7261  ;;  %v7776_v45 = vpack.c.bf16 %v2654_v39, %v2650_v59  ;;  %v6937_v39 = vld [vmem:[#allocation8 + $0x4e0] ss:$12 sps:$4 sm:$0xff]  }
 0x231   :  { %v7264_v46 = vpop.eup %7263  ;;  %v7778_v53 = vpack.c.bf16 %v2655_v43, %v2651_v41  ;;  %v5804_v50 = vadd.f32 -1.0, %v7262_v42  ;;  %v6942_v41 = vld [vmem:[#allocation8 + $0x4fc] ss:$12 sps:$4 sm:$0xff]   ;;  %v6940_v43 = vld [vmem:[#allocation8 + $0x4f8] ss:$12 sps:$4 sm:$0xff]  }
 0x232   :  { %v5805_v8 = vadd.f32 -1.0, %v7264_v46  ;;  %v2675_v11 = vshll.u32 %v7776_v45, 16  ;;  %v2672_v57 = vshrl.u32 %v7776_v45, 16  ;;  %v6945_v42 = vld [vmem:[#allocation8 + $0x514] ss:$12 sps:$4 sm:$0xff]  }
 0x233   :  { %v2616_v12 = vsel %vm2556_vm4, %v2544_v19, %v5804_v50  ;;  %3582 = vmatprep.mubr.bf16.mxu0 %v7778_v53  ;;  %3684 = vmatprep.mubr.bf16.mxu1 %v7778_v53  ;;  %v2682_v14 = vshll.u32 %v7778_v53, 16  ;;  %v2679_v15 = vshrl.u32 %v7778_v53, 16  ;;  %v6943_v46 = vld [vmem:[#allocation8 + $0x510] ss:$12 sps:$4 sm:$0xff]   ;;  %v6948_v50 = vld [vmem:[#allocation8 + $0x52c] ss:$12 sps:$4 sm:$0xff]  }
 0x234   :  { %v2617_v55 = vsel %vm2557_vm5, %v2545_v25, %v5805_v8  ;;  %v2658_v56 = vmul.f32 %v7780_v49, %v2616_v12  ;;  %3583 = vmatmul.mubr.bf16.vlgmr.msra.gmra.mrb[16].mxu0 %v7776_v45  ;;  %3685 = vmatmul.mubr.bf16.vlgmr.msra.gmra.mrb[32].mxu1 %v7776_v45  ;;  %v2746_v58 = vrot.slane %v2675_v11, 1  ;;  %v7802_v51 = vrot.slane %v2672_v57, 7  ;;  %v6949_v8 = vld [vmem:[#allocation8 + $0x540] ss:$12 sps:$4 sm:$0xff]  }
 0x235   :  { %v2659_v60 = vmul.f32 %v7780_v49, %v2617_v55  ;;  %3602 = vmatpush1.bf16.msra.mxu0 %v6925_v52  ;;  %6141 = vmatpush3.bf16.msra.mxu1 %v6953_v7  ;;  %v2750_v16 = vrot.slane %v2682_v14, 1  ;;  %v7807_v30 = vrot.slane %v2679_v15, 7  ;;  %v6946_v52 = vld [vmem:[#allocation8 + $0x528] ss:$12 sps:$4 sm:$0xff]   ;;  %v6951_v7 = vld [vmem:[#allocation8 + $0x544] ss:$12 sps:$4 sm:$0xff]  }
 0x236   :  { %v2666_v18 = vpack.c.bf16 %v2658_v56, %v2658_v56  ;;  %3603 = vmatprep.subr.bf16.mxu0 %v6930_v10  ;;  %v2747_v62 = vor.u32 %v2746_v58, %v2672_v57  ;;  %v6956_v10 = vld [vmem:[#allocation8 + $0x55c] ss:$12 sps:$4 sm:$0xff]   ;;  %v6957_v12 = vld [vmem:[#allocation8 + $0x560] ss:$12 sps:$4 sm:$0xff]   ;;  %v6954_v55 = vld [vmem:[#allocation8 + $0x558] ss:$12 sps:$4 sm:$0xff]  }
 0x237   :  { %v2667_v20 = vpack.c.bf16 %v2659_v60, %v2659_v60  ;;  %v2751_v13 = vor.u32 %v2750_v16, %v2679_v15  ;;  %v6958_v56 = vld [vmem:[#allocation8 + $0x4a0] ss:$12 sps:$4 sm:$0xff]   ;;  %6142 = vmatprep.subr.bf16.mxu1 %v6957_v12  ;;  %v6962_v58 = vld [vmem:[#allocation8 + $0x578] ss:$12 sps:$4 sm:$0xff]   ;;  %v6959_v60 = vld [vmem:[#allocation8 + $0x570] ss:$12 sps:$4 sm:$0xff]  }
 0x238   :  { %v2700_v63 = vshrl.u32 %v2666_v18, 16  ;;  %v2703_v1 = vshll.u32 %v2666_v18, 16  ;;  %v6961_v57 = vld [vmem:[#allocation8 + $0x574] ss:$12 sps:$4 sm:$0xff]   ;;  %v6963_v15 = vld [vmem:[#allocation8 + $0x4b8] ss:$12 sps:$4 sm:$0xff]  }
 0x239   :  { %3592 = vmatprep.mubr.bf16.mxu0 %v2667_v20  ;;  %3692 = vmatprep.mubr.bf16.mxu1 %v2667_v20  ;;  %v2708_v2 = vshrl.u32 %v2667_v20, 16  ;;  %v2711_v19 = vshll.u32 %v2667_v20, 16  ;;  %v6966_v16 = vld [vmem:[#allocation8 + $0x58c] ss:$12 sps:$4 sm:$0xff]  }
 0x23a   :  { %3604 = vmatpush1.bf16.msra.mxu0 %v6928_v9  ;;  %v2702_v4 = vrot.slane %v2700_v63, 7  ;;  %v2748_v25 = vrot.slane %v2703_v1, 1  ;;  %6143 = vmatpush3.bf16.msra.mxu1 %v6958_v56  ;;  %v6964_v9 = vld [vmem:[#allocation8 + $0x588] ss:$12 sps:$4 sm:$0xff]  }
 0x23b   :  { %3605 = vmatprep.subr.bf16.mxu0 %v6933_v22  ;;  %v2710_v27 = vrot.slane %v2708_v2, 7  ;;  %v2752_v5 = vrot.slane %v2711_v19, 1  ;;  %6144 = vmatprep.subr.bf16.mxu1 %v6962_v58  ;;  %v6972_v22 = vld [vmem:[#allocation8 + $0x5a8] ss:$12 sps:$4 sm:$0xff]  }
 0x23c   :  { %3593 = vmatmul.mubr.bf16.gmra.mrb[20].mxu0 %v2666_v18  ;;  %3693 = vmatmul.mubr.bf16.gmra.mrb[36].mxu1 %v2666_v18  ;;  %v2705_v17 = vor.u32 %v2703_v1, %v2702_v4  ;;  %v7805_v28 = vsel %vm2745_vm8, %v2747_v62, %v2748_v25  ;;  %v2762_v29 = vor.u32 %v2748_v25, %v2700_v63  ;;  %v6968_v62 = vld [vmem:[#allocation8 + $0x4d0] ss:$12 sps:$4 sm:$0xff]   ;;  %v6973_v63 = vld [vmem:[#allocation8 + $0x4e8] ss:$12 sps:$4 sm:$0xff]   ;;  %v6982_v25 = vld [vmem:[#allocation8 + $0x5d8] ss:$12 sps:$4 sm:$0xff]  }
 0x23d   :  { %v2713_v23 = vor.u32 %v2711_v19, %v2710_v27  ;;  %v7810_v32 = vsel %vm2745_vm8, %v2751_v13, %v2752_v5  ;;  %v2763_v48 = vor.u32 %v2752_v5, %v2708_v2  ;;  %v6969_v13 = vld [vmem:[#allocation8 + $0x5a0] ss:$12 sps:$4 sm:$0xff]   ;;  %v6976_v1 = vld [vmem:[#allocation8 + $0x5bc] ss:$12 sps:$4 sm:$0xff]   ;;  %v6974_v19 = vld [vmem:[#allocation8 + $0x5b8] ss:$12 sps:$4 sm:$0xff]  }
 0x23e   :  { %3606 = vmatpush1.bf16.msra.mxu0 %v6931_v3  ;;  %v7814_v0 = vsel %vm2670_vm9, %v7802_v51, %v2705_v17  ;;  %v7818_v35 = vsel %vm7798_vm10, %v2762_v29, %v2666_v18  ;;  %6145 = vmatpush3.bf16.msra.mxu1 %v6963_v15  ;;  %v6967_v18 = vld [vmem:[#allocation8 + $0x590] ss:$12 sps:$4 sm:$0xff]   ;;  %v6977_v2 = vld [vmem:[#allocation8 + $0x5c0] ss:$12 sps:$4 sm:$0xff]   ;;  %v6983_v27 = vld [vmem:[#allocation8 + $0x518] ss:$12 sps:$4 sm:$0xff]  }
 0x23f   :  { %3607 = vmatprep.subr.bf16.mxu0 %v6936_v26  ;;  %v7822_v38 = vsel %vm2670_vm9, %v7807_v30, %v2713_v23  ;;  %v7826_v59 = vsel %vm7798_vm10, %v2763_v48, %v2667_v20  ;;  %6146 = vmatprep.subr.bf16.mxu1 %v6967_v18  ;;  %v6971_v20 = vld [vmem:[#allocation8 + $0x5a4] ss:$12 sps:$4 sm:$0xff]   ;;  %v6978_v3 = vld [vmem:[#allocation8 + $0x500] ss:$12 sps:$4 sm:$0xff]   ;;  %v6984_v29 = vld [vmem:[#allocation8 + $0x5e8] ss:$12 sps:$4 sm:$0xff]  }
 0x240   :  { %v6981_v4 = vld [vmem:[#allocation8 + $0x5d4] ss:$12 sps:$4 sm:$0xff]   ;;  %v6979_v26 = vld [vmem:[#allocation8 + $0x5d0] ss:$12 sps:$4 sm:$0xff]   ;;  %v6986_v5 = vld [vmem:[#allocation8 + $0x5ec] ss:$12 sps:$4 sm:$0xff]  }
 0x241   :  { %v6987_v17 = vld [vmem:[#allocation8 + $0x5f0] ss:$12 sps:$4 sm:$0xff]  }
 0x242   :  { %3608 = vmatpush1.bf16.msra.mxu0 %v6934_v34  ;;  %6147 = vmatpush3.bf16.msra.mxu1 %v6968_v62  ;;  %v6988_v23 = vld [vmem:[#allocation8 + $0x530] ss:$12 sps:$4 sm:$0xff]   ;;  %v6992_v34 = vld [vmem:[#allocation8 + $0xc8] ss:$12 sps:$4 sm:$0xff]  }
 0x243   :  { %3609 = vmatprep.subr.bf16.mxu0 %v6939_v37  ;;  %6148 = vmatprep.subr.bf16.mxu1 %v6972_v22  ;;  %v6991_v48 = vld [vmem:[#allocation8 + $0x4] ss:$12 sps:$4 sm:$0xff]  }
 0x246   :  { %3610 = vmatpush1.bf16.msra.mxu0 %v6937_v39  ;;  %6149 = vmatpush3.bf16.msra.mxu1 %v6973_v63 }
 0x247   :  { %3611 = vmatprep.subr.bf16.mxu0 %v6942_v41  ;;  %6150 = vmatprep.subr.bf16.mxu1 %v6977_v2 }
 0x24a   :  { %3612 = vmatpush1.bf16.msra.mxu0 %v6940_v43  ;;  %6151 = vmatpush3.bf16.msra.mxu1 %v6978_v3 }
 0x24b   :  { %3613 = vmatprep.subr.bf16.mxu0 %v6945_v42  ;;  %6152 = vmatprep.subr.bf16.mxu1 %v6982_v25 }
 0x24e   :  { %3614 = vmatpush1.bf16.msra.mxu0 %v6943_v46  ;;  %6153 = vmatpush3.bf16.msra.mxu1 %v6983_v27 }
 0x24f   :  { %3615 = vmatprep.subr.bf16.mxu0 %v6948_v50  ;;  %6154 = vmatprep.subr.bf16.mxu1 %v6987_v17 }
 0x252   :  { %3616 = vmatpush1.bf16.msra.mxu0 %v6946_v52  ;;  %6155 = vmatpush3.bf16.msra.mxu1 %v6988_v23 }
 0x253   :  { %3617 = vmatprep.subr.bf16.mxu0 %v6951_v7  ;;  %6168 = vmatprep.subr.bf16.mxu1 %v6992_v34 }
 0x256   :  { %3618 = vmatpush1.bf16.msra.mxu0 %v6949_v8 }
 0x257   :  { %3619 = vmatprep.subr.bf16.mxu0 %v6956_v10 }
 0x25a   :  { %3620 = vmatpush1.bf16.msra.mxu0 %v6954_v55 }
 0x25b   :  { %3621 = vmatprep.subr.bf16.mxu0 %v6961_v57  ;;  %v2526_v57 = vsub.s32 2, %v7730_v33 }
 0x25e   :  { %3622 = vmatpush1.bf16.msra.mxu0 %v6959_v60 }
 0x25f   :  { %3623 = vmatprep.subr.bf16.mxu0 %v6966_v16 }
 0x262   :  { %3624 = vmatpush1.bf16.msra.mxu0 %v6964_v9 }
 0x263   :  { %3625 = vmatprep.subr.bf16.mxu0 %v6971_v20 }
 0x266   :  { %3626 = vmatpush1.bf16.msra.mxu0 %v6969_v13 }
 0x267   :  { %3627 = vmatprep.subr.bf16.mxu0 %v6976_v1 }
 0x26a   :  { %3628 = vmatpush1.bf16.msra.mxu0 %v6974_v19 }
 0x26b   :  { %3629 = vmatprep.subr.bf16.mxu0 %v6981_v4 }
 0x26e   :  { %3630 = vmatpush1.bf16.msra.mxu0 %v6979_v26 }
 0x26f   :  { %3631 = vmatprep.subr.bf16.mxu0 %v6986_v5 }
 0x272   :  { %3632 = vmatpush1.bf16.msra.mxu0 %v6984_v29 }
 0x273   :  { %4260 = vmatprep.subr.bf16.mxu0 %v6991_v48 }
 0x275   :  { %v2269_v37 = vpop.f32.mrb[16].mxu1 }
 0x276   :  { %v2492_v39 = vmax.f32 %v7737_v40, %v2269_v37  ;;  %v2271_v41 = vpop.f32.mrb[17].mxu1  ;;  %v2530_v40 = vsub.s32 3, %v7730_v33 }
 0x277   :  { %v2493_v43 = vmax.f32 %v7743_v44, %v2271_v41  ;;  %v2273_v42 = vpop.f32.mrb[18].mxu1  ;;  %v2527_v44 = vrot.slane %v7733_v36, %v2526_v57 }
 0x278   :  { %v2496_v46 = vmax.f32 %v7748_v47, %v2273_v42  ;;  %v2275_v50 = vpop.f32.mrb[19].mxu1  ;;  %v2531_v47 = vrot.slane %v7733_v36, %v2530_v40 }
 0x279   :  { %v2497_v52 = vmax.f32 %v7753_v54, %v2275_v50 }
 0x27d   :  { %v2279_v7 = vpop.f32.mrb[20].mxu1 }
 0x27e   :  { %v2500_v8 = vmax.f32 %v7758_v61, %v2279_v7  ;;  %v2281_v10 = vpop.f32.mrb[21].mxu1 }
 0x27f   :  { %v2501_v12 = vmax.f32 %v7763_v21, %v2281_v10  ;;  %v2283_v55 = vpop.f32.mrb[22].mxu1 }
 0x280   :  { %v2284_v56 = vpop.f32.mrb[23].mxu1 }
 0x2d5   :  { %v2473_v58 = vpop.f32.mrb[24].mxu1 }
 0x2d6   :  { %v2504_v60 = vmax.f32 %v2492_v39, %v2473_v58  ;;  %v2475_v15 = vpop.f32.mrb[25].mxu1 }
 0x2d7   :  { %v2505_v54 = vmax.f32 %v2493_v43, %v2475_v15  ;;  %v2477_v16 = vpop.f32.mrb[26].mxu1  ;;  %v6989_v15 = vld [vmem:[#allocation8] ss:$12 sps:$4 sm:$0xff]  }
 0x2d8   :  { %v2538_v18 = vadd.f32 %v2527_v44, %v2504_v60  ;;  %v2508_v61 = vmax.f32 %v2496_v46, %v2477_v16  ;;  %v2479_v9 = vpop.f32.mrb[27].mxu1 }
 0x2d9   :  { %v2539_v62 = vadd.f32 %v2531_v47, %v2505_v54  ;;  %v2509_v21 = vmax.f32 %v2497_v52, %v2479_v9  ;;  %v6996_v9 = vld [vmem:[#allocation8 + $0x1c] ss:$12 sps:$4 sm:$0xff]  }
 0x2da   :  { %v2562_v20 = vmin.f32 %v2538_v18, 0.0  ;;  %v2542_v22 = vadd.f32 %v2527_v44, %v2508_v61  ;;  %vm2550_vm11 = vcmp.gt.f32.partialorder %v2538_v18, 0.0  ;;  %v6993_v61 = vld [vmem:[#allocation8 + $0x8] ss:$12 sps:$4 sm:$0xff]  }
 0x2db   :  { %v2563_v13 = vmin.f32 %v2539_v62, 0.0  ;;  %v2543_v63 = vadd.f32 %v2531_v47, %v2509_v21  ;;  %vm2551_vm12 = vcmp.gt.f32.partialorder %v2539_v62, 0.0  ;;  %v6997_v21 = vld [vmem:[#allocation8 + $0xe0] ss:$12 sps:$4 sm:$0xff]  }
 0x2dc   :  { %v2576_v1 = vmul.f32 1.442695, %v2562_v20  ;;  %v2566_v33 = vmin.f32 %v2542_v22, 0.0  ;;  %vm2554_vm13 = vcmp.gt.f32.partialorder %v2542_v22, 0.0 }
 0x2dd   :  { %v2578_v2 = vmul.f32 1.442695, %v2563_v13  ;;  %v2567_v19 = vmin.f32 %v2543_v63, 0.0  ;;  %v2483_v3 = vpop.f32.mrb[28].mxu1  ;;  %vm2555_vm14 = vcmp.gt.f32.partialorder %v2543_v63, 0.0 }
 0x2de   :  { %7265 = vpow2.f32 %v2576_v1  ;;  %v2584_v36 = vmul.f32 1.442695, %v2566_v33  ;;  %v2512_v4 = vmax.f32 %v2500_v8, %v2483_v3  ;;  %v2485_v25 = vpop.f32.mrb[29].mxu1 }
 0x2df   :  { %7267 = vpow2.f32 %v2578_v2  ;;  %v2586_v26 = vmul.f32 1.442695, %v2567_v19  ;;  %v2513_v27 = vmax.f32 %v2501_v12, %v2485_v25  ;;  %v2487_v5 = vpop.f32.mrb[30].mxu1  ;;  %v6994_v2 = vld [vmem:[#allocation8 + $0x18] ss:$12 sps:$4 sm:$0xff]  }
 0x2e0   :  { %7269 = vpow2.f32 %v2584_v36  ;;  %v2546_v17 = vadd.f32 %v2527_v44, %v2512_v4  ;;  %v2488_v29 = vpop.f32.mrb[31].mxu1  ;;  %v6998_v19 = vld [vmem:[#allocation8 + $0x20] ss:$12 sps:$4 sm:$0xff]   ;;  %v7002_v5 = vld [vmem:[#allocation8 + $0xf8] ss:$12 sps:$4 sm:$0xff]  }
 0x2e1   :  { %7271 = vpow2.f32 %v2586_v26  ;;  %v2547_v23 = vadd.f32 %v2531_v47, %v2513_v27  ;;  %v7001_v27 = vld [vmem:[#allocation8 + $0x34] ss:$12 sps:$4 sm:$0xff]   ;;  %v7086_v29 = vld [vmem:[#allocation8 + $0x1cc] ss:$12 sps:$4 sm:$0xff]  }
 0x2e2   :  { %v2570_v48 = vmin.f32 %v2546_v17, 0.0  ;;  %vm2558_vm15 = vcmp.gt.f32.partialorder %v2546_v17, 0.0 }
 0x2e3   :  { %v2571_v34 = vmin.f32 %v2547_v23, 0.0  ;;  %vm2559_vm0 = vcmp.gt.f32.partialorder %v2547_v23, 0.0 }
 0x2e4   :  { %v2592_v37 = vmul.f32 1.442695, %v2570_v48 }
 0x2e5   :  { %v2594_v39 = vmul.f32 1.442695, %v2571_v34  ;;  %v6999_v34 = vld [vmem:[#allocation8 + $0x30] ss:$12 sps:$4 sm:$0xff]  }
 0x2e6   :  { %7273 = vpow2.f32 %v2592_v37  ;;  %v7003_v37 = vld [vmem:[#allocation8 + $0x38] ss:$12 sps:$4 sm:$0xff]  }
 0x2e7   :  { %7275 = vpow2.f32 %v2594_v39 }
 0x2e8   :  { %v7266_v41 = vpop.eup %7265 }
 0x2e9   :  { %v7268_v43 = vpop.eup %7267  ;;  %v5798_v42 = vadd.f32 -1.0, %v7266_v41 }
 0x2ea   :  { %v7270_v46 = vpop.eup %7269  ;;  %v5799_v50 = vadd.f32 -1.0, %v7268_v43 }
 0x2eb   :  { %v7272_v52 = vpop.eup %7271  ;;  %v2610_v7 = vsel %vm2550_vm11, %v2538_v18, %v5798_v42  ;;  %v5802_v8 = vadd.f32 -1.0, %v7270_v46  ;;  %v7007_v46 = vld [vmem:[#allocation8 + $0x110] ss:$12 sps:$4 sm:$0xff]  }
 0x2ec   :  { %v2611_v10 = vsel %vm2551_vm12, %v2539_v62, %v5799_v50  ;;  %v5803_v12 = vadd.f32 -1.0, %v7272_v52  ;;  %v2652_v56 = vmul.f32 %v7770_v31, %v2610_v7 }
 0x2ed   :  { %v2614_v55 = vsel %vm2554_vm13, %v2542_v22, %v5802_v8  ;;  %v2653_v44 = vmul.f32 %v7770_v31, %v2611_v10 }
 0x2ee   :  { %v2656_v57 = vmul.f32 %v7768_v24, %v2614_v55  ;;  %v2615_v40 = vsel %vm2555_vm14, %v2543_v63, %v5803_v12  ;;  %v7004_v55 = vld [vmem:[#allocation8 + $0x48] ss:$12 sps:$4 sm:$0xff]  }
 0x2ef   :  { %v2657_v58 = vmul.f32 %v7768_v24, %v2615_v40 }
 0x2f0   :  { %v7274_v47 = vpop.eup %7273  ;;  %v7842_v60 = vpack.c.bf16 %v2656_v57, %v2652_v56  ;;  %v7008_v56 = vld [vmem:[#allocation8 + $0x50] ss:$12 sps:$4 sm:$0xff]  }
 0x2f1   :  { %v7276_v54 = vpop.eup %7275  ;;  %v7844_v16 = vpack.c.bf16 %v2657_v58, %v2653_v44  ;;  %v5806_v18 = vadd.f32 -1.0, %v7274_v47  ;;  %v7011_v58 = vld [vmem:[#allocation8 + $0x64] ss:$12 sps:$4 sm:$0xff]   ;;  %v7012_v47 = vld [vmem:[#allocation8 + $0x128] ss:$12 sps:$4 sm:$0xff]  }
 0x2f2   :  { %v5807_v62 = vadd.f32 -1.0, %v7276_v54  ;;  %v2689_v20 = vshll.u32 %v7842_v60, 16  ;;  %v2686_v63 = vshrl.u32 %v7842_v60, 16 }
 0x2f3   :  { %v2618_v22 = vsel %vm2558_vm15, %v2546_v17, %v5806_v18  ;;  %3633 = vmatprep.mubr.bf16.mxu0 %v7844_v16  ;;  %3732 = vmatprep.mubr.bf16.mxu1 %v7844_v16  ;;  %v2696_v24 = vshll.u32 %v7844_v16, 16  ;;  %v2693_v3 = vshrl.u32 %v7844_v16, 16 }
 0x2f4   :  { %v2660_v31 = vmul.f32 %v7780_v49, %v2618_v22  ;;  %v2619_v13 = vsel %vm2559_vm0, %v2547_v23, %v5807_v62  ;;  %3634 = vmatmul.mubr.bf16.vlgmr.msra.gmra.mrb[16].mxu0 %v7842_v60  ;;  %3733 = vmatmul.mubr.bf16.vlgmr.msra.gmra.mrb[40].mxu1 %v7842_v60  ;;  %v2754_v1 = vrot.slane %v2689_v20, 1  ;;  %v7872_v7 = vrot.slane %v2686_v63, 7  ;;  %v7013_v62 = vld [vmem:[#allocation8 + $0x68] ss:$12 sps:$4 sm:$0xff]   ;;  %v7017_v22 = vld [vmem:[#allocation8 + $0x140] ss:$12 sps:$4 sm:$0xff]  }
 0x2f5   :  { %v2661_v33 = vmul.f32 %v7780_v49, %v2619_v13  ;;  %4261 = vmatpush1.bf16.msra.mxu0 %v6989_v15  ;;  %6169 = vmatpush3.bf16.msra.mxu1 %v6993_v61  ;;  %v2758_v36 = vrot.slane %v2696_v24, 1  ;;  %v2684_v49 = vor.u32 %v2682_v14, %v7807_v30  ;;  %v7006_v30 = vld [vmem:[#allocation8 + $0x4c] ss:$12 sps:$4 sm:$0xff]   ;;  %v7877_v57 = vrot.slane %v2693_v3, 7 }
 0x2f6   :  { %v2668_v4 = vpack.c.bf16 %v2660_v31, %v2660_v31  ;;  %4262 = vmatprep.subr.bf16.mxu0 %v6996_v9  ;;  %6170 = vmatprep.subr.bf16.mxu1 %v6997_v21  ;;  %v2755_v25 = vor.u32 %v2754_v1, %v2686_v63  ;;  %v7009_v9 = vld [vmem:[#allocation8 + $0x60] ss:$12 sps:$4 sm:$0xff]   ;;  %v7016_v21 = vld [vmem:[#allocation8 + $0x7c] ss:$12 sps:$4 sm:$0xff]   ;;  %v7014_v31 = vld [vmem:[#allocation8 + $0x78] ss:$12 sps:$4 sm:$0xff]  }
 0x2f7   :  { %v2669_v26 = vpack.c.bf16 %v2661_v33, %v2661_v33  ;;  %v2759_v17 = vor.u32 %v2758_v36, %v2693_v3  ;;  %v2742_v14 = vsel %vm7865_vm2, %v7778_v53, %v2684_v49  ;;  %v7018_v13 = vld [vmem:[#allocation8 + $0x80] ss:$12 sps:$4 sm:$0xff]   ;;  %v7022_v1 = vld [vmem:[#allocation8 + $0x158] ss:$12 sps:$4 sm:$0xff]   ;;  %v7019_v3 = vld [vmem:[#allocation8 + $0x90] ss:$12 sps:$4 sm:$0xff]  }
 0x2f8   :  { %v2716_v23 = vshrl.u32 %v2668_v4, 16  ;;  %v2719_v48 = vshll.u32 %v2668_v4, 16  ;;  %v7021_v63 = vld [vmem:[#allocation8 + $0x94] ss:$12 sps:$4 sm:$0xff]   ;;  %v7023_v36 = vld [vmem:[#allocation8 + $0x98] ss:$12 sps:$4 sm:$0xff]  }
 0x2f9   :  { %4263 = vmatpush1.bf16.msra.mxu0 %v6994_v2  ;;  %6171 = vmatpush3.bf16.msra.mxu1 %v6998_v19  ;;  %v2724_v39 = vshrl.u32 %v2669_v26, 16  ;;  %v2727_v41 = vshll.u32 %v2669_v26, 16  ;;  %v7028_v49 = vld [vmem:[#allocation8 + $0xb0] ss:$12 sps:$4 sm:$0xff]  }
 0x2fa   :  { %3643 = vmatprep.mubr.bf16.mxu0 %v2669_v26  ;;  %3740 = vmatprep.mubr.bf16.mxu1 %v2669_v26  ;;  %v2718_v43 = vrot.slane %v2716_v23, 7  ;;  %v2756_v42 = vrot.slane %v2719_v48, 1 }
 0x2fb   :  { %4264 = vmatprep.subr.bf16.mxu0 %v7001_v27  ;;  %6172 = vmatprep.subr.bf16.mxu1 %v7002_v5  ;;  %v2726_v50 = vrot.slane %v2724_v39, 7  ;;  %v2760_v52 = vrot.slane %v2727_v41, 1  ;;  %v7024_v5 = vld [vmem:[#allocation8 + $0xa8] ss:$12 sps:$4 sm:$0xff]  }
 0x2fc   :  { %3644 = vmatmul.mubr.bf16.gmra.mrb[20].mxu0 %v2668_v4  ;;  %3741 = vmatmul.mubr.bf16.gmra.mrb[44].mxu1 %v2668_v4  ;;  %v2721_v8 = vor.u32 %v2719_v48, %v2718_v43  ;;  %v7875_v10 = vsel %vm2745_vm8, %v2755_v25, %v2756_v42  ;;  %v2764_v12 = vor.u32 %v2756_v42, %v2716_v23  ;;  %v7026_v25 = vld [vmem:[#allocation8 + $0xac] ss:$12 sps:$4 sm:$0xff]   ;;  %v7032_v23 = vld [vmem:[#allocation8 + $0x248] ss:$12 sps:$4 sm:$0xff]  }
 0x2fd   :  { %4265 = vmatpush1.bf16.msra.mxu0 %v6999_v34  ;;  %6173 = vmatpush3.bf16.msra.mxu1 %v7003_v37  ;;  %v2729_v53 = vor.u32 %v2727_v41, %v2726_v50  ;;  %v7880_v40 = vsel %vm2745_vm8, %v2759_v17, %v2760_v52  ;;  %v2765_v44 = vor.u32 %v2760_v52, %v2724_v39  ;;  %v7031_v17 = vld [vmem:[#allocation8 + $0xc4] ss:$12 sps:$4 sm:$0xff]   ;;  %v7029_v43 = vld [vmem:[#allocation8 + $0xc0] ss:$12 sps:$4 sm:$0xff]  }
 0x2fe   :  { %4292 = vmatprep.mubr.bf16.mxu0 %v2742_v14  ;;  %4394 = vmatprep.mubr.bf16.mxu1 %v2742_v14  ;;  %v7884_v15 = vsel %vm2670_vm9, %v7872_v7, %v2721_v8  ;;  %v7888_v54 = vsel %vm7798_vm10, %v2764_v12, %v2668_v4  ;;  %v2677_v34 = vor.u32 %v2675_v11, %v7802_v51  ;;  %v7033_v14 = vld [vmem:[#allocation8 + $0x188] ss:$12 sps:$4 sm:$0xff]   ;;  %v7037_v50 = vld [vmem:[#allocation8 + $0x260] ss:$12 sps:$4 sm:$0xff]   ;;  %v7034_v11 = vld [vmem:[#allocation8 + $0xd8] ss:$12 sps:$4 sm:$0xff]  }
 0x2ff   :  { %4266 = vmatprep.subr.bf16.mxu0 %v7006_v30  ;;  %6174 = vmatprep.subr.bf16.mxu1 %v7007_v46  ;;  %v7892_v18 = vsel %vm2670_vm9, %v7877_v57, %v2729_v53  ;;  %v7896_v61 = vsel %vm7798_vm10, %v2765_v44, %v2669_v26  ;;  %v7027_v26 = vld [vmem:[#allocation8 + $0x170] ss:$12 sps:$4 sm:$0xff]   ;;  %v7038_v51 = vld [vmem:[#allocation8 + $0x1a0] ss:$12 sps:$4 sm:$0xff]   ;;  %v7042_v8 = vld [vmem:[#allocation8 + $0x278] ss:$12 sps:$4 sm:$0xff]   ;;  %v2698_v12 = vor.u32 %v2696_v24, %v7877_v57 }
 0x300   :  { %v7036_v30 = vld [vmem:[#allocation8 + $0xdc] ss:$12 sps:$4 sm:$0xff]   ;;  %v7910_v46 = vsel %vm7865_vm2, %v7776_v45, %v2677_v34  ;;  %v7041_v52 = vld [vmem:[#allocation8 + $0xf4] ss:$12 sps:$4 sm:$0xff]   ;;  %v7051_v57 = vld [vmem:[#allocation8 + $0x124] ss:$12 sps:$4 sm:$0xff]  }
 0x301   :  { %4267 = vmatpush1.bf16.msra.mxu0 %v7004_v55  ;;  %6175 = vmatpush3.bf16.msra.mxu1 %v7008_v56  ;;  %v7039_v45 = vld [vmem:[#allocation8 + $0xf0] ss:$12 sps:$4 sm:$0xff]   ;;  %v7043_v55 = vld [vmem:[#allocation8 + $0x1b8] ss:$12 sps:$4 sm:$0xff]   ;;  %v7921_v44 = vsel %vm7865_vm2, %v7844_v16, %v2698_v12  ;;  %v7081_v34 = vld [vmem:[#allocation8 + $0x1b4] ss:$12 sps:$4 sm:$0xff]  }
 0x302   :  { %4268 = vmatprep.subr.bf16.mxu0 %v7011_v58  ;;  %6176 = vmatprep.subr.bf16.mxu1 %v7012_v47  ;;  %v7046_v56 = vld [vmem:[#allocation8 + $0x10c] ss:$12 sps:$4 sm:$0xff]   ;;  %v7047_v53 = vld [vmem:[#allocation8 + $0x290] ss:$12 sps:$4 sm:$0xff]   ;;  %v7044_v58 = vld [vmem:[#allocation8 + $0x108] ss:$12 sps:$4 sm:$0xff]  }
 0x303   :  { %v7048_v24 = vld [vmem:[#allocation8 + $0x1d0] ss:$12 sps:$4 sm:$0xff]   ;;  %v7052_v47 = vld [vmem:[#allocation8 + $0x2a8] ss:$12 sps:$4 sm:$0xff]   ;;  %v7054_v16 = vld [vmem:[#allocation8 + $0x138] ss:$12 sps:$4 sm:$0xff]  }
 0x304   :  { %v7102_v12 = vld [vmem:[#allocation8 + $0x758] ss:$12 sps:$4 sm:$0xff]  }
 0x305   :  { %4269 = vmatpush1.bf16.msra.mxu0 %v7009_v9  ;;  %6177 = vmatpush3.bf16.msra.mxu1 %v7013_v62  ;;  %v7049_v9 = vld [vmem:[#allocation8 + $0x120] ss:$12 sps:$4 sm:$0xff]   ;;  %v7053_v62 = vld [vmem:[#allocation8 + $0x1e8] ss:$12 sps:$4 sm:$0xff]  }
 0x306   :  { %4270 = vmatprep.subr.bf16.mxu0 %v7016_v21  ;;  %6178 = vmatprep.subr.bf16.mxu1 %v7017_v22  ;;  %v7056_v21 = vld [vmem:[#allocation8 + $0x13c] ss:$12 sps:$4 sm:$0xff]   ;;  %v7057_v22 = vld [vmem:[#allocation8 + $0x2c0] ss:$12 sps:$4 sm:$0xff]  }
 0x307   :  { %v6128_v33 = vpop.f32.mrb[32].mxu1 }
 0x308   :  { %v6129_v6 = vpop.f32.mrb[33].mxu1 }
 0x309   :  { %v7898_v2 = vadd.f32 %v6129_v6, %v6128_v33  ;;  %4271 = vmatpush1.bf16.msra.mxu0 %v7014_v31  ;;  %6179 = vmatpush3.bf16.msra.mxu1 %v7018_v13  ;;  %v6131_v19 = vpop.f32.mrb[34].mxu1  ;;  %v7058_v31 = vld [vmem:[#allocation8 + $0x200] ss:$12 sps:$4 sm:$0xff]   ;;  %v7063_v33 = vld [vmem:[#allocation8 + $0x218] ss:$12 sps:$4 sm:$0xff]  }
 0x30a   :  { %v6132_v4 = vpop.f32.mrb[35].mxu1  ;;  %4272 = vmatprep.subr.bf16.mxu0 %v7021_v63  ;;  %6180 = vmatprep.subr.bf16.mxu1 %v7022_v1  ;;  %v7061_v13 = vld [vmem:[#allocation8 + $0x154] ss:$12 sps:$4 sm:$0xff]   ;;  %v7062_v63 = vld [vmem:[#allocation8 + $0x2d8] ss:$12 sps:$4 sm:$0xff]  }
 0x30b   :  { %v7900_v27 = vadd.f32 %v6132_v4, %v6131_v19  ;;  %v7059_v1 = vld [vmem:[#allocation8 + $0x150] ss:$12 sps:$4 sm:$0xff]   ;;  %v7066_v6 = vld [vmem:[#allocation8 + $0x16c] ss:$12 sps:$4 sm:$0xff]  }
 0x30c   :  { %v7067_v19 = vld [vmem:[#allocation8 + $0x2f0] ss:$12 sps:$4 sm:$0xff]  }
 0x30d   :  { %4273 = vmatpush1.bf16.msra.mxu0 %v7019_v3  ;;  %6181 = vmatpush3.bf16.msra.mxu1 %v7023_v36  ;;  %v7064_v3 = vld [vmem:[#allocation8 + $0x168] ss:$12 sps:$4 sm:$0xff]   ;;  %v7068_v36 = vld [vmem:[#allocation8 + $0x230] ss:$12 sps:$4 sm:$0xff]  }
 0x30e   :  { %4274 = vmatprep.subr.bf16.mxu0 %v7026_v25  ;;  %6182 = vmatprep.subr.bf16.mxu1 %v7027_v26  ;;  %v7071_v4 = vld [vmem:[#allocation8 + $0x184] ss:$12 sps:$4 sm:$0xff]   ;;  %v7072_v25 = vld [vmem:[#allocation8 + $0x6c8] ss:$12 sps:$4 sm:$0xff]   ;;  %v2691_v26 = vor.u32 %v2689_v20, %v7872_v7  ;;  %v7078_v7 = vld [vmem:[#allocation8 + $0x620] ss:$12 sps:$4 sm:$0xff]  }
 0x30f   :  { %v6134_v48 = vpop.f32.mrb[36].mxu1  ;;  %v7074_v20 = vld [vmem:[#allocation8 + $0x198] ss:$12 sps:$4 sm:$0xff]  }
 0x310   :  { %v6135_v37 = vpop.f32.mrb[37].mxu1 }
 0x311   :  { %v7905_v39 = vadd.f32 %v6135_v37, %v6134_v48  ;;  %4275 = vmatpush1.bf16.msra.mxu0 %v7024_v5  ;;  %6183 = vmatpush3.bf16.msra.mxu1 %v7028_v49  ;;  %v6137_v41 = vpop.f32.mrb[38].mxu1  ;;  %v7069_v5 = vld [vmem:[#allocation8 + $0x180] ss:$12 sps:$4 sm:$0xff]   ;;  %v7073_v49 = vld [vmem:[#allocation8 + $0x608] ss:$12 sps:$4 sm:$0xff]  }
 0x312   :  { %v6138_v42 = vpop.f32.mrb[39].mxu1  ;;  %4276 = vmatprep.subr.bf16.mxu0 %v7031_v17  ;;  %6196 = vmatprep.subr.bf16.mxu1 %v7032_v23  ;;  %v7076_v17 = vld [vmem:[#allocation8 + $0x19c] ss:$12 sps:$4 sm:$0xff]   ;;  %v7931_v23 = vsel %vm7865_vm2, %v7842_v60, %v2691_v26  ;;  %v7077_v48 = vld [vmem:[#allocation8 + $0x6e0] ss:$12 sps:$4 sm:$0xff]  }
 0x313   :  { %v7082_v37 = vld [vmem:[#allocation8 + $0x6f8] ss:$12 sps:$4 sm:$0xff]   ;;  %v7079_v41 = vld [vmem:[#allocation8 + $0x1b0] ss:$12 sps:$4 sm:$0xff]   ;;  %v7133_v26 = vld [vmem:[#allocation8 + $0x7e8] ss:$12 sps:$4 sm:$0xff]  }
 0x314   :  { %4395 = vmatmul.mubr.bf16.vlgmr.msra.gmra.mrb[48].mxu1 %v7910_v46  ;;  %v7083_v60 = vld [vmem:[#allocation8 + $0x638] ss:$12 sps:$4 sm:$0xff]   ;;  %v7088_v42 = vld [vmem:[#allocation8 + $0x650] ss:$12 sps:$4 sm:$0xff]  }
 0x315   :  { %4277 = vmatpush1.bf16.msra.mxu0 %v7029_v43  ;;  %4402 = vmatprep.mubr.bf16.mxu1 %v7822_v38  ;;  %v7084_v43 = vld [vmem:[#allocation8 + $0x1c8] ss:$12 sps:$4 sm:$0xff]  }
 0x316   :  { %6197 = vmatpush3.bf16.msra.mxu1 %v7033_v14  ;;  %4278 = vmatprep.subr.bf16.mxu0 %v7036_v30  ;;  %v7091_v14 = vld [vmem:[#allocation8 + $0x1e4] ss:$12 sps:$4 sm:$0xff]   ;;  %v7092_v30 = vld [vmem:[#allocation8 + $0x728] ss:$12 sps:$4 sm:$0xff]  }
 0x317   :  { %6198 = vmatprep.subr.bf16.mxu1 %v7037_v50  ;;  %v7096_v50 = vld [vmem:[#allocation8 + $0x1fc] ss:$12 sps:$4 sm:$0xff]  }
 0x319   :  { %4279 = vmatpush1.bf16.msra.mxu0 %v7034_v11  ;;  %v7097_v11 = vld [vmem:[#allocation8 + $0x740] ss:$12 sps:$4 sm:$0xff]  }
 0x31a   :  { %6199 = vmatpush3.bf16.msra.mxu1 %v7038_v51  ;;  %4280 = vmatprep.subr.bf16.mxu0 %v7041_v52  ;;  %v7094_v51 = vld [vmem:[#allocation8 + $0x1f8] ss:$12 sps:$4 sm:$0xff]   ;;  %v7098_v52 = vld [vmem:[#allocation8 + $0x680] ss:$12 sps:$4 sm:$0xff]  }
 0x31b   :  { %6200 = vmatprep.subr.bf16.mxu1 %v7042_v8  ;;  %v7101_v8 = vld [vmem:[#allocation8 + $0x214] ss:$12 sps:$4 sm:$0xff]  }
 0x31c   :  { %4403 = vmatmul.mubr.bf16.gmra.mrb[52].mxu1 %v7814_v0 }
 0x31d   :  { %4281 = vmatpush1.bf16.msra.mxu0 %v7039_v45  ;;  %4442 = vmatprep.mubr.bf16.mxu1 %v7921_v44  ;;  %v7099_v45 = vld [vmem:[#allocation8 + $0x210] ss:$12 sps:$4 sm:$0xff]  }
 0x31e   :  { %6201 = vmatpush3.bf16.msra.mxu1 %v7043_v55  ;;  %4282 = vmatprep.subr.bf16.mxu0 %v7046_v56  ;;  %v7103_v55 = vld [vmem:[#allocation8 + $0x698] ss:$12 sps:$4 sm:$0xff]  }
 0x31f   :  { %6202 = vmatprep.subr.bf16.mxu1 %v7047_v53  ;;  %v7106_v56 = vld [vmem:[#allocation8 + $0x22c] ss:$12 sps:$4 sm:$0xff]   ;;  %v7107_v53 = vld [vmem:[#allocation8 + $0x770] ss:$12 sps:$4 sm:$0xff]  }
 0x321   :  { %4283 = vmatpush1.bf16.msra.mxu0 %v7044_v58  ;;  %v7108_v58 = vld [vmem:[#allocation8 + $0x6b0] ss:$12 sps:$4 sm:$0xff]  }
 0x322   :  { %6203 = vmatpush3.bf16.msra.mxu1 %v7048_v24  ;;  %4284 = vmatprep.subr.bf16.mxu0 %v7051_v57  ;;  %v7111_v24 = vld [vmem:[#allocation8 + $0x244] ss:$12 sps:$4 sm:$0xff]   ;;  %v7112_v57 = vld [vmem:[#allocation8 + $0x848] ss:$12 sps:$4 sm:$0xff]  }
 0x323   :  { %6204 = vmatprep.subr.bf16.mxu1 %v7052_v47  ;;  %v7109_v47 = vld [vmem:[#allocation8 + $0x240] ss:$12 sps:$4 sm:$0xff]  }
 0x325   :  { %4285 = vmatpush1.bf16.msra.mxu0 %v7049_v9  ;;  %v7113_v9 = vld [vmem:[#allocation8 + $0x788] ss:$12 sps:$4 sm:$0xff]  }
 0x326   :  { %6205 = vmatpush3.bf16.msra.mxu1 %v7053_v62  ;;  %4286 = vmatprep.subr.bf16.mxu0 %v7056_v21  ;;  %v7116_v62 = vld [vmem:[#allocation8 + $0x25c] ss:$12 sps:$4 sm:$0xff]   ;;  %v7117_v21 = vld [vmem:[#allocation8 + $0x860] ss:$12 sps:$4 sm:$0xff]  }
 0x327   :  { %6206 = vmatprep.subr.bf16.mxu1 %v7057_v22  ;;  %v7114_v22 = vld [vmem:[#allocation8 + $0x258] ss:$12 sps:$4 sm:$0xff]  }
 0x329   :  { %4287 = vmatpush1.bf16.msra.mxu0 %v7054_v16  ;;  %v7118_v16 = vld [vmem:[#allocation8 + $0x7a0] ss:$12 sps:$4 sm:$0xff]  }
 0x32a   :  { %6207 = vmatpush3.bf16.msra.mxu1 %v7058_v31  ;;  %4288 = vmatprep.subr.bf16.mxu0 %v7061_v13  ;;  %v7121_v31 = vld [vmem:[#allocation8 + $0x274] ss:$12 sps:$4 sm:$0xff]   ;;  %v7122_v13 = vld [vmem:[#allocation8 + $0x878] ss:$12 sps:$4 sm:$0xff]  }
 0x32b   :  { %6208 = vmatprep.subr.bf16.mxu1 %v7062_v63  ;;  %v7119_v63 = vld [vmem:[#allocation8 + $0x270] ss:$12 sps:$4 sm:$0xff]  }
 0x32d   :  { %4289 = vmatpush1.bf16.msra.mxu0 %v7059_v1  ;;  %v7123_v1 = vld [vmem:[#allocation8 + $0x7b8] ss:$12 sps:$4 sm:$0xff]  }
 0x32e   :  { %6209 = vmatpush3.bf16.msra.mxu1 %v7063_v33  ;;  %4290 = vmatprep.subr.bf16.mxu0 %v7066_v6  ;;  %v7126_v33 = vld [vmem:[#allocation8 + $0x28c] ss:$12 sps:$4 sm:$0xff]   ;;  %v7127_v6 = vld [vmem:[#allocation8 + $0x890] ss:$12 sps:$4 sm:$0xff]  }
 0x32f   :  { %6210 = vmatprep.subr.bf16.mxu1 %v7067_v19  ;;  %v7124_v19 = vld [vmem:[#allocation8 + $0x288] ss:$12 sps:$4 sm:$0xff]  }
 0x331   :  { %4291 = vmatpush1.bf16.msra.mxu0 %v7064_v3  ;;  %v7128_v3 = vld [vmem:[#allocation8 + $0x7d0] ss:$12 sps:$4 sm:$0xff]  }
 0x332   :  { %6211 = vmatpush3.bf16.msra.mxu1 %v7068_v36  ;;  %4311 = vmatprep.subr.bf16.mxu0 %v7071_v4  ;;  %v7131_v36 = vld [vmem:[#allocation8 + $0x2a4] ss:$12 sps:$4 sm:$0xff]   ;;  %v7132_v4 = vld [vmem:[#allocation8 + $0x8a8] ss:$12 sps:$4 sm:$0xff]  }
 0x333   :  { %6224 = vmatprep.subr.bf16.mxu1 %v7072_v25  ;;  %v7129_v25 = vld [vmem:[#allocation8 + $0x2a0] ss:$12 sps:$4 sm:$0xff]  }
 0x334   :  { %4293 = vmatmul.mubr.bf16.vlgmr.msra.gmra.mrb[16].mxu0 %v7910_v46  ;;  %v7089_v46 = vld [vmem:[#allocation8 + $0x1e0] ss:$12 sps:$4 sm:$0xff]  }
 0x335   :  { %4443 = vmatmul.mubr.bf16.vlgmr.msra.gmra.mrb[56].mxu1 %v7931_v23  ;;  %4302 = vmatprep.mubr.bf16.mxu0 %v7822_v38  ;;  %v7087_v38 = vld [vmem:[#allocation8 + $0x710] ss:$12 sps:$4 sm:$0xff]  }
 0x336   :  { %4312 = vmatpush1.bf16.msra.mxu0 %v7069_v5  ;;  %4450 = vmatprep.mubr.bf16.mxu1 %v7892_v18  ;;  %v7136_v5 = vld [vmem:[#allocation8 + $0x2bc] ss:$12 sps:$4 sm:$0xff]  }
 0x337   :  { %6225 = vmatpush3.bf16.msra.mxu1 %v7073_v49  ;;  %4313 = vmatprep.subr.bf16.mxu0 %v7076_v17  ;;  %v7137_v49 = vld [vmem:[#allocation8 + $0x8c0] ss:$12 sps:$4 sm:$0xff]   ;;  %v7134_v17 = vld [vmem:[#allocation8 + $0x2b8] ss:$12 sps:$4 sm:$0xff]  }
 0x338   :  { %6226 = vmatprep.subr.bf16.mxu1 %v7077_v48  ;;  %v7138_v48 = vld [vmem:[#allocation8 + $0x800] ss:$12 sps:$4 sm:$0xff]  }
 0x33a   :  { %4314 = vmatpush1.bf16.msra.mxu0 %v7074_v20  ;;  %v7141_v20 = vld [vmem:[#allocation8 + $0x2d4] ss:$12 sps:$4 sm:$0xff]  }
 0x33b   :  { %6227 = vmatpush3.bf16.msra.mxu1 %v7078_v7  ;;  %4315 = vmatprep.subr.bf16.mxu0 %v7081_v34  ;;  %v7142_v7 = vld [vmem:[#allocation8 + $0x8d8] ss:$12 sps:$4 sm:$0xff]   ;;  %v7139_v34 = vld [vmem:[#allocation8 + $0x2d0] ss:$12 sps:$4 sm:$0xff]  }
 0x33c   :  { %4303 = vmatmul.mubr.bf16.gmra.mrb[20].mxu0 %v7814_v0  ;;  %6228 = vmatprep.subr.bf16.mxu1 %v7082_v37  ;;  %v7093_v0 = vld [vmem:[#allocation8 + $0x668] ss:$12 sps:$4 sm:$0xff]   ;;  %v7143_v37 = vld [vmem:[#allocation8 + $0x818] ss:$12 sps:$4 sm:$0xff]  }
 0x33d   :  { %4451 = vmatmul.mubr.bf16.gmra.mrb[60].mxu1 %v7884_v15  ;;  %4343 = vmatprep.mubr.bf16.mxu0 %v7921_v44  ;;  %v7104_v44 = vld [vmem:[#allocation8 + $0x228] ss:$12 sps:$4 sm:$0xff]  }
 0x33e   :  { %4316 = vmatpush1.bf16.msra.mxu0 %v7079_v41  ;;  %5233 = vmatprep.mubr.bf16.mxu1 %v7810_v32  ;;  %v7146_v41 = vld [vmem:[#allocation8 + $0x2ec] ss:$12 sps:$4 sm:$0xff]  }
 0x33f   :  { %6229 = vmatpush3.bf16.msra.mxu1 %v7083_v60  ;;  %4317 = vmatprep.subr.bf16.mxu0 %v7086_v29  ;;  %v7147_v60 = vld [vmem:[#allocation8 + $0x8f0] ss:$12 sps:$4 sm:$0xff]   ;;  %v7144_v29 = vld [vmem:[#allocation8 + $0x2e8] ss:$12 sps:$4 sm:$0xff]  }
 0x340   :  { %6230 = vmatprep.subr.bf16.mxu1 %v7087_v38  ;;  %v7148_v38 = vld [vmem:[#allocation8 + $0x830] ss:$12 sps:$4 sm:$0xff]  }
 0x342   :  { %4318 = vmatpush1.bf16.msra.mxu0 %v7084_v43  ;;  %v7151_v43 = vld [vmem:[#allocation8 + $0x604] ss:$12 sps:$4 sm:$0xff]  }
 0x343   :  { %6231 = vmatpush3.bf16.msra.mxu1 %v7088_v42  ;;  %4319 = vmatprep.subr.bf16.mxu0 %v7091_v14  ;;  %v7149_v42 = vld [vmem:[#allocation8 + $0x600] ss:$12 sps:$4 sm:$0xff]   ;;  %v7154_v14 = vld [vmem:[#allocation8 + $0x61c] ss:$12 sps:$4 sm:$0xff]  }
 0x344   :  { %6232 = vmatprep.subr.bf16.mxu1 %v7092_v30  ;;  %v7152_v30 = vld [vmem:[#allocation8 + $0x618] ss:$12 sps:$4 sm:$0xff]  }
 0x346   :  { %4320 = vmatpush1.bf16.msra.mxu0 %v7089_v46  ;;  %v7157_v46 = vld [vmem:[#allocation8 + $0x634] ss:$12 sps:$4 sm:$0xff]  }
 0x347   :  { %6233 = vmatpush3.bf16.msra.mxu1 %v7093_v0  ;;  %4321 = vmatprep.subr.bf16.mxu0 %v7096_v50  ;;  %v7155_v0 = vld [vmem:[#allocation8 + $0x630] ss:$12 sps:$4 sm:$0xff]   ;;  %v7160_v50 = vld [vmem:[#allocation8 + $0x64c] ss:$12 sps:$4 sm:$0xff]  }
 0x348   :  { %6234 = vmatprep.subr.bf16.mxu1 %v7097_v11  ;;  %v7161_v11 = vld [vmem:[#allocation8 + $0x660] ss:$12 sps:$4 sm:$0xff]  }
 0x34a   :  { %4322 = vmatpush1.bf16.msra.mxu0 %v7094_v51  ;;  %v7166_v51 = vld [vmem:[#allocation8 + $0x67c] ss:$12 sps:$4 sm:$0xff]  }
 0x34b   :  { %6235 = vmatpush3.bf16.msra.mxu1 %v7098_v52  ;;  %4323 = vmatprep.subr.bf16.mxu0 %v7101_v8  ;;  %v7164_v52 = vld [vmem:[#allocation8 + $0x678] ss:$12 sps:$4 sm:$0xff]   ;;  %v7169_v8 = vld [vmem:[#allocation8 + $0x694] ss:$12 sps:$4 sm:$0xff]  }
 0x34c   :  { %6236 = vmatprep.subr.bf16.mxu1 %v7102_v12  ;;  %v7167_v12 = vld [vmem:[#allocation8 + $0x690] ss:$12 sps:$4 sm:$0xff]  }
 0x34e   :  { %4324 = vmatpush1.bf16.msra.mxu0 %v7099_v45  ;;  %v7170_v45 = vld [vmem:[#allocation8 + $0x6a8] ss:$12 sps:$4 sm:$0xff]  }
 0x34f   :  { %6237 = vmatpush3.bf16.msra.mxu1 %v7103_v55  ;;  %4325 = vmatprep.subr.bf16.mxu0 %v7106_v56  ;;  %v7173_v55 = vld [vmem:[#allocation8 + $0x6c0] ss:$12 sps:$4 sm:$0xff]   ;;  %v7178_v56 = vld [vmem:[#allocation8 + $0x6dc] ss:$12 sps:$4 sm:$0xff]  }
 0x350   :  { %6238 = vmatprep.subr.bf16.mxu1 %v7107_v53  ;;  %v7176_v53 = vld [vmem:[#allocation8 + $0x6d8] ss:$12 sps:$4 sm:$0xff]  }
 0x352   :  { %4326 = vmatpush1.bf16.msra.mxu0 %v7104_v44  ;;  %v7181_v44 = vld [vmem:[#allocation8 + $0x6f4] ss:$12 sps:$4 sm:$0xff]  }
 0x353   :  { %6239 = vmatpush3.bf16.msra.mxu1 %v7108_v58  ;;  %4327 = vmatprep.subr.bf16.mxu0 %v7111_v24  ;;  %v7179_v58 = vld [vmem:[#allocation8 + $0x6f0] ss:$12 sps:$4 sm:$0xff]   ;;  %v7184_v24 = vld [vmem:[#allocation8 + $0x70c] ss:$12 sps:$4 sm:$0xff]  }
 0x354   :  { %6252 = vmatprep.subr.bf16.mxu1 %v7112_v57  ;;  %v7182_v57 = vld [vmem:[#allocation8 + $0x708] ss:$12 sps:$4 sm:$0xff]  }
 0x356   :  { %5234 = vmatmul.mubr.bf16.vlgmr.msra.gmra.mrb[64].mxu1 %v7805_v28  ;;  %4328 = vmatpush1.bf16.msra.mxu0 %v7109_v47  ;;  %v7187_v47 = vld [vmem:[#allocation8 + $0x724] ss:$12 sps:$4 sm:$0xff]  }
 0x357   :  { %5241 = vmatprep.mubr.bf16.mxu1 %v7826_v59  ;;  %6253 = vmatpush3.bf16.msra.mxu1 %v7113_v9  ;;  %v7185_v9 = vld [vmem:[#allocation8 + $0x720] ss:$12 sps:$4 sm:$0xff]  }
 0x358   :  { %4329 = vmatprep.subr.bf16.mxu0 %v7116_v62  ;;  %6254 = vmatprep.subr.bf16.mxu1 %v7117_v21  ;;  %v7190_v62 = vld [vmem:[#allocation8 + $0x73c] ss:$12 sps:$4 sm:$0xff]   ;;  %v7188_v21 = vld [vmem:[#allocation8 + $0x738] ss:$12 sps:$4 sm:$0xff]  }
 0x35a   :  { %4330 = vmatpush1.bf16.msra.mxu0 %v7114_v22  ;;  %v7193_v22 = vld [vmem:[#allocation8 + $0x754] ss:$12 sps:$4 sm:$0xff]  }
 0x35b   :  { %6255 = vmatpush3.bf16.msra.mxu1 %v7118_v16  ;;  %4331 = vmatprep.subr.bf16.mxu0 %v7121_v31  ;;  %v7191_v16 = vld [vmem:[#allocation8 + $0x750] ss:$12 sps:$4 sm:$0xff]   ;;  %v7196_v31 = vld [vmem:[#allocation8 + $0x76c] ss:$12 sps:$4 sm:$0xff]  }
 0x35c   :  { %6256 = vmatprep.subr.bf16.mxu1 %v7122_v13  ;;  %v7194_v13 = vld [vmem:[#allocation8 + $0x768] ss:$12 sps:$4 sm:$0xff]  }
 0x35e   :  { %5242 = vmatmul.mubr.bf16.gmra.mrb[68].mxu1 %v7818_v35  ;;  %4332 = vmatpush1.bf16.msra.mxu0 %v7119_v63  ;;  %v7199_v63 = vld [vmem:[#allocation8 + $0x784] ss:$12 sps:$4 sm:$0xff]  }
 0x35f   :  { %6257 = vmatpush3.bf16.msra.mxu1 %v7123_v1  ;;  %5281 = vmatprep.mubr.bf16.mxu1 %v7880_v40  ;;  %v7197_v1 = vld [vmem:[#allocation8 + $0x780] ss:$12 sps:$4 sm:$0xff]  }
 0x360   :  { %4333 = vmatprep.subr.bf16.mxu0 %v7126_v33  ;;  %6258 = vmatprep.subr.bf16.mxu1 %v7127_v6  ;;  %v7202_v33 = vld [vmem:[#allocation8 + $0x79c] ss:$12 sps:$4 sm:$0xff]   ;;  %v7200_v6 = vld [vmem:[#allocation8 + $0x798] ss:$12 sps:$4 sm:$0xff]  }
 0x362   :  { %4334 = vmatpush1.bf16.msra.mxu0 %v7124_v19  ;;  %v7205_v19 = vld [vmem:[#allocation8 + $0x7b4] ss:$12 sps:$4 sm:$0xff]  }
 0x363   :  { %6259 = vmatpush3.bf16.msra.mxu1 %v7128_v3  ;;  %4335 = vmatprep.subr.bf16.mxu0 %v7131_v36  ;;  %v7203_v3 = vld [vmem:[#allocation8 + $0x7b0] ss:$12 sps:$4 sm:$0xff]   ;;  %v7208_v36 = vld [vmem:[#allocation8 + $0x7cc] ss:$12 sps:$4 sm:$0xff]  }
 0x364   :  { %6260 = vmatprep.subr.bf16.mxu1 %v7132_v4  ;;  %v7206_v4 = vld [vmem:[#allocation8 + $0x7c8] ss:$12 sps:$4 sm:$0xff]  }
 0x366   :  { %4336 = vmatpush1.bf16.msra.mxu0 %v7129_v25  ;;  %v7211_v25 = vld [vmem:[#allocation8 + $0x7e4] ss:$12 sps:$4 sm:$0xff]  }
 0x367   :  { %6261 = vmatpush3.bf16.msra.mxu1 %v7133_v26  ;;  %4337 = vmatprep.subr.bf16.mxu0 %v7136_v5  ;;  %v7212_v5 = vld [vmem:[#allocation8 + $0x7f8] ss:$12 sps:$4 sm:$0xff]  }
 0x368   :  { %6262 = vmatprep.subr.bf16.mxu1 %v7137_v49 }
 0x36a   :  { %4338 = vmatpush1.bf16.msra.mxu0 %v7134_v17  ;;  %v7217_v17 = vld [vmem:[#allocation8 + $0x814] ss:$12 sps:$4 sm:$0xff]  }
 0x36b   :  { %6263 = vmatpush3.bf16.msra.mxu1 %v7138_v48  ;;  %4339 = vmatprep.subr.bf16.mxu0 %v7141_v20 }
 0x36c   :  { %6264 = vmatprep.subr.bf16.mxu1 %v7142_v7 }
 0x36e   :  { %4340 = vmatpush1.bf16.msra.mxu0 %v7139_v34  ;;  %v7215_v34 = vld [vmem:[#allocation8 + $0x810] ss:$12 sps:$4 sm:$0xff]  }
 0x36f   :  { %6265 = vmatpush3.bf16.msra.mxu1 %v7143_v37  ;;  %4341 = vmatprep.subr.bf16.mxu0 %v7146_v41  ;;  %v7220_v37 = vld [vmem:[#allocation8 + $0x82c] ss:$12 sps:$4 sm:$0xff]  }
 0x370   :  { %6266 = vmatprep.subr.bf16.mxu1 %v7147_v60 }
 0x372   :  { %4342 = vmatpush1.bf16.msra.mxu0 %v7144_v29  ;;  %v7218_v29 = vld [vmem:[#allocation8 + $0x828] ss:$12 sps:$4 sm:$0xff]  }
 0x373   :  { %6267 = vmatpush3.bf16.msra.mxu1 %v7148_v38  ;;  %5099 = vmatprep.subr.bf16.mxu0 %v7151_v43  ;;  %v7223_v43 = vld [vmem:[#allocation8 + $0x844] ss:$12 sps:$4 sm:$0xff]  }
 0x375   :  { %4344 = vmatmul.mubr.bf16.vlgmr.msra.gmra.mrb[16].mxu0 %v7931_v23  ;;  %v7158_v23 = vld [vmem:[#allocation8 + $0x648] ss:$12 sps:$4 sm:$0xff]  }
 0x376   :  { %5282 = vmatmul.mubr.bf16.vlgmr.msra.gmra.mrb[72].mxu1 %v7875_v10  ;;  %4353 = vmatprep.mubr.bf16.mxu0 %v7892_v18  ;;  %v7163_v18 = vld [vmem:[#allocation8 + $0x664] ss:$12 sps:$4 sm:$0xff]  }
 0x377   :  { %5100 = vmatpush1.bf16.msra.mxu0 %v7149_v42  ;;  %5289 = vmatprep.mubr.bf16.mxu1 %v7896_v61 }
 0x378   :  { %5101 = vmatprep.subr.bf16.mxu0 %v7154_v14 }
 0x37b   :  { %5102 = vmatpush1.bf16.msra.mxu0 %v7152_v30 }
 0x37c   :  { %5103 = vmatprep.subr.bf16.mxu0 %v7157_v46 }
 0x37d   :  { %4354 = vmatmul.mubr.bf16.gmra.mrb[20].mxu0 %v7884_v15  ;;  %v7172_v15 = vld [vmem:[#allocation8 + $0x6ac] ss:$12 sps:$4 sm:$0xff]  }
 0x37e   :  { %5290 = vmatmul.mubr.bf16.gmra.mrb[76].mxu1 %v7888_v54  ;;  %5131 = vmatprep.mubr.bf16.mxu0 %v7810_v32  ;;  %v7175_v32 = vld [vmem:[#allocation8 + $0x6c4] ss:$12 sps:$4 sm:$0xff]  }
 0x37f   :  { %5104 = vmatpush1.bf16.msra.mxu0 %v7155_v0  ;;  %v7226_v0 = vld [vmem:[#allocation8 + $0x85c] ss:$12 sps:$4 sm:$0xff]  }
 0x380   :  { %5105 = vmatprep.subr.bf16.mxu0 %v7160_v50  ;;  %v7224_v50 = vld [vmem:[#allocation8 + $0x858] ss:$12 sps:$4 sm:$0xff]  }
 0x383   :  { %5106 = vmatpush1.bf16.msra.mxu0 %v7158_v23  ;;  %v7229_v23 = vld [vmem:[#allocation8 + $0x874] ss:$12 sps:$4 sm:$0xff]  }
 0x384   :  { %5107 = vmatprep.subr.bf16.mxu0 %v7163_v18  ;;  %v7232_v18 = vld [vmem:[#allocation8 + $0x88c] ss:$12 sps:$4 sm:$0xff]  }
 0x387   :  { %5108 = vmatpush1.bf16.msra.mxu0 %v7161_v11  ;;  %v7230_v11 = vld [vmem:[#allocation8 + $0x888] ss:$12 sps:$4 sm:$0xff]  }
 0x388   :  { %5109 = vmatprep.subr.bf16.mxu0 %v7166_v51  ;;  %v7235_v51 = vld [vmem:[#allocation8 + $0x8a4] ss:$12 sps:$4 sm:$0xff]  }
 0x38b   :  { %5110 = vmatpush1.bf16.msra.mxu0 %v7164_v52  ;;  %v7233_v52 = vld [vmem:[#allocation8 + $0x8a0] ss:$12 sps:$4 sm:$0xff]  }
 0x38c   :  { %5111 = vmatprep.subr.bf16.mxu0 %v7169_v8 }
 0x38f   :  { %5112 = vmatpush1.bf16.msra.mxu0 %v7167_v12  ;;  %v7236_v12 = vld [vmem:[#allocation8 + $0x8b8] ss:$12 sps:$4 sm:$0xff]  }
 0x390   :  { %5113 = vmatprep.subr.bf16.mxu0 %v7172_v15 }
 0x393   :  { %5114 = vmatpush1.bf16.msra.mxu0 %v7170_v45  ;;  %v7241_v45 = vld [vmem:[#allocation8 + $0x8d4] ss:$12 sps:$4 sm:$0xff]  }
 0x394   :  { %5115 = vmatprep.subr.bf16.mxu0 %v7175_v32 }
 0x397   :  { %5116 = vmatpush1.bf16.msra.mxu0 %v7173_v55 }
 0x398   :  { %5117 = vmatprep.subr.bf16.mxu0 %v7178_v56 }
 0x39b   :  { %5118 = vmatpush1.bf16.msra.mxu0 %v7176_v53 }
 0x39c   :  { %5119 = vmatprep.subr.bf16.mxu0 %v7181_v44 }
 0x39f   :  { %5120 = vmatpush1.bf16.msra.mxu0 %v7179_v58  ;;  %v7239_v58 = vld [vmem:[#allocation8 + $0x8d0] ss:$12 sps:$4 sm:$0xff]  }
 0x3a0   :  { %5121 = vmatprep.subr.bf16.mxu0 %v7184_v24  ;;  %v7244_v24 = vld [vmem:[#allocation8 + $0x8ec] ss:$12 sps:$4 sm:$0xff]  }
 0x3a3   :  { %5122 = vmatpush1.bf16.msra.mxu0 %v7182_v57 }
 0x3a4   :  { %5123 = vmatprep.subr.bf16.mxu0 %v7187_v47 }
 0x3a7   :  { %5124 = vmatpush1.bf16.msra.mxu0 %v7185_v9  ;;  %v7242_v9 = vld [vmem:[#allocation8 + $0x8e8] ss:$12 sps:$4 sm:$0xff]  }
 0x3a8   :  { %5125 = vmatprep.subr.bf16.mxu0 %v7190_v62 }
 0x3ab   :  { %5126 = vmatpush1.bf16.msra.mxu0 %v7188_v21 }
 0x3ac   :  { %5127 = vmatprep.subr.bf16.mxu0 %v7193_v22 }
 0x3af   :  { %5128 = vmatpush1.bf16.msra.mxu0 %v7191_v16 }
 0x3b0   :  { %5129 = vmatprep.subr.bf16.mxu0 %v7196_v31 }
 0x3b3   :  { %5130 = vmatpush1.bf16.msra.mxu0 %v7194_v13 }
 0x3b4   :  { %5150 = vmatprep.subr.bf16.mxu0 %v7199_v63 }
 0x3b6   :  { %5132 = vmatmul.mubr.bf16.vlgmr.msra.gmra.mrb[16].mxu0 %v7805_v28  ;;  %v7209_v28 = vld [vmem:[#allocation8 + $0x7e0] ss:$12 sps:$4 sm:$0xff]  }
 0x3b7   :  { %5141 = vmatprep.mubr.bf16.mxu0 %v7826_v59  ;;  %5151 = vmatpush1.bf16.msra.mxu0 %v7197_v1  ;;  %v7214_v59 = vld [vmem:[#allocation8 + $0x7fc] ss:$12 sps:$4 sm:$0xff]  }
 0x3b8   :  { %5152 = vmatprep.subr.bf16.mxu0 %v7202_v33 }
 0x3bb   :  { %5153 = vmatpush1.bf16.msra.mxu0 %v7200_v6 }
 0x3bc   :  { %5154 = vmatprep.subr.bf16.mxu0 %v7205_v19 }
 0x3be   :  { %5142 = vmatmul.mubr.bf16.gmra.mrb[20].mxu0 %v7818_v35 }
 0x3bf   :  { %5155 = vmatpush1.bf16.msra.mxu0 %v7203_v3  ;;  %5182 = vmatprep.mubr.bf16.mxu0 %v7880_v40 }
 0x3c0   :  { %5156 = vmatprep.subr.bf16.mxu0 %v7208_v36 }
 0x3c3   :  { %5157 = vmatpush1.bf16.msra.mxu0 %v7206_v4 }
 0x3c4   :  { %5158 = vmatprep.subr.bf16.mxu0 %v7211_v25 }
 0x3c7   :  { %5159 = vmatpush1.bf16.msra.mxu0 %v7209_v28  ;;  %v6156_v26 = vpop.f32.mrb[40].mxu1 }
 0x3c8   :  { %5160 = vmatprep.subr.bf16.mxu0 %v7214_v59  ;;  %v6157_v49 = vpop.f32.mrb[41].mxu1 }
 0x3c9   :  { %v6158_v48 = vadd.f32 %v6157_v49, %v6156_v26  ;;  %v6159_v20 = vpop.f32.mrb[42].mxu1 }
 0x3ca   :  { %v6160_v7 = vpop.f32.mrb[43].mxu1 }
 0x3cb   :  { %v3735_v35 = vadd.f32 %v6158_v48, %v7898_v2  ;;  %5161 = vmatpush1.bf16.msra.mxu0 %v7212_v5  ;;  %v6161_v40 = vadd.f32 %v6160_v7, %v6159_v20  ;;  %v7221_v2 = vld [vmem:[#allocation8 + $0x840] ss:$12 sps:$4 sm:$0xff]  }
 0x3cc   :  { %5162 = vmatprep.subr.bf16.mxu0 %v7217_v17 }
 0x3cd   :  { %v3738_v41 = vadd.f32 %v6161_v40, %v7900_v27  ;;  %v7227_v27 = vld [vmem:[#allocation8 + $0x870] ss:$12 sps:$4 sm:$0xff]  }
 0x3cf   :  { %5163 = vmatpush1.bf16.msra.mxu0 %v7215_v34  ;;  %v6162_v60 = vpop.f32.mrb[44].mxu1 }
 0x3d0   :  { %5164 = vmatprep.subr.bf16.mxu0 %v7220_v37  ;;  %v6163_v38 = vpop.f32.mrb[45].mxu1 }
 0x3d1   :  { %v6164_v42 = vadd.f32 %v6163_v38, %v6162_v60  ;;  %v6165_v14 = vpop.f32.mrb[46].mxu1  ;;  %v7245_v38 = vld [vmem:[#allocation11] sm:$0xff]  }
 0x3d2   :  { %v6166_v30 = vpop.f32.mrb[47].mxu1  ;;  %6290 = vmatprep.subr.bf16.mxu1 %v7245_v38 }
 0x3d3   :  { %v3743_v46 = vadd.f32 %v6164_v42, %v7905_v39  ;;  %5165 = vmatpush1.bf16.msra.mxu0 %v7218_v29  ;;  %v7238_v39 = vld [vmem:[#allocation8 + $0x8bc] ss:$12 sps:$4 sm:$0xff]   ;;  %6291 = vmatpush3.bf16.msra.mxu1 %v7245_v38 }
 0x3d4   :  { %5166 = vmatprep.subr.bf16.mxu0 %v7223_v43 }
 0x3d7   :  { %5167 = vmatpush1.bf16.msra.mxu0 %v7221_v2  ;;  %v7246_v2 = vld [vmem:[#allocation11 + $0x8] sm:$0xff]  }
 0x3d8   :  { %5168 = vmatprep.subr.bf16.mxu0 %v7226_v0  ;;  %6292 = vmatprep.subr.bf16.mxu1 %v7246_v2 }
 0x3d9   :  { %6293 = vmatpush3.bf16.msra.mxu1 %v7246_v2 }
 0x3db   :  { %5169 = vmatpush1.bf16.msra.mxu0 %v7224_v50 }
 0x3dc   :  { %5170 = vmatprep.subr.bf16.mxu0 %v7229_v23 }
 0x3df   :  { %5171 = vmatpush1.bf16.msra.mxu0 %v7227_v27 }
 0x3e0   :  { %5172 = vmatprep.subr.bf16.mxu0 %v7232_v18 }
 0x3e3   :  { %5173 = vmatpush1.bf16.msra.mxu0 %v7230_v11  ;;  %v7247_v11 = vld [vmem:[#allocation11 + $0x10] sm:$0xff]  }
 0x3e4   :  { %5174 = vmatprep.subr.bf16.mxu0 %v7235_v51  ;;  %6294 = vmatprep.subr.bf16.mxu1 %v7247_v11 }
 0x3e5   :  { %6295 = vmatpush3.bf16.msra.mxu1 %v7247_v11 }
 0x3e7   :  { %5175 = vmatpush1.bf16.msra.mxu0 %v7233_v52  ;;  %v6184_v8 = vpop.f32.mrb[48].mxu1 }
 0x3e8   :  { %v6185_v15 = vpop.f32.mrb[49].mxu1  ;;  %5176 = vmatprep.subr.bf16.mxu0 %v7238_v39 }
 0x3e9   :  { %v6186_v32 = vadd.f32 %v6185_v15, %v6184_v8  ;;  %v6187_v55 = vpop.f32.mrb[50].mxu1  ;;  %v7248_v8 = vld [vmem:[#allocation11 + $0x18] sm:$0xff]   ;;  %v7250_v15 = vld [vmem:[#allocation11 + $0x28] sm:$0xff]  }
 0x3ea   :  { %v6188_v56 = vpop.f32.mrb[51].mxu1  ;;  %6296 = vmatprep.subr.bf16.mxu1 %v7248_v8 }
 0x3eb   :  { %v4397_v53 = vadd.f32 %v6186_v32, %v3735_v35  ;;  %5177 = vmatpush1.bf16.msra.mxu0 %v7236_v12  ;;  %v6189_v44 = vadd.f32 %v6188_v56, %v6187_v55  ;;  %6297 = vmatpush3.bf16.msra.mxu1 %v7248_v8  ;;  %v7249_v12 = vld [vmem:[#allocation11 + $0x20] sm:$0xff]   ;;  %v7252_v32 = vld [vmem:[#allocation11 + $0x38] sm:$0xff]  }
 0x3ec   :  { %5178 = vmatprep.subr.bf16.mxu0 %v7241_v45  ;;  %6298 = vmatprep.subr.bf16.mxu1 %v7249_v12  ;;  %v7251_v45 = vld [vmem:[#allocation11 + $0x30] sm:$0xff]  }
 0x3ed   :  { %v4400_v57 = vadd.f32 %v6189_v44, %v3738_v41 }
 0x3ef   :  { %5179 = vmatpush1.bf16.msra.mxu0 %v7239_v58  ;;  %v6190_v47 = vpop.f32.mrb[52].mxu1  ;;  %6299 = vmatpush3.bf16.msra.mxu1 %v7249_v12  ;;  %v6096_v58 = vld [vmem:[#allocation10] ss:$0 sm:$0xff] }
 0x3f0   :  { %v6191_v62 = vpop.f32.mrb[53].mxu1  ;;  %5180 = vmatprep.subr.bf16.mxu0 %v7244_v24  ;;  %6300 = vmatprep.subr.bf16.mxu1 %v7250_v15 }
 0x3f1   :  { %v6192_v21 = vadd.f32 %v6191_v62, %v6190_v47  ;;  %v6193_v22 = vpop.f32.mrb[54].mxu1 }
 0x3f2   :  { %v6194_v16 = vpop.f32.mrb[55].mxu1 }
 0x3f3   :  { %v4405_v31 = vadd.f32 %v6192_v21, %v3743_v46  ;;  %5181 = vmatpush1.bf16.msra.mxu0 %v7242_v9  ;;  %6301 = vmatpush3.bf16.msra.mxu1 %v7250_v15 }
 0x3f4   :  { %6302 = vmatprep.subr.bf16.mxu1 %v7251_v45 }
 0x3f6   :  { %5183 = vmatmul.mubr.bf16.vlgmr.msra.gmra.mrb[16].mxu0 %v7875_v10 }
 0x3f7   :  { %5192 = vmatprep.mubr.bf16.mxu0 %v7896_v61  ;;  %6303 = vmatpush3.bf16.msra.mxu1 %v7251_v45 }
 0x3f8   :  { %6304 = vmatprep.subr.bf16.mxu1 %v7252_v32 }
 0x3fb   :  { %6305 = vmatpush3.bf16.msra.mxu1 %v7252_v32 }
 0x3fe   :  { %5193 = vmatmul.mubr.bf16.gmra.mrb[20].mxu0 %v7888_v54 }
 0x408   :  { %v6212_v13 = vpop.f32.mrb[56].mxu1 }
 0x409   :  { %v6213_v63 = vpop.f32.mrb[57].mxu1 }
 0x40a   :  { %v6214_v1 = vadd.f32 %v6213_v63, %v6212_v13  ;;  %v6215_v33 = vpop.f32.mrb[58].mxu1 }
 0x40b   :  { %v6216_v6 = vpop.f32.mrb[59].mxu1 }
 0x40c   :  { %v4445_v19 = vadd.f32 %v6214_v1, %v4397_v53  ;;  %v6217_v3 = vadd.f32 %v6216_v6, %v6215_v33 }
 0x40e   :  { %v4448_v36 = vadd.f32 %v6217_v3, %v4400_v57 }
 0x410   :  { %v6218_v4 = vpop.f32.mrb[60].mxu1 }
 0x411   :  { %v6219_v25 = vpop.f32.mrb[61].mxu1 }
 0x412   :  { %v6220_v28 = vadd.f32 %v6219_v25, %v6218_v4  ;;  %v6221_v59 = vpop.f32.mrb[62].mxu1 }
 0x413   :  { %v6222_v26 = vpop.f32.mrb[63].mxu1 }
 0x414   :  { %v4453_v5 = vadd.f32 %v6220_v28, %v4405_v31 }
 0x429   :  { %v6240_v49 = vpop.f32.mrb[64].mxu1 }
 0x42a   :  { %v6241_v10 = vpop.f32.mrb[65].mxu1 }
 0x42b   :  { %v6242_v17 = vadd.f32 %v6241_v10, %v6240_v49  ;;  %v6243_v61 = vpop.f32.mrb[66].mxu1 }
 0x42c   :  { %v6244_v48 = vpop.f32.mrb[67].mxu1 }
 0x42d   :  { %v6245_v54 = vadd.f32 %v6244_v48, %v6243_v61 }
 0x431   :  { %v6246_v20 = vpop.f32.mrb[68].mxu1 }
 0x432   :  { %v6247_v7 = vpop.f32.mrb[69].mxu1 }
 0x433   :  { %v6248_v35 = vadd.f32 %v6247_v7, %v6246_v20  ;;  %v6249_v40 = vpop.f32.mrb[70].mxu1  ;;  %v6100_v7 = vld [vmem:[#allocation13] ss:$0 sm:$0xff] }
 0x434   :  { %v6250_v34 = vpop.f32.mrb[71].mxu1 }
 0x449   :  { %v6268_v37 = vpop.f32.mrb[72].mxu1 }
 0x44a   :  { %v6269_v41 = vpop.f32.mrb[73].mxu1 }
 0x44b   :  { %v6270_v60 = vadd.f32 %v6269_v41, %v6268_v37  ;;  %v6271_v29 = vpop.f32.mrb[74].mxu1 }
 0x44c   :  { %v6272_v43 = vpop.f32.mrb[75].mxu1 }
 0x44d   :  { %v5284_v42 = vadd.f32 %v6270_v60, %v6242_v17  ;;  %v6273_v14 = vadd.f32 %v6272_v43, %v6271_v29 }
 0x44f   :  { %v5287_v30 = vadd.f32 %v6273_v14, %v6245_v54  ;;  %v5299_v46 = vadd.f32 %v5284_v42, %v4445_v19 }
 0x451   :  { %v6274_v0 = vpop.f32.mrb[76].mxu1  ;;  %v5302_v50 = vadd.f32 %v5287_v30, %v4448_v36 }
 0x452   :  { %v6275_v23 = vpop.f32.mrb[77].mxu1 }
 0x453   :  { %v6276_v27 = vadd.f32 %v6275_v23, %v6274_v0  ;;  %v6277_v18 = vpop.f32.mrb[78].mxu1 }
 0x454   :  { %v6278_v51 = vpop.f32.mrb[79].mxu1 }
 0x455   :  { %v5292_v52 = vadd.f32 %v6276_v27, %v6248_v35 }
 0x457   :  { %v5305_v39 = vadd.f32 %v5292_v52, %v4453_v5 }
 0x4c9   :  { %v5184_v55 = vpop.f32.mrb[16].mxu0 }
 0x4ca   :  { %v5186_v56 = vpop.f32.mrb[17].mxu0 }
 0x4cb   :  { %v5306_v53 = vmax.f32 %v5184_v55, %v5186_v56  ;;  %v5188_v44 = vpop.f32.mrb[18].mxu0 }
 0x4cc   :  { %v5190_v24 = vpop.f32.mrb[19].mxu0 }
 0x4cd   :  { %v5309_v57 = vmax.f32 %v5306_v53, %v5299_v46  ;;  %v5307_v47 = vmax.f32 %v5188_v44, %v5190_v24 }
 0x4cf   :  { %v5319_v9 = vadd.f32 %v6096_v58, %v5309_v57  ;;  %v5310_v62 = vmax.f32 %v5307_v47, %v5302_v50 }
 0x4d1   :  { %v5325_v21 = vmin.f32 %v5319_v9, 0.0  ;;  %v5320_v22 = vadd.f32 %v6096_v58, %v5310_v62  ;;  %v5194_v16 = vpop.f32.mrb[20].mxu0  ;;  %vm5322_vm3 = vcmp.gt.f32.partialorder %v5319_v9, 0.0 }
 0x4d2   :  { %v5196_v31 = vpop.f32.mrb[21].mxu0 }
 0x4d3   :  { %v5328_v13 = vmul.f32 1.442695, %v5325_v21  ;;  %v5326_v63 = vmin.f32 %v5320_v22, 0.0  ;;  %v5308_v1 = vmax.f32 %v5194_v16, %v5196_v31  ;;  %v5198_v33 = vpop.f32.mrb[22].mxu0  ;;  %vm5323_vm4 = vcmp.gt.f32.partialorder %v5320_v22, 0.0 }
 0x4d4   :  { %v5199_v6 = vpop.f32.mrb[23].mxu0 }
 0x4d5   :  { %7277 = vpow2.f32 %v5328_v13  ;;  %v5330_v19 = vmul.f32 1.442695, %v5326_v63  ;;  %v5311_v3 = vmax.f32 %v5308_v1, %v5305_v39 }
 0x4d7   :  { %7279 = vpow2.f32 %v5330_v19  ;;  %v5321_v36 = vadd.f32 %v6096_v58, %v5311_v3 }
 0x4d9   :  { %v5327_v4 = vmin.f32 %v5321_v36, 0.0  ;;  %vm5324_vm5 = vcmp.gt.f32.partialorder %v5321_v36, 0.0 }
 0x4db   :  { %v5332_v25 = vmul.f32 1.442695, %v5327_v4 }
 0x4dd   :  { %7281 = vpow2.f32 %v5332_v25 }
 0x4df   :  { %v7278_v28 = vpop.eup %7277 }
 0x4e0   :  { %v6097_v59 = vadd.f32 -1.0, %v7278_v28 }
 0x4e1   :  { %v7280_v26 = vpop.eup %7279 }
 0x4e2   :  { %v6098_v5 = vadd.f32 -1.0, %v7280_v26  ;;  %v5337_v49 = vsel %vm5322_vm3, %v5319_v9, %v6097_v59 }
 0x4e4   :  { %v5338_v10 = vsel %vm5323_vm4, %v5320_v22, %v6098_v5 }
 0x4e5   :  { %v5340_v17 = vpack.c.bf16 %v5338_v10, %v5337_v49 }
 0x4e7   :  { %v7282_v61 = vpop.eup %7281  ;;  %6306 = vmatprep.mubr.bf16.mxu1 %v5340_v17 }
 0x4e8   :  { %v6099_v48 = vadd.f32 -1.0, %v7282_v61 }
 0x4ea   :  { %v5339_v54 = vsel %vm5324_vm5, %v5321_v36, %v6099_v48 }
 0x4eb   :  { %v5341_v20 = vpack.c.bf16 %v5339_v54, %v5339_v54 }
 0x4ed   :  { %6307 = vmatmul.mubr.bf16.vlgmr.msra.gmra.mrb[80].mxu1 %v5341_v20 }
 0x5c0   :  { %v6308_v35 = vpop.f32.mrb[80].mxu1 }
 0x5c1   :  { %v5456_v40 = vadd.f32 %v6308_v35, %v6100_v7  ;;  %v5447_v34 = vpop.f32.mrb[81].mxu1 }
 0x5c2   :  { %v5448_v37 = vadd.f32 %v6100_v7, %v5447_v34  ;;  %v6309_v41 = vpop.f32.mrb[82].mxu1 }
 0x5c3   :  { %v5466_v60 = vmin.f32 %v5456_v40, 0.0  ;;  %v5450_v29 = vpop.f32.mrb[83].mxu1  ;;  %vm5463_vm6 = vcmp.gt.f32.partialorder %v5456_v40, 0.0 }
 0x5c4   :  { %v5464_v38 = vmin.f32 %v5448_v37, 0.0  ;;  %v5451_v43 = vadd.f32 %v6100_v7, %v5450_v29  ;;  %vm5461_vm7 = vcmp.gt.f32.partialorder %v5448_v37, 0.0 }
 0x5c5   :  { %v5471_v42 = vmul.f32 1.442695, %v5466_v60 }
 0x5c6   :  { %v5467_v14 = vmul.f32 1.442695, %v5464_v38  ;;  %v5465_v30 = vmin.f32 %v5451_v43, 0.0  ;;  %vm5462_vm8 = vcmp.gt.f32.partialorder %v5451_v43, 0.0 }
 0x5c7   :  { %7283 = vpow2.f32 %v5471_v42 }
 0x5c8   :  { %7285 = vpow2.f32 %v5467_v14  ;;  %v5469_v46 = vmul.f32 1.442695, %v5465_v30 }
 0x5ca   :  { %7287 = vpow2.f32 %v5469_v46 }
 0x5d1   :  { %v7284_v2 = vpop.eup %7283 }
 0x5d2   :  { %v7286_v0 = vpop.eup %7285  ;;  %v6111_v50 = vadd.f32 -1.0, %v7284_v2 }
 0x5d3   :  { %v6109_v23 = vadd.f32 -1.0, %v7286_v0 }
 0x5d4   :  { %v7288_v27 = vpop.eup %7287  ;;  %v5478_v18 = vsel %vm5463_vm6, %v5456_v40, %v6111_v50 }
 0x5d5   :  { %5481 = vst [vmem:[#allocation14 + $0x10] sm:$0xf] %v5478_v18  ;;  %v5476_v11 = vsel %vm5461_vm7, %v5448_v37, %v6109_v23  ;;  %v6110_v51 = vadd.f32 -1.0, %v7288_v27 }
 0x5d6   :  { %5479 = vst [vmem:[#allocation14] sm:$0xff] %v5476_v11 }
 0x5d7   :  { %v5477_v52 = vsel %vm5462_vm8, %v5451_v43, %v6110_v51 }
 0x5d8   :  { %5480 = vst [vmem:[#allocation14 + $0x8] sm:$0xff] %v5477_v52 }
 0x5d9   :  { %7456 = shalt.err (!%p7453_p4)
}
 0x5da   :  { %s7457_s17 = scalar_lea.hbm %s7980_s7, 384 }
 0x5db   :  { %p7458_p5 = scmp.ne.s32.totalorder %s7980_s7, %s7457_s17  ;;  %p7461_p6 = scmp.lt.u32.totalorder %s7457_s17, %s7980_s7 }
 0x5dd   :  { %p7463_p7 = pnand %p7461_p6, %p7458_p5 }
 0x5df   :  { %7466 = shalt.err (!%p7463_p7)
}
 0x5e0   :  { %s7493_s24 = smov 128   ;;  %s7494_s26 = smov 8  }
 0x5e1   :  { %5493 = dma.vmem_to_hbm [thread:$0]  %s5488_s0, 384, %s7980_s7, [#allocation4], %s7493_s24, %s7493_s24, %s7494_s26  }
 0x5e2   :  { %7475 = dma.done.wait [#allocation4], 384  }
 0x5e3   :  { %7476 = vsyncadd [#allocation4], 4294966912 }
 0x5e4   :  { %5497 = vsyncpa [#allocation3], 1 }
 0x5e5   :  { %5498 = vsyncpa [#allocation6], 1 }
 0x5e6   :  { %5499 = vsyncpa [#allocation9], 1 }
 0x5e7   :  { %5500 = vsyncpa [#allocation12], 1 }
 0x5e8   :  { %5501 = vsyncpa [#allocation4], 1 }

</bundles_post_ra>
